<compile_context>
chip_gen: v7x
topology: tpu7x:2x2x1
jax: 0.10.0
libtpu: 0.0.40
codegen_flags: <defaults>
</compile_context>

<pallas_src>
import jax
import jax.numpy as jnp
from jax import lax
from jax.experimental import pallas as pl
from jax.experimental.pallas import tpu as pltpu


# ----------------------------------------------------------------------------
# Fused decoder kernel.
#   x_ref       : (T*B, 128)   time-major embedded inputs (row t*B+b = batch b, step t)
#   wih_ref     : (128, 4H)    == weight_ih_l0.T   (gate order i, f, g, o)
#   whh_ref     : (H, 4H)      == weight_hh_l0.T
#   b_ref       : (1, 4H)      == b_ih + b_hh
#   enc_flat_ref: (B, S*E)     encoder outputs, lanes packed as k = s*E + e
#   enc_exp_ref : (B, E, S*E)  enc_exp[b, e', s*E+e] = enc[b, s, e']  (wrapper-built)
#   out_ref     : (T, B*2H)    lane-dense output; row t = [d_0 | ctx_0 | d_1 | ctx_1 | ...]
#   xw_ref      : (T*B, 4H)    VMEM scratch holding the hoisted input projection
# ----------------------------------------------------------------------------
def _decoder_fused_kernel(x_ref, wih_ref, whh_ref, b_ref, enc_flat_ref, enc_exp_ref,
                          out_ref, xw_ref):
    TB = x_ref.shape[0]
    H = whh_ref.shape[0]
    B, SE = enc_flat_ref.shape
    E = H                      # quirky torch broadcast requires hidden_size == enc dim
    S = SE // E
    T = TB // B

    # Hoisted input projection (+ bias folded in): ONE MXU matmul instead of T tiny ones.
    xw_ref[...] = (
        jnp.dot(x_ref[...], wih_ref[...], preferred_element_type=jnp.float32)
        + b_ref[...]
    )

    whh = whh_ref[...]                    # (H, 4H)
    enc_flat = enc_flat_ref[...]          # (B, S*E)   lane-dense
    enc_exp = enc_exp_ref[...]            # (B, E, S*E) lane-dense

    # Loop-invariant select mask: tanh on the g-gate lanes, sigmoid elsewhere.
    lane = lax.broadcasted_iota(jnp.int32, (B, 4 * H), 1)
    g_mask = (lane >= 2 * H) & (lane < 3 * H)

    def step(t, carry):
        h, c = carry

        # ---- LSTM cell: only the recurrent (B,H)@(H,4H) matmul is on the critical path.
        row0 = pl.multiple_of(t * B, B)
        gates = xw_ref[pl.ds(row0, B), :] + jnp.dot(
            h, whh, preferred_element_type=jnp.float32)           # (B, 4H)
        # Full-vreg activations + one select (no per-gate 32-lane EUP calls).
        act = jnp.where(g_mask, jnp.tanh(gates), jax.nn.sigmoid(gates))
        i_g = act[:, 0:H]
        f_g = act[:, H:2 * H]
        g_g = act[:, 2 * H:3 * H]
        o_g = act[:, 3 * H:4 * H]
        c_new = f_g * c + i_g * g_g
        h_new = o_g * jnp.tanh(c_new)                              # == dec_out[:, t, :]

        # ---- Quirky attention, lane-packed over k = s*E + e (exp on full 256-lane rows).
        # colsum[b, s*E+e] = sum_h exp(d[b,h] * enc[b,s,e])
        m1 = jnp.exp(h_new[:, :, None] * enc_flat[:, None, :])     # (B, H, S*E)
        colsum = jnp.sum(m1, axis=1)                               # (B, S*E)
        # denom[b, s*E+e] = sum_{e'} exp(d[b,e] * enc[b,s,e'])   (PyTorch broadcast quirk)
        d_rep = jnp.concatenate([h_new] * S, axis=1)               # (B, S*E): d_rep[b,s*E+e]=d[b,e]
        m2 = jnp.exp(d_rep[:, None, :] * enc_exp)                  # (B, E, S*E)
        denom = jnp.sum(m2, axis=1)                                # (B, S*E)
        contrib = colsum * enc_flat / denom                        # (B, S*E)
        # ctx[b, e] = sum_s contrib[b, s*E+e]   (small exact epilogue reduction)
        ctx = contrib[:, 0:E]
        for s in range(1, S):
            ctx = ctx + contrib[:, s * E:(s + 1) * E]              # (B, E)

        # ---- Lane-dense output row: one (1, B*2H)=128-wide unmasked store per step.
        pieces = []
        for b in range(B):
            pieces.append(h_new[b:b + 1, :])
            pieces.append(ctx[b:b + 1, :])
        out_ref[pl.ds(t, 1), :] = jnp.concatenate(pieces, axis=1)  # (1, B*2H)

        return (h_new, c_new)

    h0 = jnp.zeros((B, H), jnp.float32)
    c0 = jnp.zeros((B, H), jnp.float32)
    # unroll=True: straight-line code lets the scheduler overlap attention(t)
    # (EUP/XLU-bound) with LSTM step t+1 (MXU/VPU-bound).
    lax.fori_loop(0, T, step, (h0, c0), unroll=True)


# ----------------------------------------------------------------------------
# Decoder forward: embedding gather + layout plumbing in plain JAX (free),
# all hot-path compute inside the single fused Pallas kernel.
# ----------------------------------------------------------------------------
@jax.jit
def decoder_forward(target_inputs, encoder_outputs, emb, w_ih, w_hh, bias):
    B, T = target_inputs.shape
    _, S, E = encoder_outputs.shape
    H = w_hh.shape[0]
    # The PyTorch Attention's (H,E)/(H,) broadcast is only well-defined for H == E.
    assert H == E, f"hidden_size ({H}) must equal encoder feature dim ({E})"

    x = jnp.take(emb, target_inputs, axis=0)                             # (B, T, 128)
    x_flat = jnp.transpose(x, (1, 0, 2)).reshape(T * B, emb.shape[1])    # time-major
    enc_flat = encoder_outputs.reshape(B, S * E)                         # (B, S*E)
    enc_exp = jnp.repeat(jnp.swapaxes(encoder_outputs, 1, 2), E, axis=2)  # (B, E, S*E)

    vmem = pltpu.MemorySpace.VMEM
    out_flat = pl.pallas_call(
        _decoder_fused_kernel,
        out_shape=jax.ShapeDtypeStruct((T, B * 2 * H), jnp.float32),
        in_specs=[pl.BlockSpec(memory_space=vmem)] * 6,
        out_specs=pl.BlockSpec(memory_space=vmem),
        scratch_shapes=[pltpu.VMEM((T * B, 4 * H), jnp.float32)],
        # TODO(synk): at larger B shard batch over a parallel grid axis (2nd TC on v7x);
        # at larger S block the encoder spec and set vmem_limit_bytes (v7x has 64 MiB VMEM).
    )(x_flat, w_ih, w_hh, bias, enc_flat, enc_exp)

    return out_flat.reshape(T, B, 2 * H)     # == torch.stack(preds): (T, B, 2H)


# ----------------------------------------------------------------------------
# Pure-JAX reference (mirrors the PyTorch code, including the broadcast quirk).
# ----------------------------------------------------------------------------
def decoder_reference(target_inputs, encoder_outputs, emb, w_ih, w_hh, bias):
    B, T = target_inputs.shape
    H = w_hh.shape[0]
    S = encoder_outputs.shape[1]
    x = jnp.take(emb, target_inputs, axis=0)  # (B, T, 128)

    h = jnp.zeros((B, H), jnp.float32)
    c = jnp.zeros((B, H), jnp.float32)
    dec_steps = []
    for t in range(T):
        gates = x[:, t, :] @ w_ih + h @ w_hh + bias[0]
        i_g = jax.nn.sigmoid(gates[:, 0:H])
        f_g = jax.nn.sigmoid(gates[:, H:2 * H])
        g_g = jnp.tanh(gates[:, 2 * H:3 * H])
        o_g = jax.nn.sigmoid(gates[:, 3 * H:4 * H])
        c = f_g * c + i_g * g_g
        h = o_g * jnp.tanh(c)
        dec_steps.append(h)
    dec = jnp.stack(dec_steps, axis=1)  # (B, T, H)

    preds = []
    for t in range(T):
        d = dec[:, t, :]
        c_t = jnp.zeros_like(encoder_outputs[:, 0, :])
        for i in range(S):
            enc_i = encoder_outputs[:, i, :]
            M = jnp.exp(d[:, :, None] * enc_i[:, None, :])
            c_t = c_t + jnp.sum(M, axis=1) * enc_i / jnp.sum(M, axis=2)
        preds.append(jnp.concatenate([d, c_t], axis=1))
    return jnp.stack(preds, axis=0)  # (T, B, 2H)


if __name__ == "__main__":
    # Small, module-consistent shapes.
    B, T, S = 2, 8, 8
    H = 32          # hidden_size (must equal encoder feature dim E)
    E = H
    EMB = 128       # embedding dim fixed to 128 in the module
    ALPHABET = 50

    key = jax.random.PRNGKey(0)
    k_ids, k_enc, k_emb, k_wih, k_whh, k_b = jax.random.split(key, 6)

    target_inputs = jax.random.randint(k_ids, (B, T), 0, ALPHABET, dtype=jnp.int32)
    # Moderate scale keeps the (un-stabilized, as in PyTorch) exp well in range.
    encoder_outputs = 0.5 * jax.random.normal(k_enc, (B, S, E), dtype=jnp.float32)

    # Deterministic synthetic parameters (shapes from nn.Embedding / nn.LSTM).
    emb = 0.1 * jax.random.normal(k_emb, (ALPHABET, EMB), dtype=jnp.float32)
    scale = 1.0 / jnp.sqrt(H)
    w_ih = scale * jax.random.normal(k_wih, (EMB, 4 * H), dtype=jnp.float32)   # weight_ih_l0.T
    w_hh = scale * jax.random.normal(k_whh, (H, 4 * H), dtype=jnp.float32)     # weight_hh_l0.T
    bias = scale * jax.random.normal(k_b, (1, 4 * H), dtype=jnp.float32)       # b_ih + b_hh

    out = decoder_forward(target_inputs, encoder_outputs, emb, w_ih, w_hh, bias)
    out = jax.block_until_ready(out)

    ref = decoder_reference(target_inputs, encoder_outputs, emb, w_ih, w_hh, bias)
    assert out.shape == (T, B, 2 * H), out.shape
    assert jnp.allclose(out, ref, rtol=2e-3, atol=2e-3), float(jnp.max(jnp.abs(out - ref)))

    print("KERNEL_OK")
</pallas_src>

<mosaic_0001>
module attributes {stable_mosaic.version = 11 : i64} {
  func.func @_decoder_fused_kernel(%arg0: memref<16x128xf32, #tpu.memory_space<vmem>>, %arg1: memref<128x128xf32, #tpu.memory_space<vmem>>, %arg2: memref<32x128xf32, #tpu.memory_space<vmem>>, %arg3: memref<1x128xf32, #tpu.memory_space<vmem>>, %arg4: memref<2x256xf32, #tpu.memory_space<vmem>>, %arg5: memref<2x32x256xf32, #tpu.memory_space<vmem>>, %arg6: memref<8x128xf32, #tpu.memory_space<vmem>>, %arg7: memref<16x128xf32, #tpu.memory_space<vmem>>) attributes {dimension_semantics = [], scalar_prefetch = 0 : i64, scratch_operands = 1 : i64, tpu.core_type = #tpu.core_type<tc>} {
    %c0 = arith.constant 0 : index
    %c0_0 = arith.constant 0 : index
    %0 = vector.load %arg0[%c0, %c0_0] : memref<16x128xf32, #tpu.memory_space<vmem>>, vector<16x128xf32>
    %c0_1 = arith.constant 0 : index
    %c0_2 = arith.constant 0 : index
    %1 = vector.load %arg1[%c0_1, %c0_2] : memref<128x128xf32, #tpu.memory_space<vmem>>, vector<128x128xf32>
    %cst = arith.constant dense<0.000000e+00> : vector<16x128xf32>
    %2 = tpu.matmul %0, %1, %cst {dimension_numbers = #tpu.dot_dimension_numbers<[1], [0], [0], [1], [0, 0, 1, 1], [], []>} : vector<16x128xf32>, vector<128x128xf32>, vector<16x128xf32> -> vector<16x128xf32>
    %c0_3 = arith.constant 0 : index
    %c0_4 = arith.constant 0 : index
    %3 = vector.load %arg3[%c0_3, %c0_4] : memref<1x128xf32, #tpu.memory_space<vmem>>, vector<1x128xf32>
    %4 = vector.broadcast %3 : vector<1x128xf32> to vector<16x128xf32>
    %5 = arith.addf %2, %4 : vector<16x128xf32>
    %c0_5 = arith.constant 0 : index
    %c0_6 = arith.constant 0 : index
    %6 = vector.load %arg7[%c0_5, %c0_6] : memref<16x128xf32, #tpu.memory_space<vmem>>, vector<16x128xf32>
    tpu.vector_store %arg7[%c0_5, %c0_6], %5 {strides = array<i32>} : memref<16x128xf32, #tpu.memory_space<vmem>>, vector<16x128xf32>,
    %c0_7 = arith.constant 0 : index
    %c0_8 = arith.constant 0 : index
    %7 = vector.load %arg2[%c0_7, %c0_8] : memref<32x128xf32, #tpu.memory_space<vmem>>, vector<32x128xf32>
    %c0_9 = arith.constant 0 : index
    %c0_10 = arith.constant 0 : index
    %8 = vector.load %arg4[%c0_9, %c0_10] : memref<2x256xf32, #tpu.memory_space<vmem>>, vector<2x256xf32>
    %c0_11 = arith.constant 0 : index
    %c0_12 = arith.constant 0 : index
    %c0_13 = arith.constant 0 : index
    %9 = vector.load %arg5[%c0_11, %c0_12, %c0_13] : memref<2x32x256xf32, #tpu.memory_space<vmem>>, vector<2x32x256xf32>
    %10 = tpu.iota {dimensions = array<i32: 1>} : vector<2x128xi32>
    %c64_i32 = arith.constant 64 : i32
    %11 = vector.broadcast %c64_i32 : i32 to vector<2x128xi32>
    %12 = arith.cmpi sge, %10, %11 : vector<2x128xi32>
    %c96_i32 = arith.constant 96 : i32
    %13 = vector.broadcast %c96_i32 : i32 to vector<2x128xi32>
    %14 = arith.cmpi slt, %10, %13 : vector<2x128xi32>
    %15 = arith.andi %12, %14 : vector<2x128xi1>
    %cst_14 = arith.constant 0.000000e+00 : f32
    %16 = vector.broadcast %cst_14 : f32 to vector<2x32xf32>
    %cst_15 = arith.constant 0.000000e+00 : f32
    %17 = vector.broadcast %cst_15 : f32 to vector<2x32xf32>
    %c0_i32 = arith.constant 0 : i32
    %c2_i32 = arith.constant 2 : i32
    %18 = arith.muli %c0_i32, %c2_i32 : i32
    %19 = tpu.assume_multiple %18, 2 : i32
    %20 = arith.index_cast %19 : i32 to index
    %c0_16 = arith.constant 0 : index
    %21 = vector.load %arg7[%20, %c0_16] : memref<16x128xf32, #tpu.memory_space<vmem>>, vector<2x128xf32>
    %cst_17 = arith.constant dense<0.000000e+00> : vector<2x128xf32>
    %22 = tpu.matmul %16, %7, %cst_17 {dimension_numbers = #tpu.dot_dimension_numbers<[1], [0], [0], [1], [0, 0, 1, 1], [], []>} : vector<2x32xf32>, vector<32x128xf32>, vector<2x128xf32> -> vector<2x128xf32>
    %23 = arith.addf %21, %22 : vector<2x128xf32>
    %24 = math.tanh %23 : vector<2x128xf32>
    %25 = arith.negf %23 : vector<2x128xf32>
    %26 = math.exp %25 : vector<2x128xf32>
    %cst_18 = arith.constant 1.000000e+00 : f32
    %27 = vector.broadcast %cst_18 : f32 to vector<2x128xf32>
    %28 = arith.addf %27, %26 : vector<2x128xf32>
    %29 = arith.divf %27, %28 : vector<2x128xf32>
    %30 = arith.select %15, %24, %29 : vector<2x128xi1>, vector<2x128xf32>
    %31 = vector.extract_strided_slice %30 {offsets = [0, 0], sizes = [2, 32], strides = [1, 1]} : vector<2x128xf32> to vector<2x32xf32>
    %32 = vector.extract_strided_slice %30 {offsets = [0, 32], sizes = [2, 32], strides = [1, 1]} : vector<2x128xf32> to vector<2x32xf32>
    %33 = vector.extract_strided_slice %30 {offsets = [0, 64], sizes = [2, 32], strides = [1, 1]} : vector<2x128xf32> to vector<2x32xf32>
    %34 = vector.extract_strided_slice %30 {offsets = [0, 96], sizes = [2, 32], strides = [1, 1]} : vector<2x128xf32> to vector<2x32xf32>
    %35 = arith.mulf %32, %17 : vector<2x32xf32>
    %36 = arith.mulf %31, %33 : vector<2x32xf32>
    %37 = arith.addf %35, %36 : vector<2x32xf32>
    %38 = math.tanh %37 : vector<2x32xf32>
    %39 = arith.mulf %34, %38 : vector<2x32xf32>
    %40 = vector.shape_cast %39 : vector<2x32xf32> to vector<2x32x1xf32>
    %41 = vector.shape_cast %8 : vector<2x256xf32> to vector<2x1x256xf32>
    %42 = vector.broadcast %40 : vector<2x32x1xf32> to vector<2x32x256xf32>
    %43 = vector.broadcast %41 : vector<2x1x256xf32> to vector<2x32x256xf32>
    %44 = arith.mulf %42, %43 : vector<2x32x256xf32>
    %45 = math.exp %44 : vector<2x32x256xf32>
    %cst_19 = arith.constant dense<0.000000e+00> : vector<2x256xf32>
    %46 = vector.multi_reduction <add>, %45, %cst_19 [1] : vector<2x32x256xf32> to vector<2x256xf32>
    %47 = tpu.concatenate %39, %39, %39, %39, %39, %39, %39, %39 in 1 : vector<2x32xf32>, vector<2x32xf32>, vector<2x32xf32>, vector<2x32xf32>, vector<2x32xf32>, vector<2x32xf32>, vector<2x32xf32>, vector<2x32xf32> -> vector<2x256xf32>
    %48 = vector.shape_cast %47 : vector<2x256xf32> to vector<2x1x256xf32>
    %49 = vector.broadcast %48 : vector<2x1x256xf32> to vector<2x32x256xf32>
    %50 = arith.mulf %49, %9 : vector<2x32x256xf32>
    %51 = math.exp %50 : vector<2x32x256xf32>
    %cst_20 = arith.constant dense<0.000000e+00> : vector<2x256xf32>
    %52 = vector.multi_reduction <add>, %51, %cst_20 [1] : vector<2x32x256xf32> to vector<2x256xf32>
    %53 = arith.mulf %46, %8 : vector<2x256xf32>
    %54 = arith.divf %53, %52 : vector<2x256xf32>
    %55 = vector.extract_strided_slice %54 {offsets = [0, 0], sizes = [2, 32], strides = [1, 1]} : vector<2x256xf32> to vector<2x32xf32>
    %56 = vector.extract_strided_slice %54 {offsets = [0, 32], sizes = [2, 32], strides = [1, 1]} : vector<2x256xf32> to vector<2x32xf32>
    %57 = arith.addf %55, %56 : vector<2x32xf32>
    %58 = vector.extract_strided_slice %54 {offsets = [0, 64], sizes = [2, 32], strides = [1, 1]} : vector<2x256xf32> to vector<2x32xf32>
    %59 = arith.addf %57, %58 : vector<2x32xf32>
    %60 = vector.extract_strided_slice %54 {offsets = [0, 96], sizes = [2, 32], strides = [1, 1]} : vector<2x256xf32> to vector<2x32xf32>
    %61 = arith.addf %59, %60 : vector<2x32xf32>
    %62 = vector.extract_strided_slice %54 {offsets = [0, 128], sizes = [2, 32], strides = [1, 1]} : vector<2x256xf32> to vector<2x32xf32>
    %63 = arith.addf %61, %62 : vector<2x32xf32>
    %64 = vector.extract_strided_slice %54 {offsets = [0, 160], sizes = [2, 32], strides = [1, 1]} : vector<2x256xf32> to vector<2x32xf32>
    %65 = arith.addf %63, %64 : vector<2x32xf32>
    %66 = vector.extract_strided_slice %54 {offsets = [0, 192], sizes = [2, 32], strides = [1, 1]} : vector<2x256xf32> to vector<2x32xf32>
    %67 = arith.addf %65, %66 : vector<2x32xf32>
    %68 = vector.extract_strided_slice %54 {offsets = [0, 224], sizes = [2, 32], strides = [1, 1]} : vector<2x256xf32> to vector<2x32xf32>
    %69 = arith.addf %67, %68 : vector<2x32xf32>
    %70 = vector.extract_strided_slice %39 {offsets = [0, 0], sizes = [1, 32], strides = [1, 1]} : vector<2x32xf32> to vector<1x32xf32>
    %71 = vector.extract_strided_slice %69 {offsets = [0, 0], sizes = [1, 32], strides = [1, 1]} : vector<2x32xf32> to vector<1x32xf32>
    %72 = vector.extract_strided_slice %39 {offsets = [1, 0], sizes = [1, 32], strides = [1, 1]} : vector<2x32xf32> to vector<1x32xf32>
    %73 = vector.extract_strided_slice %69 {offsets = [1, 0], sizes = [1, 32], strides = [1, 1]} : vector<2x32xf32> to vector<1x32xf32>
    %74 = tpu.concatenate %70, %71, %72, %73 in 1 : vector<1x32xf32>, vector<1x32xf32>, vector<1x32xf32>, vector<1x32xf32> -> vector<1x128xf32>
    %75 = arith.index_cast %c0_i32 : i32 to index
    %c0_21 = arith.constant 0 : index
    %76 = vector.load %arg6[%75, %c0_21] : memref<8x128xf32, #tpu.memory_space<vmem>>, vector<1x128xf32>
    tpu.vector_store %arg6[%75, %c0_21], %74 {strides = array<i32>} : memref<8x128xf32, #tpu.memory_space<vmem>>, vector<1x128xf32>,
    %c1_i32 = arith.constant 1 : i32
    %c2_i32_22 = arith.constant 2 : i32
    %77 = arith.muli %c1_i32, %c2_i32_22 : i32
    %78 = tpu.assume_multiple %77, 2 : i32
    %79 = arith.index_cast %78 : i32 to index
    %c0_23 = arith.constant 0 : index
    %80 = vector.load %arg7[%79, %c0_23] : memref<16x128xf32, #tpu.memory_space<vmem>>, vector<2x128xf32>
    %cst_24 = arith.constant dense<0.000000e+00> : vector<2x128xf32>
    %81 = tpu.matmul %39, %7, %cst_24 {dimension_numbers = #tpu.dot_dimension_numbers<[1], [0], [0], [1], [0, 0, 1, 1], [], []>} : vector<2x32xf32>, vector<32x128xf32>, vector<2x128xf32> -> vector<2x128xf32>
    %82 = arith.addf %80, %81 : vector<2x128xf32>
    %83 = math.tanh %82 : vector<2x128xf32>
    %84 = arith.negf %82 : vector<2x128xf32>
    %85 = math.exp %84 : vector<2x128xf32>
    %cst_25 = arith.constant 1.000000e+00 : f32
    %86 = vector.broadcast %cst_25 : f32 to vector<2x128xf32>
    %87 = arith.addf %86, %85 : vector<2x128xf32>
    %88 = arith.divf %86, %87 : vector<2x128xf32>
    %89 = arith.select %15, %83, %88 : vector<2x128xi1>, vector<2x128xf32>
    %90 = vector.extract_strided_slice %89 {offsets = [0, 0], sizes = [2, 32], strides = [1, 1]} : vector<2x128xf32> to vector<2x32xf32>
    %91 = vector.extract_strided_slice %89 {offsets = [0, 32], sizes = [2, 32], strides = [1, 1]} : vector<2x128xf32> to vector<2x32xf32>
    %92 = vector.extract_strided_slice %89 {offsets = [0, 64], sizes = [2, 32], strides = [1, 1]} : vector<2x128xf32> to vector<2x32xf32>
    %93 = vector.extract_strided_slice %89 {offsets = [0, 96], sizes = [2, 32], strides = [1, 1]} : vector<2x128xf32> to vector<2x32xf32>
    %94 = arith.mulf %91, %37 : vector<2x32xf32>
    %95 = arith.mulf %90, %92 : vector<2x32xf32>
    %96 = arith.addf %94, %95 : vector<2x32xf32>
    %97 = math.tanh %96 : vector<2x32xf32>
    %98 = arith.mulf %93, %97 : vector<2x32xf32>
    %99 = vector.shape_cast %98 : vector<2x32xf32> to vector<2x32x1xf32>
    %100 = vector.shape_cast %8 : vector<2x256xf32> to vector<2x1x256xf32>
    %101 = vector.broadcast %99 : vector<2x32x1xf32> to vector<2x32x256xf32>
    %102 = vector.broadcast %100 : vector<2x1x256xf32> to vector<2x32x256xf32>
    %103 = arith.mulf %101, %102 : vector<2x32x256xf32>
    %104 = math.exp %103 : vector<2x32x256xf32>
    %cst_26 = arith.constant dense<0.000000e+00> : vector<2x256xf32>
    %105 = vector.multi_reduction <add>, %104, %cst_26 [1] : vector<2x32x256xf32> to vector<2x256xf32>
    %106 = tpu.concatenate %98, %98, %98, %98, %98, %98, %98, %98 in 1 : vector<2x32xf32>, vector<2x32xf32>, vector<2x32xf32>, vector<2x32xf32>, vector<2x32xf32>, vector<2x32xf32>, vector<2x32xf32>, vector<2x32xf32> -> vector<2x256xf32>
    %107 = vector.shape_cast %106 : vector<2x256xf32> to vector<2x1x256xf32>
    %108 = vector.broadcast %107 : vector<2x1x256xf32> to vector<2x32x256xf32>
    %109 = arith.mulf %108, %9 : vector<2x32x256xf32>
    %110 = math.exp %109 : vector<2x32x256xf32>
    %cst_27 = arith.constant dense<0.000000e+00> : vector<2x256xf32>
    %111 = vector.multi_reduction <add>, %110, %cst_27 [1] : vector<2x32x256xf32> to vector<2x256xf32>
    %112 = arith.mulf %105, %8 : vector<2x256xf32>
    %113 = arith.divf %112, %111 : vector<2x256xf32>
    %114 = vector.extract_strided_slice %113 {offsets = [0, 0], sizes = [2, 32], strides = [1, 1]} : vector<2x256xf32> to vector<2x32xf32>
    %115 = vector.extract_strided_slice %113 {offsets = [0, 32], sizes = [2, 32], strides = [1, 1]} : vector<2x256xf32> to vector<2x32xf32>
    %116 = arith.addf %114, %115 : vector<2x32xf32>
    %117 = vector.extract_strided_slice %113 {offsets = [0, 64], sizes = [2, 32], strides = [1, 1]} : vector<2x256xf32> to vector<2x32xf32>
    %118 = arith.addf %116, %117 : vector<2x32xf32>
    %119 = vector.extract_strided_slice %113 {offsets = [0, 96], sizes = [2, 32], strides = [1, 1]} : vector<2x256xf32> to vector<2x32xf32>
    %120 = arith.addf %118, %119 : vector<2x32xf32>
    %121 = vector.extract_strided_slice %113 {offsets = [0, 128], sizes = [2, 32], strides = [1, 1]} : vector<2x256xf32> to vector<2x32xf32>
    %122 = arith.addf %120, %121 : vector<2x32xf32>
    %123 = vector.extract_strided_slice %113 {offsets = [0, 160], sizes = [2, 32], strides = [1, 1]} : vector<2x256xf32> to vector<2x32xf32>
    %124 = arith.addf %122, %123 : vector<2x32xf32>
    %125 = vector.extract_strided_slice %113 {offsets = [0, 192], sizes = [2, 32], strides = [1, 1]} : vector<2x256xf32> to vector<2x32xf32>
    %126 = arith.addf %124, %125 : vector<2x32xf32>
    %127 = vector.extract_strided_slice %113 {offsets = [0, 224], sizes = [2, 32], strides = [1, 1]} : vector<2x256xf32> to vector<2x32xf32>
    %128 = arith.addf %126, %127 : vector<2x32xf32>
    %129 = vector.extract_strided_slice %98 {offsets = [0, 0], sizes = [1, 32], strides = [1, 1]} : vector<2x32xf32> to vector<1x32xf32>
    %130 = vector.extract_strided_slice %128 {offsets = [0, 0], sizes = [1, 32], strides = [1, 1]} : vector<2x32xf32> to vector<1x32xf32>
    %131 = vector.extract_strided_slice %98 {offsets = [1, 0], sizes = [1, 32], strides = [1, 1]} : vector<2x32xf32> to vector<1x32xf32>
    %132 = vector.extract_strided_slice %128 {offsets = [1, 0], sizes = [1, 32], strides = [1, 1]} : vector<2x32xf32> to vector<1x32xf32>
    %133 = tpu.concatenate %129, %130, %131, %132 in 1 : vector<1x32xf32>, vector<1x32xf32>, vector<1x32xf32>, vector<1x32xf32> -> vector<1x128xf32>
    %134 = arith.index_cast %c1_i32 : i32 to index
    %c0_28 = arith.constant 0 : index
    %135 = vector.load %arg6[%134, %c0_28] : memref<8x128xf32, #tpu.memory_space<vmem>>, vector<1x128xf32>
    tpu.vector_store %arg6[%134, %c0_28], %133 {strides = array<i32>} : memref<8x128xf32, #tpu.memory_space<vmem>>, vector<1x128xf32>,
    %c2_i32_29 = arith.constant 2 : i32
    %c2_i32_30 = arith.constant 2 : i32
    %136 = arith.muli %c2_i32_29, %c2_i32_30 : i32
    %137 = tpu.assume_multiple %136, 2 : i32
    %138 = arith.index_cast %137 : i32 to index
    %c0_31 = arith.constant 0 : index
    %139 = vector.load %arg7[%138, %c0_31] : memref<16x128xf32, #tpu.memory_space<vmem>>, vector<2x128xf32>
    %cst_32 = arith.constant dense<0.000000e+00> : vector<2x128xf32>
    %140 = tpu.matmul %98, %7, %cst_32 {dimension_numbers = #tpu.dot_dimension_numbers<[1], [0], [0], [1], [0, 0, 1, 1], [], []>} : vector<2x32xf32>, vector<32x128xf32>, vector<2x128xf32> -> vector<2x128xf32>
    %141 = arith.addf %139, %140 : vector<2x128xf32>
    %142 = math.tanh %141 : vector<2x128xf32>
    %143 = arith.negf %141 : vector<2x128xf32>
    %144 = math.exp %143 : vector<2x128xf32>
    %cst_33 = arith.constant 1.000000e+00 : f32
    %145 = vector.broadcast %cst_33 : f32 to vector<2x128xf32>
    %146 = arith.addf %145, %144 : vector<2x128xf32>
    %147 = arith.divf %145, %146 : vector<2x128xf32>
    %148 = arith.select %15, %142, %147 : vector<2x128xi1>, vector<2x128xf32>
    %149 = vector.extract_strided_slice %148 {offsets = [0, 0], sizes = [2, 32], strides = [1, 1]} : vector<2x128xf32> to vector<2x32xf32>
    %150 = vector.extract_strided_slice %148 {offsets = [0, 32], sizes = [2, 32], strides = [1, 1]} : vector<2x128xf32> to vector<2x32xf32>
    %151 = vector.extract_strided_slice %148 {offsets = [0, 64], sizes = [2, 32], strides = [1, 1]} : vector<2x128xf32> to vector<2x32xf32>
    %152 = vector.extract_strided_slice %148 {offsets = [0, 96], sizes = [2, 32], strides = [1, 1]} : vector<2x128xf32> to vector<2x32xf32>
    %153 = arith.mulf %150, %96 : vector<2x32xf32>
    %154 = arith.mulf %149, %151 : vector<2x32xf32>
    %155 = arith.addf %153, %154 : vector<2x32xf32>
    %156 = math.tanh %155 : vector<2x32xf32>
    %157 = arith.mulf %152, %156 : vector<2x32xf32>
    %158 = vector.shape_cast %157 : vector<2x32xf32> to vector<2x32x1xf32>
    %159 = vector.shape_cast %8 : vector<2x256xf32> to vector<2x1x256xf32>
    %160 = vector.broadcast %158 : vector<2x32x1xf32> to vector<2x32x256xf32>
    %161 = vector.broadcast %159 : vector<2x1x256xf32> to vector<2x32x256xf32>
    %162 = arith.mulf %160, %161 : vector<2x32x256xf32>
    %163 = math.exp %162 : vector<2x32x256xf32>
    %cst_34 = arith.constant dense<0.000000e+00> : vector<2x256xf32>
    %164 = vector.multi_reduction <add>, %163, %cst_34 [1] : vector<2x32x256xf32> to vector<2x256xf32>
    %165 = tpu.concatenate %157, %157, %157, %157, %157, %157, %157, %157 in 1 : vector<2x32xf32>, vector<2x32xf32>, vector<2x32xf32>, vector<2x32xf32>, vector<2x32xf32>, vector<2x32xf32>, vector<2x32xf32>, vector<2x32xf32> -> vector<2x256xf32>
    %166 = vector.shape_cast %165 : vector<2x256xf32> to vector<2x1x256xf32>
    %167 = vector.broadcast %166 : vector<2x1x256xf32> to vector<2x32x256xf32>
    %168 = arith.mulf %167, %9 : vector<2x32x256xf32>
    %169 = math.exp %168 : vector<2x32x256xf32>
    %cst_35 = arith.constant dense<0.000000e+00> : vector<2x256xf32>
    %170 = vector.multi_reduction <add>, %169, %cst_35 [1] : vector<2x32x256xf32> to vector<2x256xf32>
    %171 = arith.mulf %164, %8 : vector<2x256xf32>
    %172 = arith.divf %171, %170 : vector<2x256xf32>
    %173 = vector.extract_strided_slice %172 {offsets = [0, 0], sizes = [2, 32], strides = [1, 1]} : vector<2x256xf32> to vector<2x32xf32>
    %174 = vector.extract_strided_slice %172 {offsets = [0, 32], sizes = [2, 32], strides = [1, 1]} : vector<2x256xf32> to vector<2x32xf32>
    %175 = arith.addf %173, %174 : vector<2x32xf32>
    %176 = vector.extract_strided_slice %172 {offsets = [0, 64], sizes = [2, 32], strides = [1, 1]} : vector<2x256xf32> to vector<2x32xf32>
    %177 = arith.addf %175, %176 : vector<2x32xf32>
    %178 = vector.extract_strided_slice %172 {offsets = [0, 96], sizes = [2, 32], strides = [1, 1]} : vector<2x256xf32> to vector<2x32xf32>
    %179 = arith.addf %177, %178 : vector<2x32xf32>
    %180 = vector.extract_strided_slice %172 {offsets = [0, 128], sizes = [2, 32], strides = [1, 1]} : vector<2x256xf32> to vector<2x32xf32>
    %181 = arith.addf %179, %180 : vector<2x32xf32>
    %182 = vector.extract_strided_slice %172 {offsets = [0, 160], sizes = [2, 32], strides = [1, 1]} : vector<2x256xf32> to vector<2x32xf32>
    %183 = arith.addf %181, %182 : vector<2x32xf32>
    %184 = vector.extract_strided_slice %172 {offsets = [0, 192], sizes = [2, 32], strides = [1, 1]} : vector<2x256xf32> to vector<2x32xf32>
    %185 = arith.addf %183, %184 : vector<2x32xf32>
    %186 = vector.extract_strided_slice %172 {offsets = [0, 224], sizes = [2, 32], strides = [1, 1]} : vector<2x256xf32> to vector<2x32xf32>
    %187 = arith.addf %185, %186 : vector<2x32xf32>
    %188 = vector.extract_strided_slice %157 {offsets = [0, 0], sizes = [1, 32], strides = [1, 1]} : vector<2x32xf32> to vector<1x32xf32>
    %189 = vector.extract_strided_slice %187 {offsets = [0, 0], sizes = [1, 32], strides = [1, 1]} : vector<2x32xf32> to vector<1x32xf32>
    %190 = vector.extract_strided_slice %157 {offsets = [1, 0], sizes = [1, 32], strides = [1, 1]} : vector<2x32xf32> to vector<1x32xf32>
    %191 = vector.extract_strided_slice %187 {offsets = [1, 0], sizes = [1, 32], strides = [1, 1]} : vector<2x32xf32> to vector<1x32xf32>
    %192 = tpu.concatenate %188, %189, %190, %191 in 1 : vector<1x32xf32>, vector<1x32xf32>, vector<1x32xf32>, vector<1x32xf32> -> vector<1x128xf32>
    %193 = arith.index_cast %c2_i32_29 : i32 to index
    %c0_36 = arith.constant 0 : index
    %194 = vector.load %arg6[%193, %c0_36] : memref<8x128xf32, #tpu.memory_space<vmem>>, vector<1x128xf32>
    tpu.vector_store %arg6[%193, %c0_36], %192 {strides = array<i32>} : memref<8x128xf32, #tpu.memory_space<vmem>>, vector<1x128xf32>,
    %c3_i32 = arith.constant 3 : i32
    %c2_i32_37 = arith.constant 2 : i32
    %195 = arith.muli %c3_i32, %c2_i32_37 : i32
    %196 = tpu.assume_multiple %195, 2 : i32
    %197 = arith.index_cast %196 : i32 to index
    %c0_38 = arith.constant 0 : index
    %198 = vector.load %arg7[%197, %c0_38] : memref<16x128xf32, #tpu.memory_space<vmem>>, vector<2x128xf32>
    %cst_39 = arith.constant dense<0.000000e+00> : vector<2x128xf32>
    %199 = tpu.matmul %157, %7, %cst_39 {dimension_numbers = #tpu.dot_dimension_numbers<[1], [0], [0], [1], [0, 0, 1, 1], [], []>} : vector<2x32xf32>, vector<32x128xf32>, vector<2x128xf32> -> vector<2x128xf32>
    %200 = arith.addf %198, %199 : vector<2x128xf32>
    %201 = math.tanh %200 : vector<2x128xf32>
    %202 = arith.negf %200 : vector<2x128xf32>
    %203 = math.exp %202 : vector<2x128xf32>
    %cst_40 = arith.constant 1.000000e+00 : f32
    %204 = vector.broadcast %cst_40 : f32 to vector<2x128xf32>
    %205 = arith.addf %204, %203 : vector<2x128xf32>
    %206 = arith.divf %204, %205 : vector<2x128xf32>
    %207 = arith.select %15, %201, %206 : vector<2x128xi1>, vector<2x128xf32>
    %208 = vector.extract_strided_slice %207 {offsets = [0, 0], sizes = [2, 32], strides = [1, 1]} : vector<2x128xf32> to vector<2x32xf32>
    %209 = vector.extract_strided_slice %207 {offsets = [0, 32], sizes = [2, 32], strides = [1, 1]} : vector<2x128xf32> to vector<2x32xf32>
    %210 = vector.extract_strided_slice %207 {offsets = [0, 64], sizes = [2, 32], strides = [1, 1]} : vector<2x128xf32> to vector<2x32xf32>
    %211 = vector.extract_strided_slice %207 {offsets = [0, 96], sizes = [2, 32], strides = [1, 1]} : vector<2x128xf32> to vector<2x32xf32>
    %212 = arith.mulf %209, %155 : vector<2x32xf32>
    %213 = arith.mulf %208, %210 : vector<2x32xf32>
    %214 = arith.addf %212, %213 : vector<2x32xf32>
    %215 = math.tanh %214 : vector<2x32xf32>
    %216 = arith.mulf %211, %215 : vector<2x32xf32>
    %217 = vector.shape_cast %216 : vector<2x32xf32> to vector<2x32x1xf32>
    %218 = vector.shape_cast %8 : vector<2x256xf32> to vector<2x1x256xf32>
    %219 = vector.broadcast %217 : vector<2x32x1xf32> to vector<2x32x256xf32>
    %220 = vector.broadcast %218 : vector<2x1x256xf32> to vector<2x32x256xf32>
    %221 = arith.mulf %219, %220 : vector<2x32x256xf32>
    %222 = math.exp %221 : vector<2x32x256xf32>
    %cst_41 = arith.constant dense<0.000000e+00> : vector<2x256xf32>
    %223 = vector.multi_reduction <add>, %222, %cst_41 [1] : vector<2x32x256xf32> to vector<2x256xf32>
    %224 = tpu.concatenate %216, %216, %216, %216, %216, %216, %216, %216 in 1 : vector<2x32xf32>, vector<2x32xf32>, vector<2x32xf32>, vector<2x32xf32>, vector<2x32xf32>, vector<2x32xf32>, vector<2x32xf32>, vector<2x32xf32> -> vector<2x256xf32>
    %225 = vector.shape_cast %224 : vector<2x256xf32> to vector<2x1x256xf32>
    %226 = vector.broadcast %225 : vector<2x1x256xf32> to vector<2x32x256xf32>
    %227 = arith.mulf %226, %9 : vector<2x32x256xf32>
    %228 = math.exp %227 : vector<2x32x256xf32>
    %cst_42 = arith.constant dense<0.000000e+00> : vector<2x256xf32>
    %229 = vector.multi_reduction <add>, %228, %cst_42 [1] : vector<2x32x256xf32> to vector<2x256xf32>
    %230 = arith.mulf %223, %8 : vector<2x256xf32>
    %231 = arith.divf %230, %229 : vector<2x256xf32>
    %232 = vector.extract_strided_slice %231 {offsets = [0, 0], sizes = [2, 32], strides = [1, 1]} : vector<2x256xf32> to vector<2x32xf32>
    %233 = vector.extract_strided_slice %231 {offsets = [0, 32], sizes = [2, 32], strides = [1, 1]} : vector<2x256xf32> to vector<2x32xf32>
    %234 = arith.addf %232, %233 : vector<2x32xf32>
    %235 = vector.extract_strided_slice %231 {offsets = [0, 64], sizes = [2, 32], strides = [1, 1]} : vector<2x256xf32> to vector<2x32xf32>
    %236 = arith.addf %234, %235 : vector<2x32xf32>
    %237 = vector.extract_strided_slice %231 {offsets = [0, 96], sizes = [2, 32], strides = [1, 1]} : vector<2x256xf32> to vector<2x32xf32>
    %238 = arith.addf %236, %237 : vector<2x32xf32>
    %239 = vector.extract_strided_slice %231 {offsets = [0, 128], sizes = [2, 32], strides = [1, 1]} : vector<2x256xf32> to vector<2x32xf32>
    %240 = arith.addf %238, %239 : vector<2x32xf32>
    %241 = vector.extract_strided_slice %231 {offsets = [0, 160], sizes = [2, 32], strides = [1, 1]} : vector<2x256xf32> to vector<2x32xf32>
    %242 = arith.addf %240, %241 : vector<2x32xf32>
    %243 = vector.extract_strided_slice %231 {offsets = [0, 192], sizes = [2, 32], strides = [1, 1]} : vector<2x256xf32> to vector<2x32xf32>
    %244 = arith.addf %242, %243 : vector<2x32xf32>
    %245 = vector.extract_strided_slice %231 {offsets = [0, 224], sizes = [2, 32], strides = [1, 1]} : vector<2x256xf32> to vector<2x32xf32>
    %246 = arith.addf %244, %245 : vector<2x32xf32>
    %247 = vector.extract_strided_slice %216 {offsets = [0, 0], sizes = [1, 32], strides = [1, 1]} : vector<2x32xf32> to vector<1x32xf32>
    %248 = vector.extract_strided_slice %246 {offsets = [0, 0], sizes = [1, 32], strides = [1, 1]} : vector<2x32xf32> to vector<1x32xf32>
    %249 = vector.extract_strided_slice %216 {offsets = [1, 0], sizes = [1, 32], strides = [1, 1]} : vector<2x32xf32> to vector<1x32xf32>
    %250 = vector.extract_strided_slice %246 {offsets = [1, 0], sizes = [1, 32], strides = [1, 1]} : vector<2x32xf32> to vector<1x32xf32>
    %251 = tpu.concatenate %247, %248, %249, %250 in 1 : vector<1x32xf32>, vector<1x32xf32>, vector<1x32xf32>, vector<1x32xf32> -> vector<1x128xf32>
    %252 = arith.index_cast %c3_i32 : i32 to index
    %c0_43 = arith.constant 0 : index
    %253 = vector.load %arg6[%252, %c0_43] : memref<8x128xf32, #tpu.memory_space<vmem>>, vector<1x128xf32>
    tpu.vector_store %arg6[%252, %c0_43], %251 {strides = array<i32>} : memref<8x128xf32, #tpu.memory_space<vmem>>, vector<1x128xf32>,
    %c4_i32 = arith.constant 4 : i32
    %c2_i32_44 = arith.constant 2 : i32
    %254 = arith.muli %c4_i32, %c2_i32_44 : i32
    %255 = tpu.assume_multiple %254, 2 : i32
    %256 = arith.index_cast %255 : i32 to index
    %c0_45 = arith.constant 0 : index
    %257 = vector.load %arg7[%256, %c0_45] : memref<16x128xf32, #tpu.memory_space<vmem>>, vector<2x128xf32>
    %cst_46 = arith.constant dense<0.000000e+00> : vector<2x128xf32>
    %258 = tpu.matmul %216, %7, %cst_46 {dimension_numbers = #tpu.dot_dimension_numbers<[1], [0], [0], [1], [0, 0, 1, 1], [], []>} : vector<2x32xf32>, vector<32x128xf32>, vector<2x128xf32> -> vector<2x128xf32>
    %259 = arith.addf %257, %258 : vector<2x128xf32>
    %260 = math.tanh %259 : vector<2x128xf32>
    %261 = arith.negf %259 : vector<2x128xf32>
    %262 = math.exp %261 : vector<2x128xf32>
    %cst_47 = arith.constant 1.000000e+00 : f32
    %263 = vector.broadcast %cst_47 : f32 to vector<2x128xf32>
    %264 = arith.addf %263, %262 : vector<2x128xf32>
    %265 = arith.divf %263, %264 : vector<2x128xf32>
    %266 = arith.select %15, %260, %265 : vector<2x128xi1>, vector<2x128xf32>
    %267 = vector.extract_strided_slice %266 {offsets = [0, 0], sizes = [2, 32], strides = [1, 1]} : vector<2x128xf32> to vector<2x32xf32>
    %268 = vector.extract_strided_slice %266 {offsets = [0, 32], sizes = [2, 32], strides = [1, 1]} : vector<2x128xf32> to vector<2x32xf32>
    %269 = vector.extract_strided_slice %266 {offsets = [0, 64], sizes = [2, 32], strides = [1, 1]} : vector<2x128xf32> to vector<2x32xf32>
    %270 = vector.extract_strided_slice %266 {offsets = [0, 96], sizes = [2, 32], strides = [1, 1]} : vector<2x128xf32> to vector<2x32xf32>
    %271 = arith.mulf %268, %214 : vector<2x32xf32>
    %272 = arith.mulf %267, %269 : vector<2x32xf32>
    %273 = arith.addf %271, %272 : vector<2x32xf32>
    %274 = math.tanh %273 : vector<2x32xf32>
    %275 = arith.mulf %270, %274 : vector<2x32xf32>
    %276 = vector.shape_cast %275 : vector<2x32xf32> to vector<2x32x1xf32>
    %277 = vector.shape_cast %8 : vector<2x256xf32> to vector<2x1x256xf32>
    %278 = vector.broadcast %276 : vector<2x32x1xf32> to vector<2x32x256xf32>
    %279 = vector.broadcast %277 : vector<2x1x256xf32> to vector<2x32x256xf32>
    %280 = arith.mulf %278, %279 : vector<2x32x256xf32>
    %281 = math.exp %280 : vector<2x32x256xf32>
    %cst_48 = arith.constant dense<0.000000e+00> : vector<2x256xf32>
    %282 = vector.multi_reduction <add>, %281, %cst_48 [1] : vector<2x32x256xf32> to vector<2x256xf32>
    %283 = tpu.concatenate %275, %275, %275, %275, %275, %275, %275, %275 in 1 : vector<2x32xf32>, vector<2x32xf32>, vector<2x32xf32>, vector<2x32xf32>, vector<2x32xf32>, vector<2x32xf32>, vector<2x32xf32>, vector<2x32xf32> -> vector<2x256xf32>
    %284 = vector.shape_cast %283 : vector<2x256xf32> to vector<2x1x256xf32>
    %285 = vector.broadcast %284 : vector<2x1x256xf32> to vector<2x32x256xf32>
    %286 = arith.mulf %285, %9 : vector<2x32x256xf32>
    %287 = math.exp %286 : vector<2x32x256xf32>
    %cst_49 = arith.constant dense<0.000000e+00> : vector<2x256xf32>
    %288 = vector.multi_reduction <add>, %287, %cst_49 [1] : vector<2x32x256xf32> to vector<2x256xf32>
    %289 = arith.mulf %282, %8 : vector<2x256xf32>
    %290 = arith.divf %289, %288 : vector<2x256xf32>
    %291 = vector.extract_strided_slice %290 {offsets = [0, 0], sizes = [2, 32], strides = [1, 1]} : vector<2x256xf32> to vector<2x32xf32>
    %292 = vector.extract_strided_slice %290 {offsets = [0, 32], sizes = [2, 32], strides = [1, 1]} : vector<2x256xf32> to vector<2x32xf32>
    %293 = arith.addf %291, %292 : vector<2x32xf32>
    %294 = vector.extract_strided_slice %290 {offsets = [0, 64], sizes = [2, 32], strides = [1, 1]} : vector<2x256xf32> to vector<2x32xf32>
    %295 = arith.addf %293, %294 : vector<2x32xf32>
    %296 = vector.extract_strided_slice %290 {offsets = [0, 96], sizes = [2, 32], strides = [1, 1]} : vector<2x256xf32> to vector<2x32xf32>
    %297 = arith.addf %295, %296 : vector<2x32xf32>
    %298 = vector.extract_strided_slice %290 {offsets = [0, 128], sizes = [2, 32], strides = [1, 1]} : vector<2x256xf32> to vector<2x32xf32>
    %299 = arith.addf %297, %298 : vector<2x32xf32>
    %300 = vector.extract_strided_slice %290 {offsets = [0, 160], sizes = [2, 32], strides = [1, 1]} : vector<2x256xf32> to vector<2x32xf32>
    %301 = arith.addf %299, %300 : vector<2x32xf32>
    %302 = vector.extract_strided_slice %290 {offsets = [0, 192], sizes = [2, 32], strides = [1, 1]} : vector<2x256xf32> to vector<2x32xf32>
    %303 = arith.addf %301, %302 : vector<2x32xf32>
    %304 = vector.extract_strided_slice %290 {offsets = [0, 224], sizes = [2, 32], strides = [1, 1]} : vector<2x256xf32> to vector<2x32xf32>
    %305 = arith.addf %303, %304 : vector<2x32xf32>
    %306 = vector.extract_strided_slice %275 {offsets = [0, 0], sizes = [1, 32], strides = [1, 1]} : vector<2x32xf32> to vector<1x32xf32>
    %307 = vector.extract_strided_slice %305 {offsets = [0, 0], sizes = [1, 32], strides = [1, 1]} : vector<2x32xf32> to vector<1x32xf32>
    %308 = vector.extract_strided_slice %275 {offsets = [1, 0], sizes = [1, 32], strides = [1, 1]} : vector<2x32xf32> to vector<1x32xf32>
    %309 = vector.extract_strided_slice %305 {offsets = [1, 0], sizes = [1, 32], strides = [1, 1]} : vector<2x32xf32> to vector<1x32xf32>
    %310 = tpu.concatenate %306, %307, %308, %309 in 1 : vector<1x32xf32>, vector<1x32xf32>, vector<1x32xf32>, vector<1x32xf32> -> vector<1x128xf32>
    %311 = arith.index_cast %c4_i32 : i32 to index
    %c0_50 = arith.constant 0 : index
    %312 = vector.load %arg6[%311, %c0_50] : memref<8x128xf32, #tpu.memory_space<vmem>>, vector<1x128xf32>
    tpu.vector_store %arg6[%311, %c0_50], %310 {strides = array<i32>} : memref<8x128xf32, #tpu.memory_space<vmem>>, vector<1x128xf32>,
    %c5_i32 = arith.constant 5 : i32
    %c2_i32_51 = arith.constant 2 : i32
    %313 = arith.muli %c5_i32, %c2_i32_51 : i32
    %314 = tpu.assume_multiple %313, 2 : i32
    %315 = arith.index_cast %314 : i32 to index
    %c0_52 = arith.constant 0 : index
    %316 = vector.load %arg7[%315, %c0_52] : memref<16x128xf32, #tpu.memory_space<vmem>>, vector<2x128xf32>
    %cst_53 = arith.constant dense<0.000000e+00> : vector<2x128xf32>
    %317 = tpu.matmul %275, %7, %cst_53 {dimension_numbers = #tpu.dot_dimension_numbers<[1], [0], [0], [1], [0, 0, 1, 1], [], []>} : vector<2x32xf32>, vector<32x128xf32>, vector<2x128xf32> -> vector<2x128xf32>
    %318 = arith.addf %316, %317 : vector<2x128xf32>
    %319 = math.tanh %318 : vector<2x128xf32>
    %320 = arith.negf %318 : vector<2x128xf32>
    %321 = math.exp %320 : vector<2x128xf32>
    %cst_54 = arith.constant 1.000000e+00 : f32
    %322 = vector.broadcast %cst_54 : f32 to vector<2x128xf32>
    %323 = arith.addf %322, %321 : vector<2x128xf32>
    %324 = arith.divf %322, %323 : vector<2x128xf32>
    %325 = arith.select %15, %319, %324 : vector<2x128xi1>, vector<2x128xf32>
    %326 = vector.extract_strided_slice %325 {offsets = [0, 0], sizes = [2, 32], strides = [1, 1]} : vector<2x128xf32> to vector<2x32xf32>
    %327 = vector.extract_strided_slice %325 {offsets = [0, 32], sizes = [2, 32], strides = [1, 1]} : vector<2x128xf32> to vector<2x32xf32>
    %328 = vector.extract_strided_slice %325 {offsets = [0, 64], sizes = [2, 32], strides = [1, 1]} : vector<2x128xf32> to vector<2x32xf32>
    %329 = vector.extract_strided_slice %325 {offsets = [0, 96], sizes = [2, 32], strides = [1, 1]} : vector<2x128xf32> to vector<2x32xf32>
    %330 = arith.mulf %327, %273 : vector<2x32xf32>
    %331 = arith.mulf %326, %328 : vector<2x32xf32>
    %332 = arith.addf %330, %331 : vector<2x32xf32>
    %333 = math.tanh %332 : vector<2x32xf32>
    %334 = arith.mulf %329, %333 : vector<2x32xf32>
    %335 = vector.shape_cast %334 : vector<2x32xf32> to vector<2x32x1xf32>
    %336 = vector.shape_cast %8 : vector<2x256xf32> to vector<2x1x256xf32>
    %337 = vector.broadcast %335 : vector<2x32x1xf32> to vector<2x32x256xf32>
    %338 = vector.broadcast %336 : vector<2x1x256xf32> to vector<2x32x256xf32>
    %339 = arith.mulf %337, %338 : vector<2x32x256xf32>
    %340 = math.exp %339 : vector<2x32x256xf32>
    %cst_55 = arith.constant dense<0.000000e+00> : vector<2x256xf32>
    %341 = vector.multi_reduction <add>, %340, %cst_55 [1] : vector<2x32x256xf32> to vector<2x256xf32>
    %342 = tpu.concatenate %334, %334, %334, %334, %334, %334, %334, %334 in 1 : vector<2x32xf32>, vector<2x32xf32>, vector<2x32xf32>, vector<2x32xf32>, vector<2x32xf32>, vector<2x32xf32>, vector<2x32xf32>, vector<2x32xf32> -> vector<2x256xf32>
    %343 = vector.shape_cast %342 : vector<2x256xf32> to vector<2x1x256xf32>
    %344 = vector.broadcast %343 : vector<2x1x256xf32> to vector<2x32x256xf32>
    %345 = arith.mulf %344, %9 : vector<2x32x256xf32>
    %346 = math.exp %345 : vector<2x32x256xf32>
    %cst_56 = arith.constant dense<0.000000e+00> : vector<2x256xf32>
    %347 = vector.multi_reduction <add>, %346, %cst_56 [1] : vector<2x32x256xf32> to vector<2x256xf32>
    %348 = arith.mulf %341, %8 : vector<2x256xf32>
    %349 = arith.divf %348, %347 : vector<2x256xf32>
    %350 = vector.extract_strided_slice %349 {offsets = [0, 0], sizes = [2, 32], strides = [1, 1]} : vector<2x256xf32> to vector<2x32xf32>
    %351 = vector.extract_strided_slice %349 {offsets = [0, 32], sizes = [2, 32], strides = [1, 1]} : vector<2x256xf32> to vector<2x32xf32>
    %352 = arith.addf %350, %351 : vector<2x32xf32>
    %353 = vector.extract_strided_slice %349 {offsets = [0, 64], sizes = [2, 32], strides = [1, 1]} : vector<2x256xf32> to vector<2x32xf32>
    %354 = arith.addf %352, %353 : vector<2x32xf32>
    %355 = vector.extract_strided_slice %349 {offsets = [0, 96], sizes = [2, 32], strides = [1, 1]} : vector<2x256xf32> to vector<2x32xf32>
    %356 = arith.addf %354, %355 : vector<2x32xf32>
    %357 = vector.extract_strided_slice %349 {offsets = [0, 128], sizes = [2, 32], strides = [1, 1]} : vector<2x256xf32> to vector<2x32xf32>
    %358 = arith.addf %356, %357 : vector<2x32xf32>
    %359 = vector.extract_strided_slice %349 {offsets = [0, 160], sizes = [2, 32], strides = [1, 1]} : vector<2x256xf32> to vector<2x32xf32>
    %360 = arith.addf %358, %359 : vector<2x32xf32>
    %361 = vector.extract_strided_slice %349 {offsets = [0, 192], sizes = [2, 32], strides = [1, 1]} : vector<2x256xf32> to vector<2x32xf32>
    %362 = arith.addf %360, %361 : vector<2x32xf32>
    %363 = vector.extract_strided_slice %349 {offsets = [0, 224], sizes = [2, 32], strides = [1, 1]} : vector<2x256xf32> to vector<2x32xf32>
    %364 = arith.addf %362, %363 : vector<2x32xf32>
    %365 = vector.extract_strided_slice %334 {offsets = [0, 0], sizes = [1, 32], strides = [1, 1]} : vector<2x32xf32> to vector<1x32xf32>
    %366 = vector.extract_strided_slice %364 {offsets = [0, 0], sizes = [1, 32], strides = [1, 1]} : vector<2x32xf32> to vector<1x32xf32>
    %367 = vector.extract_strided_slice %334 {offsets = [1, 0], sizes = [1, 32], strides = [1, 1]} : vector<2x32xf32> to vector<1x32xf32>
    %368 = vector.extract_strided_slice %364 {offsets = [1, 0], sizes = [1, 32], strides = [1, 1]} : vector<2x32xf32> to vector<1x32xf32>
    %369 = tpu.concatenate %365, %366, %367, %368 in 1 : vector<1x32xf32>, vector<1x32xf32>, vector<1x32xf32>, vector<1x32xf32> -> vector<1x128xf32>
    %370 = arith.index_cast %c5_i32 : i32 to index
    %c0_57 = arith.constant 0 : index
    %371 = vector.load %arg6[%370, %c0_57] : memref<8x128xf32, #tpu.memory_space<vmem>>, vector<1x128xf32>
    tpu.vector_store %arg6[%370, %c0_57], %369 {strides = array<i32>} : memref<8x128xf32, #tpu.memory_space<vmem>>, vector<1x128xf32>,
    %c6_i32 = arith.constant 6 : i32
    %c2_i32_58 = arith.constant 2 : i32
    %372 = arith.muli %c6_i32, %c2_i32_58 : i32
    %373 = tpu.assume_multiple %372, 2 : i32
    %374 = arith.index_cast %373 : i32 to index
    %c0_59 = arith.constant 0 : index
    %375 = vector.load %arg7[%374, %c0_59] : memref<16x128xf32, #tpu.memory_space<vmem>>, vector<2x128xf32>
    %cst_60 = arith.constant dense<0.000000e+00> : vector<2x128xf32>
    %376 = tpu.matmul %334, %7, %cst_60 {dimension_numbers = #tpu.dot_dimension_numbers<[1], [0], [0], [1], [0, 0, 1, 1], [], []>} : vector<2x32xf32>, vector<32x128xf32>, vector<2x128xf32> -> vector<2x128xf32>
    %377 = arith.addf %375, %376 : vector<2x128xf32>
    %378 = math.tanh %377 : vector<2x128xf32>
    %379 = arith.negf %377 : vector<2x128xf32>
    %380 = math.exp %379 : vector<2x128xf32>
    %cst_61 = arith.constant 1.000000e+00 : f32
    %381 = vector.broadcast %cst_61 : f32 to vector<2x128xf32>
    %382 = arith.addf %381, %380 : vector<2x128xf32>
    %383 = arith.divf %381, %382 : vector<2x128xf32>
    %384 = arith.select %15, %378, %383 : vector<2x128xi1>, vector<2x128xf32>
    %385 = vector.extract_strided_slice %384 {offsets = [0, 0], sizes = [2, 32], strides = [1, 1]} : vector<2x128xf32> to vector<2x32xf32>
    %386 = vector.extract_strided_slice %384 {offsets = [0, 32], sizes = [2, 32], strides = [1, 1]} : vector<2x128xf32> to vector<2x32xf32>
    %387 = vector.extract_strided_slice %384 {offsets = [0, 64], sizes = [2, 32], strides = [1, 1]} : vector<2x128xf32> to vector<2x32xf32>
    %388 = vector.extract_strided_slice %384 {offsets = [0, 96], sizes = [2, 32], strides = [1, 1]} : vector<2x128xf32> to vector<2x32xf32>
    %389 = arith.mulf %386, %332 : vector<2x32xf32>
    %390 = arith.mulf %385, %387 : vector<2x32xf32>
    %391 = arith.addf %389, %390 : vector<2x32xf32>
    %392 = math.tanh %391 : vector<2x32xf32>
    %393 = arith.mulf %388, %392 : vector<2x32xf32>
    %394 = vector.shape_cast %393 : vector<2x32xf32> to vector<2x32x1xf32>
    %395 = vector.shape_cast %8 : vector<2x256xf32> to vector<2x1x256xf32>
    %396 = vector.broadcast %394 : vector<2x32x1xf32> to vector<2x32x256xf32>
    %397 = vector.broadcast %395 : vector<2x1x256xf32> to vector<2x32x256xf32>
    %398 = arith.mulf %396, %397 : vector<2x32x256xf32>
    %399 = math.exp %398 : vector<2x32x256xf32>
    %cst_62 = arith.constant dense<0.000000e+00> : vector<2x256xf32>
    %400 = vector.multi_reduction <add>, %399, %cst_62 [1] : vector<2x32x256xf32> to vector<2x256xf32>
    %401 = tpu.concatenate %393, %393, %393, %393, %393, %393, %393, %393 in 1 : vector<2x32xf32>, vector<2x32xf32>, vector<2x32xf32>, vector<2x32xf32>, vector<2x32xf32>, vector<2x32xf32>, vector<2x32xf32>, vector<2x32xf32> -> vector<2x256xf32>
    %402 = vector.shape_cast %401 : vector<2x256xf32> to vector<2x1x256xf32>
    %403 = vector.broadcast %402 : vector<2x1x256xf32> to vector<2x32x256xf32>
    %404 = arith.mulf %403, %9 : vector<2x32x256xf32>
    %405 = math.exp %404 : vector<2x32x256xf32>
    %cst_63 = arith.constant dense<0.000000e+00> : vector<2x256xf32>
    %406 = vector.multi_reduction <add>, %405, %cst_63 [1] : vector<2x32x256xf32> to vector<2x256xf32>
    %407 = arith.mulf %400, %8 : vector<2x256xf32>
    %408 = arith.divf %407, %406 : vector<2x256xf32>
    %409 = vector.extract_strided_slice %408 {offsets = [0, 0], sizes = [2, 32], strides = [1, 1]} : vector<2x256xf32> to vector<2x32xf32>
    %410 = vector.extract_strided_slice %408 {offsets = [0, 32], sizes = [2, 32], strides = [1, 1]} : vector<2x256xf32> to vector<2x32xf32>
    %411 = arith.addf %409, %410 : vector<2x32xf32>
    %412 = vector.extract_strided_slice %408 {offsets = [0, 64], sizes = [2, 32], strides = [1, 1]} : vector<2x256xf32> to vector<2x32xf32>
    %413 = arith.addf %411, %412 : vector<2x32xf32>
    %414 = vector.extract_strided_slice %408 {offsets = [0, 96], sizes = [2, 32], strides = [1, 1]} : vector<2x256xf32> to vector<2x32xf32>
    %415 = arith.addf %413, %414 : vector<2x32xf32>
    %416 = vector.extract_strided_slice %408 {offsets = [0, 128], sizes = [2, 32], strides = [1, 1]} : vector<2x256xf32> to vector<2x32xf32>
    %417 = arith.addf %415, %416 : vector<2x32xf32>
    %418 = vector.extract_strided_slice %408 {offsets = [0, 160], sizes = [2, 32], strides = [1, 1]} : vector<2x256xf32> to vector<2x32xf32>
    %419 = arith.addf %417, %418 : vector<2x32xf32>
    %420 = vector.extract_strided_slice %408 {offsets = [0, 192], sizes = [2, 32], strides = [1, 1]} : vector<2x256xf32> to vector<2x32xf32>
    %421 = arith.addf %419, %420 : vector<2x32xf32>
    %422 = vector.extract_strided_slice %408 {offsets = [0, 224], sizes = [2, 32], strides = [1, 1]} : vector<2x256xf32> to vector<2x32xf32>
    %423 = arith.addf %421, %422 : vector<2x32xf32>
    %424 = vector.extract_strided_slice %393 {offsets = [0, 0], sizes = [1, 32], strides = [1, 1]} : vector<2x32xf32> to vector<1x32xf32>
    %425 = vector.extract_strided_slice %423 {offsets = [0, 0], sizes = [1, 32], strides = [1, 1]} : vector<2x32xf32> to vector<1x32xf32>
    %426 = vector.extract_strided_slice %393 {offsets = [1, 0], sizes = [1, 32], strides = [1, 1]} : vector<2x32xf32> to vector<1x32xf32>
    %427 = vector.extract_strided_slice %423 {offsets = [1, 0], sizes = [1, 32], strides = [1, 1]} : vector<2x32xf32> to vector<1x32xf32>
    %428 = tpu.concatenate %424, %425, %426, %427 in 1 : vector<1x32xf32>, vector<1x32xf32>, vector<1x32xf32>, vector<1x32xf32> -> vector<1x128xf32>
    %429 = arith.index_cast %c6_i32 : i32 to index
    %c0_64 = arith.constant 0 : index
    %430 = vector.load %arg6[%429, %c0_64] : memref<8x128xf32, #tpu.memory_space<vmem>>, vector<1x128xf32>
    tpu.vector_store %arg6[%429, %c0_64], %428 {strides = array<i32>} : memref<8x128xf32, #tpu.memory_space<vmem>>, vector<1x128xf32>,
    %c7_i32 = arith.constant 7 : i32
    %c2_i32_65 = arith.constant 2 : i32
    %431 = arith.muli %c7_i32, %c2_i32_65 : i32
    %432 = tpu.assume_multiple %431, 2 : i32
    %433 = arith.index_cast %432 : i32 to index
    %c0_66 = arith.constant 0 : index
    %434 = vector.load %arg7[%433, %c0_66] : memref<16x128xf32, #tpu.memory_space<vmem>>, vector<2x128xf32>
    %cst_67 = arith.constant dense<0.000000e+00> : vector<2x128xf32>
    %435 = tpu.matmul %393, %7, %cst_67 {dimension_numbers = #tpu.dot_dimension_numbers<[1], [0], [0], [1], [0, 0, 1, 1], [], []>} : vector<2x32xf32>, vector<32x128xf32>, vector<2x128xf32> -> vector<2x128xf32>
    %436 = arith.addf %434, %435 : vector<2x128xf32>
    %437 = math.tanh %436 : vector<2x128xf32>
    %438 = arith.negf %436 : vector<2x128xf32>
    %439 = math.exp %438 : vector<2x128xf32>
    %cst_68 = arith.constant 1.000000e+00 : f32
    %440 = vector.broadcast %cst_68 : f32 to vector<2x128xf32>
    %441 = arith.addf %440, %439 : vector<2x128xf32>
    %442 = arith.divf %440, %441 : vector<2x128xf32>
    %443 = arith.select %15, %437, %442 : vector<2x128xi1>, vector<2x128xf32>
    %444 = vector.extract_strided_slice %443 {offsets = [0, 0], sizes = [2, 32], strides = [1, 1]} : vector<2x128xf32> to vector<2x32xf32>
    %445 = vector.extract_strided_slice %443 {offsets = [0, 32], sizes = [2, 32], strides = [1, 1]} : vector<2x128xf32> to vector<2x32xf32>
    %446 = vector.extract_strided_slice %443 {offsets = [0, 64], sizes = [2, 32], strides = [1, 1]} : vector<2x128xf32> to vector<2x32xf32>
    %447 = vector.extract_strided_slice %443 {offsets = [0, 96], sizes = [2, 32], strides = [1, 1]} : vector<2x128xf32> to vector<2x32xf32>
    %448 = arith.mulf %445, %391 : vector<2x32xf32>
    %449 = arith.mulf %444, %446 : vector<2x32xf32>
    %450 = arith.addf %448, %449 : vector<2x32xf32>
    %451 = math.tanh %450 : vector<2x32xf32>
    %452 = arith.mulf %447, %451 : vector<2x32xf32>
    %453 = vector.shape_cast %452 : vector<2x32xf32> to vector<2x32x1xf32>
    %454 = vector.shape_cast %8 : vector<2x256xf32> to vector<2x1x256xf32>
    %455 = vector.broadcast %453 : vector<2x32x1xf32> to vector<2x32x256xf32>
    %456 = vector.broadcast %454 : vector<2x1x256xf32> to vector<2x32x256xf32>
    %457 = arith.mulf %455, %456 : vector<2x32x256xf32>
    %458 = math.exp %457 : vector<2x32x256xf32>
    %cst_69 = arith.constant dense<0.000000e+00> : vector<2x256xf32>
    %459 = vector.multi_reduction <add>, %458, %cst_69 [1] : vector<2x32x256xf32> to vector<2x256xf32>
    %460 = tpu.concatenate %452, %452, %452, %452, %452, %452, %452, %452 in 1 : vector<2x32xf32>, vector<2x32xf32>, vector<2x32xf32>, vector<2x32xf32>, vector<2x32xf32>, vector<2x32xf32>, vector<2x32xf32>, vector<2x32xf32> -> vector<2x256xf32>
    %461 = vector.shape_cast %460 : vector<2x256xf32> to vector<2x1x256xf32>
    %462 = vector.broadcast %461 : vector<2x1x256xf32> to vector<2x32x256xf32>
    %463 = arith.mulf %462, %9 : vector<2x32x256xf32>
    %464 = math.exp %463 : vector<2x32x256xf32>
    %cst_70 = arith.constant dense<0.000000e+00> : vector<2x256xf32>
    %465 = vector.multi_reduction <add>, %464, %cst_70 [1] : vector<2x32x256xf32> to vector<2x256xf32>
    %466 = arith.mulf %459, %8 : vector<2x256xf32>
    %467 = arith.divf %466, %465 : vector<2x256xf32>
    %468 = vector.extract_strided_slice %467 {offsets = [0, 0], sizes = [2, 32], strides = [1, 1]} : vector<2x256xf32> to vector<2x32xf32>
    %469 = vector.extract_strided_slice %467 {offsets = [0, 32], sizes = [2, 32], strides = [1, 1]} : vector<2x256xf32> to vector<2x32xf32>
    %470 = arith.addf %468, %469 : vector<2x32xf32>
    %471 = vector.extract_strided_slice %467 {offsets = [0, 64], sizes = [2, 32], strides = [1, 1]} : vector<2x256xf32> to vector<2x32xf32>
    %472 = arith.addf %470, %471 : vector<2x32xf32>
    %473 = vector.extract_strided_slice %467 {offsets = [0, 96], sizes = [2, 32], strides = [1, 1]} : vector<2x256xf32> to vector<2x32xf32>
    %474 = arith.addf %472, %473 : vector<2x32xf32>
    %475 = vector.extract_strided_slice %467 {offsets = [0, 128], sizes = [2, 32], strides = [1, 1]} : vector<2x256xf32> to vector<2x32xf32>
    %476 = arith.addf %474, %475 : vector<2x32xf32>
    %477 = vector.extract_strided_slice %467 {offsets = [0, 160], sizes = [2, 32], strides = [1, 1]} : vector<2x256xf32> to vector<2x32xf32>
    %478 = arith.addf %476, %477 : vector<2x32xf32>
    %479 = vector.extract_strided_slice %467 {offsets = [0, 192], sizes = [2, 32], strides = [1, 1]} : vector<2x256xf32> to vector<2x32xf32>
    %480 = arith.addf %478, %479 : vector<2x32xf32>
    %481 = vector.extract_strided_slice %467 {offsets = [0, 224], sizes = [2, 32], strides = [1, 1]} : vector<2x256xf32> to vector<2x32xf32>
    %482 = arith.addf %480, %481 : vector<2x32xf32>
    %483 = vector.extract_strided_slice %452 {offsets = [0, 0], sizes = [1, 32], strides = [1, 1]} : vector<2x32xf32> to vector<1x32xf32>
    %484 = vector.extract_strided_slice %482 {offsets = [0, 0], sizes = [1, 32], strides = [1, 1]} : vector<2x32xf32> to vector<1x32xf32>
    %485 = vector.extract_strided_slice %452 {offsets = [1, 0], sizes = [1, 32], strides = [1, 1]} : vector<2x32xf32> to vector<1x32xf32>
    %486 = vector.extract_strided_slice %482 {offsets = [1, 0], sizes = [1, 32], strides = [1, 1]} : vector<2x32xf32> to vector<1x32xf32>
    %487 = tpu.concatenate %483, %484, %485, %486 in 1 : vector<1x32xf32>, vector<1x32xf32>, vector<1x32xf32>, vector<1x32xf32> -> vector<1x128xf32>
    %488 = arith.index_cast %c7_i32 : i32 to index
    %c0_71 = arith.constant 0 : index
    %489 = vector.load %arg6[%488, %c0_71] : memref<8x128xf32, #tpu.memory_space<vmem>>, vector<1x128xf32>
    tpu.vector_store %arg6[%488, %c0_71], %487 {strides = array<i32>} : memref<8x128xf32, #tpu.memory_space<vmem>>, vector<1x128xf32>,
    %c8_i32 = arith.constant 8 : i32
    return
  }
}

</mosaic_0001>

<bundles_post_ra>
// kernel: decoder_forward.1
= control target key start
LH: loop header
LB: loop body
LE: loop exit
PB: predicated region body
PF: predicated region fallthrough
CT: control target
= control target key end

     0   :  { %v4750_v3 = vmov 0.0|0.0   ;;  %vm4751_vm0 = vmmov 0   ;;  %v4752_v4 = vmov 0.0   ;;  %v146_v45 = vlaneseq  ;;  %s4755_s17 = smov 96   ;;  %s6794_s1 = inlined_call_operand.vmem [shape: f32[128,128], index: 1, kind: input, shape index: {}]   ;;  %s6795_s0 = inlined_call_operand.vmem [shape: f32[16,128], index: 0, kind: input, shape index: {}]   ;;  %s6796_s2 = inlined_call_operand.vmem [shape: f32[32,128], index: 2, kind: input, shape index: {}]   ;;  %s6797_s3 = inlined_call_operand.vmem [shape: f32[1,128], index: 3, kind: input, shape index: {}]   ;;  %s6798_s4 = inlined_call_operand.vmem [shape: f32[2,256], index: 4, kind: input, shape index: {}]   ;;  %s6799_s5 = inlined_call_operand.vmem [shape: f32[2,32,256], index: 5, kind: input, shape index: {}]   ;;  %s6800_s6 = inlined_call_operand.vmem [shape: f32[8,128], index: 6, kind: output, shape index: {}]  }
   0x1   :  { %v25_v0 = vld [vmem:[%s6794_s1] sm:$0xff]  ;;  %v26_v1 = vld [vmem:[%s6794_s1 + $0x8] sm:$0xff]  ;;  %v27_v2 = vld [vmem:[%s6794_s1 + $0x10] sm:$0xff]  ;;  %4006 = vmatprep.subr.bf16.mxu1 %v4750_v3  ;;  %3894 = vmatprep.mubr.msk.f32.mxu1 %vm4751_vm0, %v4752_v4  ;;  %vm152_vm4 = vcmask 261120   ;;  %vm416_vm5 = vcmask 523264   ;;  %vm418_vm6 = vcmask 785408  }
   0x2   :  { %v3974_v5 = vpack.c.bf16 %v26_v1, %v25_v0  ;;  %v28_v6 = vld [vmem:[%s6794_s1 + $0x18] sm:$0xff]  ;;  %v29_v8 = vld [vmem:[%s6794_s1 + $0x20] sm:$0xff]  ;;  %v30_v9 = vld [vmem:[%s6794_s1 + $0x28] sm:$0xff]  ;;  %v147_v47 = vand.u32 127, %v146_v45 }
   0x3   :  { %v3978_v7 = vpack.c.bf16 %v28_v6, %v27_v2  ;;  %v3982_v10 = vpack.c.bf16 %v30_v9, %v29_v8  ;;  %v31_v11 = vld [vmem:[%s6794_s1 + $0x30] sm:$0xff]  ;;  %v32_v12 = vld [vmem:[%s6794_s1 + $0x38] sm:$0xff]  ;;  %v23_v13 = vld [vmem:[%s6795_s0] sm:$0xff] }
   0x4   :  { %3975 = vmatprep.subr.bf16.mxu0 %v3974_v5  ;;  %3883 = vmatprep.mubr.f32.mxu0 %v23_v13  ;;  %v125_v14 = vld [vmem:[%s6796_s2] sm:$0xff]  ;;  %v126_v15 = vld [vmem:[%s6796_s2 + $0x8] sm:$0xff]  ;;  %v127_v16 = vld [vmem:[%s6796_s2 + $0x10] sm:$0xff]  ;;  %v3986_v19 = vpack.c.bf16 %v32_v12, %v31_v11  ;;  %vm148_vm1 = vcmp.ge.s32.totalorder %v147_v47, 64  ;;  %vm149_vm2 = vcmp.lt.s32.totalorder %v147_v47, 96 }
   0x5   :  { %3977 = vmatpush3.bf16.msra.mxu0 %v3974_v5  ;;  %v4832_v17 = vpack.c.bf16 %v126_v15, %v125_v14  ;;  %v128_v18 = vld [vmem:[%s6796_s2 + $0x18] sm:$0xff]  ;;  %v33_v21 = vld [vmem:[%s6794_s1 + $0x40] sm:$0xff]  ;;  %v34_v22 = vld [vmem:[%s6794_s1 + $0x48] sm:$0xff] }
   0x6   :  { %3979 = vmatprep.subr.bf16.mxu0 %v3978_v7  ;;  %v4838_v20 = vpack.c.bf16 %v128_v18, %v127_v16  ;;  %v3990_v23 = vpack.c.bf16 %v34_v22, %v33_v21  ;;  %v35_v24 = vld [vmem:[%s6794_s1 + $0x50] sm:$0xff]  ;;  %v36_v25 = vld [vmem:[%s6794_s1 + $0x58] sm:$0xff]  ;;  %v37_v27 = vld [vmem:[%s6794_s1 + $0x60] sm:$0xff] }
   0x7   :  { %4008 = vmatpush3.bf16.msra.mxu1 %v4832_v17  ;;  %v3994_v26 = vpack.c.bf16 %v36_v25, %v35_v24  ;;  %v38_v28 = vld [vmem:[%s6794_s1 + $0x68] sm:$0xff]  ;;  %v39_v30 = vld [vmem:[%s6794_s1 + $0x70] sm:$0xff]  ;;  %v40_v31 = vld [vmem:[%s6794_s1 + $0x78] sm:$0xff] }
   0x8   :  { %4009 = vmatprep.subr.bf16.mxu1 %v4750_v3  ;;  %v3998_v29 = vpack.c.bf16 %v38_v28, %v37_v27  ;;  %v4002_v32 = vpack.c.bf16 %v40_v31, %v39_v30  ;;  %v24_v33 = vld [vmem:[%s6795_s0 + $0x8] sm:$0xff]  ;;  %v3777_v36 = vld [vmem:[%s6797_s3] ss:$0 sm:$0xff]  ;;  %vm4888_vm3 = vmand %vm148_vm1, %vm149_vm2  ;;  %s4753_s0 = smov 64   ;;  %s4754_s3 = smov 32  }
   0x9   :  { %3981 = vmatpush3.bf16.msra.mxu0 %v3978_v7 }
   0xa   :  { %3983 = vmatprep.subr.bf16.mxu0 %v3982_v10 }
   0xb   :  { %4011 = vmatpush3.bf16.msra.mxu1 %v4838_v20 }
   0xc   :  { %4012 = vmatprep.subr.bf16.mxu1 %v4750_v3 }
   0xd   :  { %3985 = vmatpush3.bf16.msra.mxu0 %v3982_v10 }
   0xe   :  { %3987 = vmatprep.subr.bf16.mxu0 %v3986_v19  ;;  %3895 = vmatmul.mubr.f32.vlgmr.msra.gmra.mrb[0].mxu1 %v4752_v4 }
   0xf   :  { %4014 = vmatpush3.bf16.msra.mxu1 %v4832_v17  ;;  %3905 = vmatprep.mubr.msk.f32.mxu1 %vm4751_vm0, %v4752_v4 }
  0x10   :  { %4015 = vmatprep.subr.bf16.mxu1 %v4750_v3 }
  0x11   :  { %3989 = vmatpush3.bf16.msra.mxu0 %v3986_v19 }
  0x12   :  { %3991 = vmatprep.subr.bf16.mxu0 %v3990_v23 }
  0x13   :  { %4017 = vmatpush3.bf16.msra.mxu1 %v4838_v20 }
  0x14   :  { %4018 = vmatprep.subr.bf16.mxu1 %v4750_v3 }
  0x15   :  { %3993 = vmatpush3.bf16.msra.mxu0 %v3990_v23 }
  0x16   :  { %3995 = vmatprep.subr.bf16.mxu0 %v3994_v26 }
  0x19   :  { %3997 = vmatpush3.bf16.msra.mxu0 %v3994_v26 }
  0x1a   :  { %3999 = vmatprep.subr.bf16.mxu0 %v3998_v29 }
  0x1d   :  { %4001 = vmatpush3.bf16.msra.mxu0 %v3998_v29 }
  0x1e   :  { %4003 = vmatprep.subr.bf16.mxu0 %v4002_v32 }
  0x21   :  { %4005 = vmatpush3.bf16.msra.mxu0 %v4002_v32 }
  0x22   :  { %4030 = vmatprep.subr.bf16.mxu0 %v4750_v3 }
  0x24   :  { %3884 = vmatmul.mubr.f32.vlgmr.msra.gmra.mrb[0].mxu0 %v24_v33 }
  0x25   :  { %4032 = vmatpush3.bf16.msra.mxu0 %v4832_v17  ;;  %3938 = vmatprep.mubr.msk.f32.mxu0 %vm4751_vm0, %v4752_v4 }
  0x26   :  { %4033 = vmatprep.subr.bf16.mxu0 %v4750_v3 }
  0x29   :  { %4035 = vmatpush3.bf16.msra.mxu0 %v4838_v20 }
  0x2a   :  { %4042 = vmatprep.subr.bf16.mxu0 %v4750_v3 }
  0xe1   :  { %v222_v34 = vpop.f32.mrb[0].mxu1 }
  0xe2   :  { %v3896_v35 = vpop.f32.mrb[1].mxu1 }
  0xf7   :  { %v3885_v37 = vpop.f32.mrb[0].mxu0 }
  0xf8   :  { %v120_v38 = vadd.f32 %v3885_v37, %v3777_v36  ;;  %v114_v39 = vpop.f32.mrb[1].mxu0 }
  0xf9   :  { %v115_v40 = vadd.f32 %v3777_v36, %v114_v39 }
  0xfa   :  { %124 = vst [vmem:[#allocation2 + $0x8] sm:$0xff] %v120_v38 }
  0xfb   :  { %123 = vst [vmem:[#allocation2] sm:$0xff] %v115_v40 }
 0x102   :  { %v151_v41 = vld [vmem:[#allocation2] sm:$0x3]  ;;  %v645_v61 = vld [vmem:[#allocation2 + $0x2] sm:$0x3]  ;;  %v1092_v19 = vld [vmem:[#allocation2 + $0x4] sm:$0x3] }
 0x103   :  { %v226_v42 = vadd.f32 %v222_v34, %v151_v41  ;;  %v1539_v39 = vld [vmem:[#allocation2 + $0x6] sm:$0x3] }
 0x105   :  { %v3778_v43 = vmul.f32 -1.442695, %v226_v42 }
 0x107   :  { %4062 = vpow2.f32 %v3778_v43 }
 0x108   :  { %4064 = vtanh.f32 %v226_v42 }
 0x111   :  { %v4063_v44 = vpop.eup %4062 }
 0x112   :  { %v231_v46 = vadd.f32 1.0, %v4063_v44  ;;  %v4065_v49 = vpop.eup %4064 }
 0x114   :  { %4066 = vrcp.f32 %v231_v46 }
 0x11e   :  { %v4067_v50 = vpop.eup %4066 }
 0x11f   :  { %v234_v51 = vsel %vm4888_vm3, %v4065_v49, %v4067_v50 }
 0x120   :  { %237 = vrot.lane.b32.xlu0 %v234_v51, %s4753_s0  ;;  %v235_v54 = vmul.f32 0.0, %v234_v51 }
 0x192   :  { %v238_v52 = vpop.permute.xlu0 %237 }
 0x193   :  { %v240_v53 = vmul.f32 %v238_v52, %v234_v51 }
 0x195   :  { %242 = vrot.lane.b32.xlu0 %v240_v53, %s4754_s3 }
 0x207   :  { %v243_v55 = vpop.permute.xlu0 %242 }
 0x208   :  { %v245_v56 = vadd.f32 %v243_v55, %v235_v54 }
 0x20a   :  { %4068 = vtanh.f32 %v245_v56 }
 0x214   :  { %v4069_v57 = vpop.eup %4068 }
 0x215   :  { %248 = vrot.lane.b32.xlu1 %v4069_v57, %s4753_s0 }
 0x287   :  { %v249_v58 = vpop.permute.xlu1 %248 }
 0x288   :  { %v4897_v59 = vmul.f32 %v249_v58, %v234_v51 }
 0x28a   :  { %406 = vrot.lane.b32.xlu1 %v4897_v59, %s4754_s3 }
 0x2fc   :  { %v4901_v60 = vpop.permute.xlu1 %406 }
 0x2fd   :  { %3906 = vmatmul.mubr.msk.f32.vlgmr.msra.gmra.mrb[2].mxu1 %vm152_vm4, %v4901_v60 }
 0x2fe   :  { %4020 = vmatpush3.bf16.msra.mxu1 %v4832_v17  ;;  %3916 = vmatprep.mubr.msk.f32.mxu1 %vm4751_vm0, %v4752_v4 }
 0x2ff   :  { %4021 = vmatprep.subr.bf16.mxu1 %v4750_v3 }
 0x302   :  { %4023 = vmatpush3.bf16.msra.mxu1 %v4838_v20 }
 0x303   :  { %4024 = vmatprep.subr.bf16.mxu1 %v4750_v3 }
 0x3d0   :  { %v714_v62 = vpop.f32.mrb[2].mxu1 }
 0x3d1   :  { %v718_v63 = vadd.f32 %v714_v62, %v645_v61  ;;  %v3907_v0 = vpop.f32.mrb[3].mxu1  ;;  %v1986_v62 = vld [vmem:[#allocation2 + $0x8] sm:$0x3] }
 0x3d3   :  { %v3780_v1 = vmul.f32 -1.442695, %v718_v63 }
 0x3d5   :  { %4070 = vpow2.f32 %v3780_v1 }
 0x3d6   :  { %4072 = vtanh.f32 %v718_v63 }
 0x3df   :  { %v4071_v2 = vpop.eup %4070 }
 0x3e0   :  { %v723_v5 = vadd.f32 1.0, %v4071_v2  ;;  %v4073_v6 = vpop.eup %4072 }
 0x3e2   :  { %4074 = vrcp.f32 %v723_v5 }
 0x3ec   :  { %v4075_v7 = vpop.eup %4074 }
 0x3ed   :  { %v726_v8 = vsel %vm4888_vm3, %v4073_v6, %v4075_v7 }
 0x3ee   :  { %729 = vrot.lane.b32.xlu0 %v726_v8, %s4753_s0  ;;  %v727_v11 = vmul.f32 %v726_v8, %v245_v56 }
 0x460   :  { %v730_v9 = vpop.permute.xlu0 %729 }
 0x461   :  { %v732_v10 = vmul.f32 %v730_v9, %v726_v8 }
 0x463   :  { %734 = vrot.lane.b32.xlu1 %v732_v10, %s4754_s3 }
 0x4d5   :  { %v735_v12 = vpop.permute.xlu1 %734 }
 0x4d6   :  { %v737_v13 = vadd.f32 %v735_v12, %v727_v11 }
 0x4d8   :  { %4076 = vtanh.f32 %v737_v13 }
 0x4e2   :  { %v4077_v14 = vpop.eup %4076 }
 0x4e3   :  { %740 = vrot.lane.b32.xlu0 %v4077_v14, %s4753_s0 }
 0x555   :  { %v741_v15 = vpop.permute.xlu0 %740 }
 0x556   :  { %v4916_v16 = vmul.f32 %v741_v15, %v726_v8 }
 0x558   :  { %869 = vrot.lane.b32.xlu1 %v4916_v16, %s4754_s3 }
 0x5ca   :  { %v4920_v18 = vpop.permute.xlu1 %869 }
 0x5cb   :  { %3917 = vmatmul.mubr.msk.f32.vlgmr.msra.gmra.mrb[4].mxu1 %vm152_vm4, %v4920_v18 }
 0x5cc   :  { %4026 = vmatpush3.bf16.msra.mxu1 %v4832_v17  ;;  %3927 = vmatprep.mubr.msk.f32.mxu1 %vm4751_vm0, %v4752_v4 }
 0x5cd   :  { %4027 = vmatprep.subr.bf16.mxu1 %v4750_v3 }
 0x5d0   :  { %4029 = vmatpush3.bf16.msra.mxu1 %v4838_v20 }
 0x5d1   :  { %4036 = vmatprep.subr.bf16.mxu1 %v4750_v3 }
 0x69e   :  { %v1161_v21 = vpop.f32.mrb[4].mxu1 }
 0x69f   :  { %v1165_v22 = vadd.f32 %v1161_v21, %v1092_v19  ;;  %v3918_v23 = vpop.f32.mrb[5].mxu1 }
 0x6a0   :  { %v2433_v23 = vld [vmem:[#allocation2 + $0xa] sm:$0x3] }
 0x6a1   :  { %v3782_v24 = vmul.f32 -1.442695, %v1165_v22 }
 0x6a3   :  { %4078 = vpow2.f32 %v3782_v24 }
 0x6a4   :  { %4080 = vtanh.f32 %v1165_v22 }
 0x6ad   :  { %v4079_v25 = vpop.eup %4078 }
 0x6ae   :  { %v1170_v26 = vadd.f32 1.0, %v4079_v25  ;;  %v4081_v27 = vpop.eup %4080 }
 0x6b0   :  { %4082 = vrcp.f32 %v1170_v26 }
 0x6ba   :  { %v4083_v28 = vpop.eup %4082 }
 0x6bb   :  { %v1173_v29 = vsel %vm4888_vm3, %v4081_v27, %v4083_v28 }
 0x6bc   :  { %1176 = vrot.lane.b32.xlu0 %v1173_v29, %s4753_s0  ;;  %v1174_v32 = vmul.f32 %v1173_v29, %v737_v13 }
 0x72e   :  { %v1177_v30 = vpop.permute.xlu0 %1176 }
 0x72f   :  { %v1179_v31 = vmul.f32 %v1177_v30, %v1173_v29 }
 0x731   :  { %1181 = vrot.lane.b32.xlu1 %v1179_v31, %s4754_s3 }
 0x7a3   :  { %v1182_v33 = vpop.permute.xlu1 %1181 }
 0x7a4   :  { %v1184_v34 = vadd.f32 %v1182_v33, %v1174_v32 }
 0x7a6   :  { %4084 = vtanh.f32 %v1184_v34 }
 0x7b0   :  { %v4085_v35 = vpop.eup %4084 }
 0x7b1   :  { %1187 = vrot.lane.b32.xlu0 %v4085_v35, %s4753_s0 }
 0x823   :  { %v1188_v36 = vpop.permute.xlu0 %1187 }
 0x824   :  { %v4935_v37 = vmul.f32 %v1188_v36, %v1173_v29 }
 0x826   :  { %6863 = vst [vmem:[#allocation3_spill] sm:$0xff] %v4935_v37  ;;  %1316 = vrot.lane.b32.xlu1 %v4935_v37, %s4754_s3 }
 0x898   :  { %v4939_v38 = vpop.permute.xlu1 %1316 }
 0x899   :  { %6864 = vst [vmem:[#allocation4_spill] sm:$0xff] %v4939_v38  ;;  %3928 = vmatmul.mubr.msk.f32.vlgmr.msra.gmra.mrb[6].mxu1 %vm152_vm4, %v4939_v38 }
 0x89a   :  { %4038 = vmatpush3.bf16.msra.mxu1 %v4832_v17  ;;  %3949 = vmatprep.mubr.msk.f32.mxu1 %vm4751_vm0, %v4752_v4 }
 0x89b   :  { %4039 = vmatprep.subr.bf16.mxu1 %v4750_v3 }
 0x89e   :  { %4041 = vmatpush3.bf16.msra.mxu1 %v4838_v20 }
 0x89f   :  { %4048 = vmatprep.subr.bf16.mxu1 %v4750_v3 }
 0x96c   :  { %v1608_v40 = vpop.f32.mrb[6].mxu1 }
 0x96d   :  { %v1612_v41 = vadd.f32 %v1608_v40, %v1539_v39  ;;  %v3929_v42 = vpop.f32.mrb[7].mxu1  ;;  %v2880_v40 = vld [vmem:[#allocation2 + $0xc] sm:$0x3] }
 0x96f   :  { %v3784_v43 = vmul.f32 -1.442695, %v1612_v41 }
 0x971   :  { %4086 = vpow2.f32 %v3784_v43 }
 0x972   :  { %4088 = vtanh.f32 %v1612_v41 }
 0x97b   :  { %v4087_v44 = vpop.eup %4086 }
 0x97c   :  { %v1617_v46 = vadd.f32 1.0, %v4087_v44  ;;  %v4089_v47 = vpop.eup %4088 }
 0x97e   :  { %4090 = vrcp.f32 %v1617_v46 }
 0x988   :  { %v4091_v49 = vpop.eup %4090 }
 0x989   :  { %v1620_v50 = vsel %vm4888_vm3, %v4089_v47, %v4091_v49 }
 0x98a   :  { %1623 = vrot.lane.b32.xlu0 %v1620_v50, %s4753_s0  ;;  %v1621_v53 = vmul.f32 %v1620_v50, %v1184_v34 }
 0x9fc   :  { %v1624_v51 = vpop.permute.xlu0 %1623 }
 0x9fd   :  { %v1626_v52 = vmul.f32 %v1624_v51, %v1620_v50 }
 0x9ff   :  { %1628 = vrot.lane.b32.xlu1 %v1626_v52, %s4754_s3 }
 0xa71   :  { %v1629_v54 = vpop.permute.xlu1 %1628 }
 0xa72   :  { %v1631_v55 = vadd.f32 %v1629_v54, %v1621_v53 }
 0xa74   :  { %4092 = vtanh.f32 %v1631_v55 }
 0xa7e   :  { %v4093_v56 = vpop.eup %4092 }
 0xa7f   :  { %1634 = vrot.lane.b32.xlu0 %v4093_v56, %s4753_s0 }
 0xaf1   :  { %v1635_v57 = vpop.permute.xlu0 %1634 }
 0xaf2   :  { %v4954_v58 = vmul.f32 %v1635_v57, %v1620_v50  ;;  %v5006_v57 = vshrl.u32 %v146_v45, 7 }
 0xaf4   :  { %6865 = vst [vmem:[#allocation5_spill] sm:$0xff] %v4954_v58  ;;  %1763 = vrot.lane.b32.xlu1 %v4954_v58, %s4754_s3 }
 0xb66   :  { %v4958_v61 = vpop.permute.xlu1 %1763 }
 0xb67   :  { %6866 = vst [vmem:[#allocation6_spill] sm:$0xff] %v4958_v61  ;;  %3939 = vmatmul.mubr.msk.f32.vlgmr.msra.gmra.mrb[2].mxu0 %vm152_vm4, %v4958_v61 }
 0xb68   :  { %4044 = vmatpush3.bf16.msra.mxu0 %v4832_v17  ;;  %3960 = vmatprep.mubr.msk.f32.mxu0 %vm4751_vm0, %v4752_v4 }
 0xb69   :  { %4045 = vmatprep.subr.bf16.mxu0 %v4750_v3 }
 0xb6c   :  { %4047 = vmatpush3.bf16.msra.mxu0 %v4838_v20 }
 0xc3a   :  { %v2055_v63 = vpop.f32.mrb[2].mxu0 }
 0xc3b   :  { %v2059_v0 = vadd.f32 %v2055_v63, %v1986_v62  ;;  %v3940_v1 = vpop.f32.mrb[3].mxu0  ;;  %v5009_v62 = vsub.s32 0, %v5006_v57 }
 0xc3c   :  { %v5015_v1 = vsub.s32 1, %v5006_v57 }
 0xc3d   :  { %v3786_v2 = vmul.f32 -1.442695, %v2059_v0  ;;  %6872 = vst [vmem:[#allocation12_spill] sm:$0xff] %v5009_v62 }
 0xc3e   :  { %6873 = vst [vmem:[#allocation13_spill] sm:$0xff] %v5015_v1 }
 0xc3f   :  { %4094 = vpow2.f32 %v3786_v2  ;;  %v275_v2 = vrot.slane %v4897_v59, %v5015_v1 }
 0xc40   :  { %4096 = vtanh.f32 %v2059_v0  ;;  %v255_v0 = vrot.slane %v4897_v59, %v5009_v62 }
 0xc49   :  { %v4095_v5 = vpop.eup %4094 }
 0xc4a   :  { %v2064_v6 = vadd.f32 1.0, %v4095_v5  ;;  %v4097_v7 = vpop.eup %4096 }
 0xc4c   :  { %4098 = vrcp.f32 %v2064_v6  ;;  %v4756_v6 = vmov 1966171168  }
 0xc56   :  { %v4099_v8 = vpop.eup %4098 }
 0xc57   :  { %v2067_v9 = vsel %vm4888_vm3, %v4097_v7, %v4099_v8  ;;  %v294_v7 = vunpack.c.l.s4 %v4756_v6 }
 0xc58   :  { %2070 = vrot.lane.b32.xlu0 %v2067_v9, %s4753_s0  ;;  %v2068_v12 = vmul.f32 %v2067_v9, %v1631_v55 }
 0xc59   :  { %v295_v8 = vunpack.c.0.s8 %v294_v7 }
 0xcca   :  { %v2071_v10 = vpop.permute.xlu0 %2070 }
 0xccb   :  { %v2073_v11 = vmul.f32 %v2071_v10, %v2067_v9 }
 0xccd   :  { %2075 = vrot.lane.b32.xlu1 %v2073_v11, %s4754_s3  ;;  %v5030_v11 = vsub.s32 %v295_v8, %v5006_v57 }
 0xccf   :  { %6876 = vst [vmem:[#allocation16_spill] sm:$0xff] %v5030_v11 }
 0xd3f   :  { %v2076_v13 = vpop.permute.xlu1 %2075 }
 0xd40   :  { %v2078_v14 = vadd.f32 %v2076_v13, %v2068_v12  ;;  %v5037_v12 = vld [vmem:[%s6798_s4] sm:$0xf] }
 0xd42   :  { %4100 = vtanh.f32 %v2078_v14 }
 0xd4c   :  { %v4101_v15 = vpop.eup %4100 }
 0xd4d   :  { %2081 = vrot.lane.b32.xlu0 %v4101_v15, %s4753_s0  ;;  %v299_v15 = vrot.slane %v5037_v12, %v5030_v11 }
 0xdbf   :  { %v2082_v19 = vpop.permute.xlu0 %2081 }
 0xdc0   :  { %v4972_v21 = vmul.f32 %v2082_v19, %v2067_v9  ;;  %v300_v19 = vcombine.high %v299_v15, %v299_v15 }
 0xdc2   :  { %6867 = vst [vmem:[#allocation7_spill] sm:$0xff] %v4972_v21  ;;  %2210 = vrot.lane.b32.xlu1 %v4972_v21, %s4754_s3 }
 0xe34   :  { %v4976_v22 = vpop.permute.xlu1 %2210 }
 0xe35   :  { %6868 = vst [vmem:[#allocation8_spill] sm:$0xff] %v4976_v22  ;;  %3950 = vmatmul.mubr.msk.f32.vlgmr.msra.gmra.mrb[8].mxu1 %vm152_vm4, %v4976_v22 }
 0xe36   :  { %4050 = vmatpush3.bf16.msra.mxu1 %v4832_v17  ;;  %3971 = vmatprep.mubr.msk.f32.mxu1 %vm4751_vm0, %v4752_v4 }
 0xe37   :  { %4051 = vmatprep.subr.bf16.mxu1 %v4750_v3 }
 0xe3a   :  { %4053 = vmatpush3.bf16.msra.mxu1 %v4838_v20 }
 0xf08   :  { %v2502_v24 = vpop.f32.mrb[8].mxu1 }
 0xf09   :  { %v2506_v25 = vadd.f32 %v2502_v24, %v2433_v23  ;;  %v3951_v26 = vpop.f32.mrb[9].mxu1  ;;  %v5044_v24 = vrot.slane %v299_v15, %v5009_v62 }
 0xf0a   :  { %v5047_v26 = vrot.slane %v299_v15, %v5015_v1 }
 0xf0b   :  { %v3788_v27 = vmul.f32 -1.442695, %v2506_v25  ;;  %6877 = vst [vmem:[#allocation17_spill] sm:$0xff] %v5044_v24 }
 0xf0d   :  { %4102 = vpow2.f32 %v3788_v27  ;;  %v5050_v27 = vrot.slane %v300_v19, %v5009_v62 }
 0xf0e   :  { %4104 = vtanh.f32 %v2506_v25 }
 0xf0f   :  { %6878 = vst [vmem:[#allocation18_spill] sm:$0xff] %v5050_v27 }
 0xf17   :  { %v4103_v28 = vpop.eup %4102 }
 0xf18   :  { %v2511_v29 = vadd.f32 1.0, %v4103_v28  ;;  %v4105_v30 = vpop.eup %4104 }
 0xf1a   :  { %4106 = vrcp.f32 %v2511_v29  ;;  %v5053_v29 = vrot.slane %v300_v19, %v5015_v1 }
 0xf24   :  { %v4107_v31 = vpop.eup %4106 }
 0xf25   :  { %v2514_v17 = vsel %vm4888_vm3, %v4105_v30, %v4107_v31 }
 0xf26   :  { %2517 = vrot.lane.b32.xlu0 %v2514_v17, %s4753_s0  ;;  %v2515_v20 = vmul.f32 %v2514_v17, %v2078_v14 }
 0xf98   :  { %v2518_v3 = vpop.permute.xlu0 %2517 }
 0xf99   :  { %v2520_v4 = vmul.f32 %v2518_v3, %v2514_v17 }
 0xf9b   :  { %2522 = vrot.lane.b32.xlu1 %v2520_v4, %s4754_s3 }
0x100d   :  { %v2523_v32 = vpop.permute.xlu1 %2522 }
0x100e   :  { %v2525_v33 = vadd.f32 %v2523_v32, %v2515_v20 }
0x1010   :  { %4108 = vtanh.f32 %v2525_v33 }
0x101a   :  { %v4109_v34 = vpop.eup %4108 }
0x101b   :  { %2528 = vrot.lane.b32.xlu0 %v4109_v34, %s4753_s0 }
0x108d   :  { %v2529_v35 = vpop.permute.xlu0 %2528 }
0x108e   :  { %v4990_v36 = vmul.f32 %v2529_v35, %v2514_v17 }
0x1090   :  { %6869 = vst [vmem:[#allocation9_spill] sm:$0xff] %v4990_v36  ;;  %2657 = vrot.lane.b32.xlu1 %v4990_v36, %s4754_s3 }
0x1102   :  { %v4994_v39 = vpop.permute.xlu1 %2657 }
0x1103   :  { %6870 = vst [vmem:[#allocation10_spill] sm:$0xff] %v4994_v39  ;;  %3961 = vmatmul.mubr.msk.f32.vlgmr.msra.gmra.mrb[4].mxu0 %vm152_vm4, %v4994_v39  ;;  %v5191_v39 = vld [vmem:[%s6799_s5 + $0x78] sm:$0xff] }
0x11d6   :  { %v2949_v41 = vpop.f32.mrb[4].mxu0 }
0x11d7   :  { %v2953_v42 = vadd.f32 %v2949_v41, %v2880_v40  ;;  %v3962_v43 = vpop.f32.mrb[5].mxu0 }
0x11d9   :  { %v3790_v44 = vmul.f32 -1.442695, %v2953_v42 }
0x11db   :  { %4110 = vpow2.f32 %v3790_v44 }
0x11dc   :  { %4112 = vtanh.f32 %v2953_v42 }
0x11e5   :  { %v4111_v46 = vpop.eup %4110 }
0x11e6   :  { %v2958_v47 = vadd.f32 1.0, %v4111_v46  ;;  %v4113_v49 = vpop.eup %4112 }
0x11e8   :  { %4114 = vrcp.f32 %v2958_v47 }
0x11f2   :  { %v4115_v50 = vpop.eup %4114 }
0x11f3   :  { %v2961_v51 = vsel %vm4888_vm3, %v4113_v49, %v4115_v50 }
0x11f4   :  { %2964 = vrot.lane.b32.xlu0 %v2961_v51, %s4753_s0  ;;  %v2962_v54 = vmul.f32 %v2961_v51, %v2525_v33 }
0x1266   :  { %v2965_v52 = vpop.permute.xlu0 %2964 }
0x1267   :  { %v2967_v53 = vmul.f32 %v2965_v52, %v2961_v51 }
0x1269   :  { %2969 = vrot.lane.b32.xlu1 %v2967_v53, %s4754_s3 }
0x12db   :  { %v2970_v55 = vpop.permute.xlu1 %2969 }
0x12dc   :  { %v5002_v56 = vadd.f32 %v2970_v55, %v2962_v54 }
0x12de   :  { %6871 = vst [vmem:[#allocation11_spill] sm:$0xff] %v5002_v56  ;;  %4116 = vtanh.f32 %v5002_v56 }
0x12e8   :  { %v4117_v63 = vpop.eup %4116 }
0x12e9   :  { %2975 = vrot.lane.b32.xlu0 %v4117_v63, %s4753_s0 }
0x12ed   :  { %262 = vbcast.lane.b32.xlu0 %v255_v0, 360 }
0x12f1   :  { %270 = vbcast.lane.b32.xlu0 %v255_v0, 376 }
0x12f5   :  { %282 = vbcast.lane.b32.xlu0 %v275_v2, 360 }
0x12f9   :  { %290 = vbcast.lane.b32.xlu0 %v275_v2, 376 }
0x12fd   :  { %412 = vrot.lane.b32.xlu0 %v4897_v59, %s4755_s17 }
0x135b   :  { %v2976_v45 = vpop.permute.xlu0 %2975 }
0x135c   :  { %v5021_v5 = vmul.f32 %v2976_v45, %v2961_v51 }
0x135e   :  { %6874 = vst [vmem:[#allocation14_spill] sm:$0xff] %v5021_v5  ;;  %3104 = vrot.lane.b32.xlu1 %v5021_v5, %s4754_s3 }
0x135f   :  { %v263_v9 = vpop.permute.xlu0 %262 }
0x1360   :  { %v323_v30 = vmul.f32 %v5044_v24, %v263_v9  ;;  %v324_v31 = vmul.f32 %v5047_v26, %v263_v9 }
0x1362   :  { %258 = vbcast.lane.b32.xlu1 %v255_v0, 352  ;;  %v341_v32 = vmul.f32 1.442695, %v323_v30  ;;  %v343_v34 = vmul.f32 1.442695, %v324_v31  ;;  %v5081_v31 = vld [vmem:[%s6799_s5] sm:$0xff] }
0x1363   :  { %v5039_v13 = vpop.permute.xlu0 %270 }
0x1364   :  { %v327_v17 = vmul.f32 %v5044_v24, %v5039_v13  ;;  %4118 = vpow2.f32 %v341_v32 }
0x1365   :  { %4120 = vpow2.f32 %v343_v34 }
0x1366   :  { %266 = vbcast.lane.b32.xlu1 %v255_v0, 368  ;;  %v349_v40 = vmul.f32 1.442695, %v327_v17  ;;  %v5091_v17 = vld [vmem:[%s6799_s5 + $0x10] sm:$0xff] }
0x1367   :  { %v283_v25 = vpop.permute.xlu0 %282 }
0x1368   :  { %v331_v4 = vmul.f32 %v5050_v27, %v283_v25  ;;  %v332_v33 = vmul.f32 %v5053_v29, %v283_v25  ;;  %4122 = vpow2.f32 %v349_v40 }
0x136a   :  { %278 = vbcast.lane.b32.xlu1 %v275_v2, 352  ;;  %v357_v42 = vmul.f32 1.442695, %v331_v4  ;;  %v359_v44 = vmul.f32 1.442695, %v332_v33  ;;  %v5100_v33 = vld [vmem:[%s6799_s5 + $0x18] sm:$0xff] }
0x136b   :  { %v291_v3 = vpop.permute.xlu0 %290 }
0x136c   :  { %v335_v35 = vmul.f32 %v5050_v27, %v291_v3  ;;  %v336_v41 = vmul.f32 %v5053_v29, %v291_v3  ;;  %4124 = vpow2.f32 %v357_v42 }
0x136d   :  { %4126 = vpow2.f32 %v359_v44 }
0x136e   :  { %286 = vbcast.lane.b32.xlu1 %v275_v2, 368  ;;  %v365_v50 = vmul.f32 1.442695, %v335_v35  ;;  %v367_v52 = vmul.f32 1.442695, %v336_v41  ;;  %v5108_v41 = vld [vmem:[%s6799_s5 + $0x20] sm:$0xff] }
0x136f   :  { %v413_v46 = vpop.permute.xlu0 %412 }
0x1370   :  { %4128 = vpow2.f32 %v365_v50 }
0x1371   :  { %4130 = vpow2.f32 %v367_v52 }
0x1372   :  { %409 = vrot.lane.b32.xlu1 %v4897_v59, %s4753_s0 }
0x13d0   :  { %v5027_v10 = vpop.permute.xlu1 %3104 }
0x13d1   :  { %6875 = vst [vmem:[#allocation15_spill] sm:$0xff] %v5027_v10  ;;  %3972 = vmatmul.mubr.msk.f32.vlgmr.msra.gmra.mrb[10].mxu1 %vm152_vm4, %v5027_v10  ;;  %v5183_v10 = vld [vmem:[%s6799_s5 + $0x70] sm:$0xff] }
0x13d4   :  { %v259_v14 = vpop.permute.xlu1 %258 }
0x13d5   :  { %v321_v47 = vmul.f32 %v5044_v24, %v259_v14  ;;  %v322_v53 = vmul.f32 %v5047_v26, %v259_v14 }
0x13d7   :  { %v337_v0 = vmul.f32 1.442695, %v321_v47  ;;  %v339_v7 = vmul.f32 1.442695, %v322_v53 }
0x13d8   :  { %v267_v23 = vpop.permute.xlu1 %266 }
0x13d9   :  { %v325_v55 = vmul.f32 %v5044_v24, %v267_v23  ;;  %v326_v2 = vmul.f32 %v5047_v26, %v267_v23  ;;  %4132 = vpow2.f32 %v337_v0 }
0x13da   :  { %4134 = vpow2.f32 %v339_v7 }
0x13db   :  { %v345_v9 = vmul.f32 1.442695, %v325_v55  ;;  %v347_v25 = vmul.f32 1.442695, %v326_v2  ;;  %v5142_v2 = vld [vmem:[%s6799_s5 + $0x40] sm:$0xff] }
0x13dc   :  { %v279_v28 = vpop.permute.xlu1 %278 }
0x13dd   :  { %v329_v45 = vmul.f32 %v5050_v27, %v279_v28  ;;  %v330_v8 = vmul.f32 %v5053_v29, %v279_v28  ;;  %v5086_v28 = vld [vmem:[%s6799_s5 + $0x8] sm:$0xff]  ;;  %4136 = vpow2.f32 %v345_v9 }
0x13de   :  { %4138 = vpow2.f32 %v347_v25  ;;  %v5157_v25 = vld [vmem:[%s6799_s5 + $0x50] sm:$0xff] }
0x13df   :  { %v353_v30 = vmul.f32 1.442695, %v329_v45  ;;  %v355_v32 = vmul.f32 1.442695, %v330_v8  ;;  %v5147_v45 = vld [vmem:[%s6799_s5 + $0x48] sm:$0xff] }
0x13e0   :  { %v287_v20 = vpop.permute.xlu1 %286 }
0x13e1   :  { %v333_v14 = vmul.f32 %v5050_v27, %v287_v20  ;;  %v334_v23 = vmul.f32 %v5053_v29, %v287_v20  ;;  %v5095_v20 = vpop.eup %4118  ;;  %4140 = vpow2.f32 %v353_v30 }
0x13e2   :  { %v5103_v35 = vpop.eup %4120  ;;  %4142 = vpow2.f32 %v355_v32 }
0x13e3   :  { %v361_v40 = vmul.f32 1.442695, %v333_v14  ;;  %v5110_v42 = vpop.eup %4122  ;;  %v363_v50 = vmul.f32 1.442695, %v334_v23 }
0x13e4   :  { %v410_v43 = vpop.permute.xlu1 %409 }
0x13e5   :  { %v415_v49 = vsel %vm152_vm4, %v4901_v60, %v410_v43  ;;  %v5115_v43 = vld [vmem:[%s6799_s5 + $0x28] sm:$0xff]  ;;  %4144 = vpow2.f32 %v361_v40 }
0x13e6   :  { %v417_v51 = vsel %vm416_vm5, %v415_v49, %v413_v46  ;;  %v5120_v49 = vpop.eup %4124  ;;  %4146 = vpow2.f32 %v363_v50  ;;  %v5177_v50 = vld [vmem:[%s6799_s5 + $0x68] sm:$0xff] }
0x13e7   :  { %v419_v54 = vsel %vm418_vm6, %v417_v51, %v4897_v59  ;;  %v5125_v51 = vld [vmem:[%s6799_s5 + $0x30] sm:$0xff]  ;;  %v5128_v53 = vpop.eup %4126  ;;  %6881 = vst [vmem:[#allocation21_spill] sm:$0xff] %v5177_v50 }
0x13e8   :  { %v421_v63 = vcombine.low %v419_v54, %v419_v54  ;;  %v5133_v54 = vld [vmem:[%s6799_s5 + $0x38] sm:$0xff]  ;;  %v5137_v0 = vpop.eup %4128 }
0x13e9   :  { %v5151_v8 = vpop.eup %4130 }
0x13ea   :  { %v428_v6 = vrot.slane %v421_v63, %v5030_v11  ;;  %v4133_v32 = vpop.eup %4132 }
0x13ec   :  { %v429_v15 = vcombine.high %v428_v6, %v428_v6  ;;  %v436_v19 = vrot.slane %v428_v6, %v5030_v11 }
0x13ee   :  { %v447_v3 = vrot.slane %v436_v19, %v5009_v62  ;;  %v451_v4 = vrot.slane %v436_v19, %v5015_v1  ;;  %v443_v34 = vrot.slane %v429_v15, %v5030_v11 }
0x13f0   :  { %v464_v44 = vmul.f32 %v447_v3, %v5081_v31  ;;  %v465_v46 = vmul.f32 %v451_v4, %v5086_v28  ;;  %v466_v47 = vmul.f32 %v447_v3, %v5091_v17  ;;  %v467_v52 = vmul.f32 %v451_v4, %v5100_v33 }
0x13f1   :  { %v455_v55 = vrot.slane %v443_v34, %v5009_v62  ;;  %v468_v63 = vmul.f32 %v447_v3, %v5108_v41  ;;  %v459_v6 = vrot.slane %v443_v34, %v5015_v1  ;;  %v469_v7 = vmul.f32 %v451_v4, %v5115_v43  ;;  %v5163_v34 = vld [vmem:[%s6799_s5 + $0x58] sm:$0xff] }
0x13f2   :  { %v470_v9 = vmul.f32 %v447_v3, %v5125_v51  ;;  %v480_v14 = vmul.f32 1.442695, %v464_v44  ;;  %v482_v15 = vmul.f32 1.442695, %v465_v46  ;;  %v484_v19 = vmul.f32 1.442695, %v466_v47  ;;  %v5172_v47 = vpop.eup %4134 }
0x13f3   :  { %v471_v30 = vmul.f32 %v451_v4, %v5133_v54  ;;  %v486_v23 = vmul.f32 1.442695, %v467_v52  ;;  %6879 = vst [vmem:[#allocation19_spill] sm:$0xff] %v5163_v34  ;;  %v472_v3 = vmul.f32 %v455_v55, %v5142_v2  ;;  %v488_v40 = vmul.f32 1.442695, %v468_v63  ;;  %v5169_v44 = vld [vmem:[%s6799_s5 + $0x60] sm:$0xff] }
0x13f4   :  { %4148 = vpow2.f32 %v480_v14  ;;  %6880 = vst [vmem:[#allocation20_spill] sm:$0xff] %v5169_v44  ;;  %v473_v46 = vmul.f32 %v459_v6, %v5147_v45  ;;  %v490_v4 = vmul.f32 1.442695, %v469_v7  ;;  %v474_v52 = vmul.f32 %v455_v55, %v5157_v25  ;;  %v4137_v14 = vpop.eup %4136 }
0x13f5   :  { %4150 = vpow2.f32 %v482_v15  ;;  %v492_v63 = vmul.f32 1.442695, %v470_v9  ;;  %v475_v15 = vmul.f32 %v459_v6, %v5163_v34  ;;  %v494_v7 = vmul.f32 1.442695, %v471_v30  ;;  %v5186_v22 = vpop.eup %4138 }
0x13f6   :  { %4152 = vpow2.f32 %v484_v19  ;;  %v476_v19 = vmul.f32 %v455_v55, %v5169_v44  ;;  %v496_v9 = vmul.f32 1.442695, %v472_v3  ;;  %v4141_v61 = vpop.eup %4140  ;;  %v477_v5 = vmul.f32 %v459_v6, %v5177_v50 }
0x13f7   :  { %4154 = vpow2.f32 %v486_v23  ;;  %v498_v21 = vmul.f32 1.442695, %v473_v46  ;;  %v4143_v56 = vpop.eup %4142  ;;  %v369_v23 = vadd.f32 %v4133_v32, %v5095_v20  ;;  %v478_v30 = vmul.f32 %v455_v55, %v5183_v10 }
0x13f8   :  { %4156 = vpow2.f32 %v488_v40  ;;  %v500_v36 = vmul.f32 1.442695, %v474_v52  ;;  %v4145_v58 = vpop.eup %4144  ;;  %v479_v38 = vmul.f32 %v459_v6, %v5191_v39  ;;  %v502_v37 = vmul.f32 1.442695, %v475_v15 }
0x13f9   :  { %4158 = vpow2.f32 %v490_v4  ;;  %v370_v44 = vadd.f32 %v4137_v14, %v369_v23  ;;  %v504_v3 = vmul.f32 1.442695, %v476_v19  ;;  %v4147_v40 = vpop.eup %4146  ;;  %v506_v50 = vmul.f32 1.442695, %v477_v5 }
0x13fa   :  { %4160 = vpow2.f32 %v492_v63  ;;  %v508_v46 = vmul.f32 1.442695, %v478_v30  ;;  %v510_v20 = vmul.f32 1.442695, %v479_v38  ;;  %v328_v32 = vmul.f32 %v5047_v26, %v5039_v13 }
0x13fb   :  { %4162 = vpow2.f32 %v494_v7  ;;  %v371_v6 = vadd.f32 %v5110_v42, %v370_v44  ;;  %v396_v42 = vadd.f32 %v4143_v56, %v5128_v53 }
0x13fc   :  { %4164 = vpow2.f32 %v496_v9  ;;  %v351_v38 = vmul.f32 1.442695, %v328_v32 }
0x13fd   :  { %4166 = vpow2.f32 %v498_v21  ;;  %v387_v21 = vadd.f32 %v4141_v61, %v5120_v49  ;;  %v372_v19 = vrot.slane %v371_v6, 4  ;;  %v397_v61 = vadd.f32 %v4147_v40, %v396_v42 }
0x13fe   :  { %v4149_v4 = vpop.eup %4148  ;;  %4168 = vpow2.f32 %v500_v36  ;;  %v378_v40 = vadd.f32 %v5172_v47, %v5103_v35 }
0x13ff   :  { %v4151_v34 = vpop.eup %4150  ;;  %4170 = vpow2.f32 %v502_v37  ;;  %v388_v7 = vadd.f32 %v4145_v58, %v387_v21  ;;  %v373_v49 = vadd.f32 %v372_v19, %v371_v6  ;;  %v398_v53 = vadd.f32 %v5151_v8, %v397_v61 }
0x1400   :  { %v4153_v55 = vpop.eup %4152  ;;  %4172 = vpow2.f32 %v504_v3 }
0x1401   :  { %v4155_v52 = vpop.eup %4154  ;;  %4174 = vpow2.f32 %v506_v50  ;;  %v512_v63 = vadd.f32 %v4153_v55, %v4149_v4 }
0x1402   :  { %v4157_v14 = vpop.eup %4156  ;;  %4176 = vpow2.f32 %v508_v46  ;;  %v521_v5 = vadd.f32 %v4155_v52, %v4151_v34  ;;  %v389_v34 = vadd.f32 %v5137_v0, %v388_v7 }
0x1403   :  { %v4159_v36 = vpop.eup %4158  ;;  %4178 = vpow2.f32 %v510_v20  ;;  %v513_v15 = vadd.f32 %v4157_v14, %v512_v63 }
0x1404   :  { %v4161_v37 = vpop.eup %4160  ;;  %v522_v23 = vadd.f32 %v4159_v36, %v521_v5  ;;  %4180 = vpow2.f32 %v351_v38  ;;  %v374_v5 = vrot.slane %v373_v49, 2  ;;  %v390_v56 = vrot.slane %v389_v34, 4 }
0x1405   :  { %v4163_v9 = vpop.eup %4162  ;;  %v514_v13 = vadd.f32 %v4161_v37, %v513_v15  ;;  %v4757_v38 = vmov 1983009808  }
0x1406   :  { %v4165_v30 = vpop.eup %4164  ;;  %v523_v55 = vadd.f32 %v4163_v9, %v522_v23  ;;  %v549_v7 = vunpack.c.l.s4 %v4757_v38  ;;  %v379_v9 = vadd.f32 %v5186_v22, %v378_v40  ;;  %v391_v42 = vadd.f32 %v390_v56, %v389_v34 }
0x1407   :  { %v4167_v44 = vpop.eup %4166  ;;  %v515_v50 = vrot.slane %v514_v13, 4 }
0x1408   :  { %v4169_v3 = vpop.eup %4168  ;;  %v524_v37 = vrot.slane %v523_v55, 4 }
0x1409   :  { %v4171_v4 = vpop.eup %4170  ;;  %v516_v46 = vadd.f32 %v515_v50, %v514_v13  ;;  %v530_v20 = vadd.f32 %v4169_v3, %v4165_v30  ;;  %v375_v30 = vadd.f32 %v374_v5, %v373_v49 }
0x140a   :  { %v4173_v58 = vpop.eup %4172  ;;  %v539_v32 = vadd.f32 %v4171_v4, %v4167_v44  ;;  %v399_v44 = vrot.slane %v398_v53, 4  ;;  %v525_v61 = vadd.f32 %v524_v37, %v523_v55 }
0x140b   :  { %v4175_v52 = vpop.eup %4174  ;;  %v517_v63 = vrot.slane %v516_v46, 2  ;;  %v531_v14 = vadd.f32 %v4173_v58, %v530_v20  ;;  %v550_v20 = vunpack.c.0.s8 %v549_v7  ;;  %v376_v58 = vrot.slane %v375_v30, 1 }
0x140c   :  { %v4177_v21 = vpop.eup %4176  ;;  %v540_v36 = vadd.f32 %v4175_v52, %v539_v32  ;;  %v392_v32 = vrot.slane %v391_v42, 2  ;;  %v400_v52 = vadd.f32 %v399_v44, %v398_v53 }
0x140d   :  { %v4179_v15 = vpop.eup %4178  ;;  %v518_v0 = vadd.f32 %v517_v63, %v516_v46  ;;  %v532_v6 = vadd.f32 %v4177_v21, %v531_v14  ;;  %v526_v14 = vrot.slane %v525_v61, 2  ;;  %v553_v49 = vsub.s32 %v550_v20, %v5006_v57 }
0x140e   :  { %v541_v19 = vadd.f32 %v4179_v15, %v540_v36  ;;  %v4181_v4 = vpop.eup %4180  ;;  %v377_v56 = vadd.f32 %v376_v58, %v375_v30  ;;  %v393_v36 = vadd.f32 %v392_v32, %v391_v42  ;;  %v401_v55 = vrot.slane %v400_v52, 2 }
0x140f   :  { %v519_v13 = vrot.slane %v518_v0, 1  ;;  %v533_v23 = vrot.slane %v532_v6, 4  ;;  %v380_v46 = vadd.f32 %v4181_v4, %v379_v9 }
0x1410   :  { %v542_v50 = vrot.slane %v541_v19, 4  ;;  %v394_v38 = vrot.slane %v393_v36, 1  ;;  %v402_v7 = vadd.f32 %v401_v55, %v400_v52 }
0x1411   :  { %v520_v8 = vadd.f32 %v519_v13, %v518_v0  ;;  %v534_v3 = vadd.f32 %v533_v23, %v532_v6  ;;  %v381_v5 = vrot.slane %v380_v46, 4  ;;  %v527_v0 = vadd.f32 %v526_v14, %v525_v61 }
0x1412   :  { %v543_v35 = vadd.f32 %v542_v50, %v541_v19  ;;  %v5210_v6 = vrot.slane %v5037_v12, %v553_v49  ;;  %v395_v23 = vadd.f32 %v394_v38, %v393_v36  ;;  %v403_v42 = vrot.slane %v402_v7, 1 }
0x1413   :  { %4182 = vrcp.f32 %v520_v8  ;;  %v535_v47 = vrot.slane %v534_v3, 2  ;;  %v382_v19 = vadd.f32 %v381_v5, %v380_v46  ;;  %v528_v9 = vrot.slane %v527_v0, 1 }
0x1414   :  { %v544_v63 = vrot.slane %v543_v35, 2  ;;  %6882 = vst [vmem:[#allocation22_spill] sm:$0xff] %v5210_v6  ;;  %v562_v53 = vmul.f32 %v5210_v6, %v377_v56  ;;  %v5215_v30 = vrot.slane %v5210_v6, 1  ;;  %v5219_v50 = vcombine.high %v5210_v6, %v5210_v6 }
0x1415   :  { %v536_v22 = vadd.f32 %v535_v47, %v534_v3  ;;  %v383_v12 = vrot.slane %v382_v19, 2  ;;  %v529_v44 = vadd.f32 %v528_v9, %v527_v0  ;;  %v404_v3 = vadd.f32 %v403_v42, %v402_v7 }
0x1416   :  { %v545_v34 = vadd.f32 %v544_v63, %v543_v35  ;;  %6883 = vst [vmem:[#allocation23_spill] sm:$0xff] %v5215_v30  ;;  %6884 = vst [vmem:[#allocation24_spill] sm:$0xff] %v5219_v50  ;;  %v564_v8 = vmul.f32 %v5215_v30, %v395_v23  ;;  %v5224_v61 = vrot.slane %v5219_v50, 1  ;;  %v632_v49 = vrot.slane %v4897_v59, 1 }
0x1417   :  { %v537_v21 = vrot.slane %v536_v22, 1  ;;  %v384_v4 = vadd.f32 %v383_v12, %v382_v19 }
0x1418   :  { %v546_v15 = vrot.slane %v545_v34, 1  ;;  %6885 = vst [vmem:[#allocation25_spill] sm:$0xff] %v5224_v61  ;;  %v565_v46 = vmul.f32 %v5224_v61, %v404_v3 }
0x1419   :  { %v538_v40 = vadd.f32 %v537_v21, %v536_v22  ;;  %v385_v58 = vrot.slane %v384_v4, 1  ;;  %v767_v21 = vrot.slane %v4916_v16, %v5015_v1 }
0x141a   :  { %v547_v37 = vadd.f32 %v546_v15, %v545_v34  ;;  %v747_v34 = vrot.slane %v4916_v16, %v5009_v62 }
0x141b   :  { %4184 = vrcp.f32 %v538_v40  ;;  %v386_v52 = vadd.f32 %v385_v58, %v384_v4 }
0x141c   :  { %4186 = vrcp.f32 %v547_v37  ;;  %v3327_v37 = vld [vmem:[#allocation2 + $0xe] sm:$0x3] }
0x141d   :  { %v4183_v57 = vpop.eup %4182  ;;  %4188 = vrcp.f32 %v529_v44  ;;  %v563_v22 = vmul.f32 %v5219_v50, %v386_v52 }
0x141e   :  { %v567_v13 = vmul.f32 %v4183_v57, %v562_v53 }
0x1420   :  { %576 = vrot.lane.b32.xlu1 %v567_v13, %s4755_s17 }
0x1424   :  { %584 = vrot.lane.b32.xlu1 %v567_v13, %s4753_s0 }
0x1425   :  { %v4185_v20 = vpop.eup %4184 }
0x1426   :  { %v571_v35 = vmul.f32 %v4185_v20, %v564_v8  ;;  %v4187_v47 = vpop.eup %4186 }
0x1427   :  { %v573_v32 = vmul.f32 %v4187_v47, %v565_v46  ;;  %v4189_v63 = vpop.eup %4188 }
0x1428   :  { %578 = vrot.lane.b32.xlu0 %v571_v35, %s4755_s17  ;;  %594 = vrot.lane.b32.xlu1 %v571_v35, %s4754_s3  ;;  %v569_v14 = vmul.f32 %v4189_v63, %v563_v22 }
0x142c   :  { %586 = vrot.lane.b32.xlu0 %v571_v35, %s4753_s0  ;;  %606 = vrot.lane.b32.xlu1 %v573_v32, %s4755_s17 }
0x1430   :  { %592 = vrot.lane.b32.xlu0 %v567_v13, %s4754_s3  ;;  %614 = vrot.lane.b32.xlu1 %v573_v32, %s4753_s0 }
0x1434   :  { %604 = vrot.lane.b32.xlu0 %v569_v14, %s4755_s17  ;;  %622 = vrot.lane.b32.xlu1 %v573_v32, %s4754_s3 }
0x1438   :  { %612 = vrot.lane.b32.xlu0 %v569_v14, %s4753_s0  ;;  %633 = vrot.lane.b32.xlu1 %v632_v49, %s4755_s17 }
0x143c   :  { %620 = vrot.lane.b32.xlu0 %v569_v14, %s4754_s3  ;;  %750 = vbcast.lane.b32.xlu1 %v747_v34, 352 }
0x1440   :  { %758 = vbcast.lane.b32.xlu1 %v747_v34, 368 }
0x1444   :  { %770 = vbcast.lane.b32.xlu1 %v767_v21, 352 }
0x1448   :  { %778 = vbcast.lane.b32.xlu1 %v767_v21, 368 }
0x144c   :  { %872 = vrot.lane.b32.xlu1 %v4916_v16, %s4753_s0 }
0x1492   :  { %v577_v59 = vpop.permute.xlu1 %576 }
0x1493   :  { %v582_v15 = vadd.f32 %v577_v59, %v567_v13 }
0x1496   :  { %v585_v5 = vpop.permute.xlu1 %584 }
0x1497   :  { %v590_v0 = vadd.f32 %v585_v5, %v582_v15 }
0x149a   :  { %v579_v56 = vpop.permute.xlu0 %578  ;;  %v595_v55 = vpop.permute.xlu1 %594 }
0x149b   :  { %v583_v40 = vadd.f32 %v579_v56, %v571_v35 }
0x149e   :  { %v587_v36 = vpop.permute.xlu0 %586  ;;  %v607_v23 = vpop.permute.xlu1 %606 }
0x149f   :  { %v591_v19 = vadd.f32 %v587_v36, %v583_v40 }
0x14a1   :  { %v599_v44 = vadd.f32 %v595_v55, %v591_v19 }
0x14a2   :  { %v593_v38 = vpop.permute.xlu0 %592  ;;  %v615_v3 = vpop.permute.xlu1 %614 }
0x14a3   :  { %v598_v57 = vadd.f32 %v593_v38, %v590_v0  ;;  %v601_v20 = vadd.f32 %v599_v44, %v573_v32 }
0x14a4   :  { %v3396_v53 = vpop.f32.mrb[10].mxu1 }
0x14a5   :  { %v3400_v7 = vadd.f32 %v3396_v53, %v3327_v37  ;;  %v3973_v9 = vpop.f32.mrb[11].mxu1  ;;  %v600_v8 = vadd.f32 %v598_v57, %v569_v14  ;;  %v611_v46 = vadd.f32 %v607_v23, %v601_v20 }
0x14a6   :  { %v605_v12 = vpop.permute.xlu0 %604  ;;  %v623_v63 = vpop.permute.xlu1 %622 }
0x14a7   :  { %v3792_v42 = vmul.f32 -1.442695, %v3400_v7  ;;  %v610_v47 = vadd.f32 %v605_v12, %v600_v8  ;;  %v619_v22 = vadd.f32 %v615_v3, %v611_v46 }
0x14a9   :  { %4190 = vpow2.f32 %v3792_v42  ;;  %v627_v59 = vadd.f32 %v623_v63, %v619_v22 }
0x14aa   :  { %v613_v4 = vpop.permute.xlu0 %612  ;;  %4192 = vtanh.f32 %v3400_v7  ;;  %v634_v56 = vpop.permute.xlu1 %633 }
0x14ab   :  { %v618_v13 = vadd.f32 %v613_v4, %v610_v47 }
0x14ae   :  { %v621_v35 = vpop.permute.xlu0 %620  ;;  %v751_v15 = vpop.permute.xlu1 %750 }
0x14af   :  { %v626_v58 = vadd.f32 %v621_v35, %v618_v13  ;;  %v785_v57 = vmul.f32 %v751_v15, %v5047_v26 }
0x14b1   :  { %629 = vrot.lane.b32.xlu0 %v626_v58, %s4754_s3  ;;  %v802_v3 = vmul.f32 1.442695, %v785_v57 }
0x14b3   :  { %v4191_v52 = vpop.eup %4190 }
0x14b4   :  { %v3405_v49 = vadd.f32 1.0, %v4191_v52  ;;  %v4193_v14 = vpop.eup %4192 }
0x14b5   :  { %637 = vrot.lane.b32.xlu0 %v627_v59, %s4755_s17 }
0x14b6   :  { %4194 = vrcp.f32 %v3405_v49 }
0x14b9   :  { %754 = vbcast.lane.b32.xlu0 %v747_v34, 360 }
0x14c0   :  { %v4195_v5 = vpop.eup %4194 }
0x14c1   :  { %v5250_v32 = vsel %vm4888_vm3, %v4193_v14, %v4195_v5 }
0x14c2   :  { %3411 = vrot.lane.b32.xlu0 %v5250_v32, %s4753_s0 }
0x14c6   :  { %762 = vbcast.lane.b32.xlu0 %v747_v34, 376  ;;  %v759_v34 = vpop.permute.xlu1 %758 }
0x14c7   :  { %v788_v9 = vmul.f32 %v759_v34, %v5044_v24  ;;  %v789_v23 = vmul.f32 %v759_v34, %v5047_v26 }
0x14c9   :  { %v808_v20 = vmul.f32 1.442695, %v788_v9  ;;  %v810_v47 = vmul.f32 1.442695, %v789_v23 }
0x14ca   :  { %774 = vbcast.lane.b32.xlu0 %v767_v21, 360  ;;  %v771_v53 = vpop.permute.xlu1 %770 }
0x14cb   :  { %v792_v44 = vmul.f32 %v771_v53, %v5050_v27  ;;  %v793_v4 = vmul.f32 %v771_v53, %v5053_v29 }
0x14cd   :  { %v816_v58 = vmul.f32 1.442695, %v792_v44  ;;  %v818_v63 = vmul.f32 1.442695, %v793_v4 }
0x14ce   :  { %782 = vbcast.lane.b32.xlu0 %v767_v21, 376  ;;  %v5265_v7 = vpop.permute.xlu1 %778 }
0x14cf   :  { %v796_v13 = vmul.f32 %v5265_v7, %v5050_v27 }
0x14d1   :  { %v824_v5 = vmul.f32 1.442695, %v796_v13 }
0x14d2   :  { %875 = vrot.lane.b32.xlu0 %v4916_v16, %s4755_s17  ;;  %v873_v8 = vpop.permute.xlu1 %872 }
0x14d3   :  { %v878_v35 = vsel %vm152_vm4, %v4920_v18, %v873_v8 }
0x1523   :  { %v630_v36 = vpop.permute.xlu0 %629 }
0x1524   :  { %v640_v55 = vsel %vm152_vm4, %v4901_v60, %v630_v36  ;;  %v784_v60 = vmul.f32 %v751_v15, %v5044_v24 }
0x1525   :  { %v641_v40 = vsel %vm416_vm5, %v640_v55, %v634_v56 }
0x1526   :  { %v800_v12 = vmul.f32 1.442695, %v784_v60 }
0x1527   :  { %v638_v48 = vpop.permute.xlu0 %637 }
0x1528   :  { %v642_v0 = vsel %vm418_vm6, %v641_v40, %v638_v48  ;;  %4196 = vpow2.f32 %v800_v12 }
0x1529   :  { %643 = vst [vmem:[%s6800_s6] sm:$0x1] %v642_v0  ;;  %4198 = vpow2.f32 %v802_v3 }
0x152a   :  { %4200 = vpow2.f32 %v808_v20 }
0x152b   :  { %v755_v21 = vpop.permute.xlu0 %754  ;;  %4202 = vpow2.f32 %v810_v47 }
0x152c   :  { %v786_v22 = vmul.f32 %v755_v21, %v5044_v24  ;;  %v787_v59 = vmul.f32 %v755_v21, %v5047_v26  ;;  %4204 = vpow2.f32 %v816_v58 }
0x152d   :  { %4206 = vpow2.f32 %v818_v63 }
0x152e   :  { %v804_v15 = vmul.f32 1.442695, %v786_v22  ;;  %v806_v48 = vmul.f32 1.442695, %v787_v59  ;;  %4208 = vpow2.f32 %v824_v5 }
0x1530   :  { %4210 = vpow2.f32 %v804_v15 }
0x1531   :  { %4212 = vpow2.f32 %v806_v48 }
0x1532   :  { %v4197_v44 = vpop.eup %4196 }
0x1533   :  { %v5295_v8 = vpop.eup %4198 }
0x1534   :  { %v5263_v37 = vpop.permute.xlu0 %3411  ;;  %v4201_v47 = vpop.eup %4200 }
0x1538   :  { %v763_v38 = vpop.permute.xlu0 %762 }
0x1539   :  { %v790_v56 = vmul.f32 %v763_v38, %v5044_v24  ;;  %v791_v36 = vmul.f32 %v763_v38, %v5047_v26 }
0x153b   :  { %v812_v53 = vmul.f32 1.442695, %v790_v56  ;;  %v814_v60 = vmul.f32 1.442695, %v791_v36 }
0x153c   :  { %v775_v19 = vpop.permute.xlu0 %774 }
0x153d   :  { %v794_v40 = vmul.f32 %v775_v19, %v5050_v27  ;;  %v795_v0 = vmul.f32 %v775_v19, %v5053_v29  ;;  %4214 = vpow2.f32 %v812_v53  ;;  %v6887_v53 = vld [vmem:[#allocation20_spill] sm:$0xff] }
0x153e   :  { %4216 = vpow2.f32 %v814_v60 }
0x153f   :  { %v820_v23 = vmul.f32 1.442695, %v794_v40  ;;  %v822_v19 = vmul.f32 1.442695, %v795_v0  ;;  %v6886_v0 = vld [vmem:[#allocation19_spill] sm:$0xff] }
0x1540   :  { %v5271_v42 = vpop.permute.xlu0 %782 }
0x1541   :  { %v798_v57 = vmul.f32 %v5271_v42, %v5050_v27  ;;  %4218 = vpow2.f32 %v820_v23 }
0x1542   :  { %4220 = vpow2.f32 %v822_v19 }
0x1543   :  { %v828_v13 = vmul.f32 1.442695, %v798_v57 }
0x1544   :  { %v876_v46 = vpop.permute.xlu0 %875 }
0x1545   :  { %v879_v52 = vsel %vm416_vm5, %v878_v35, %v876_v46  ;;  %v5301_v46 = vpop.eup %4202  ;;  %4222 = vpow2.f32 %v828_v13 }
0x1546   :  { %v880_v49 = vsel %vm418_vm6, %v879_v52, %v4916_v16  ;;  %v4205_v63 = vpop.eup %4204 }
0x1547   :  { %v882_v14 = vcombine.low %v880_v49, %v880_v49  ;;  %v5307_v22 = vpop.eup %4206 }
0x1548   :  { %v4209_v56 = vpop.eup %4208 }
0x1549   :  { %v889_v55 = vrot.slane %v882_v14, %v5030_v11  ;;  %v4211_v15 = vpop.eup %4210 }
0x154a   :  { %v4213_v48 = vpop.eup %4212 }
0x154b   :  { %v890_v34 = vcombine.high %v889_v55, %v889_v55  ;;  %v897_v21 = vrot.slane %v889_v55, %v5030_v11 }
0x154d   :  { %v908_v38 = vrot.slane %v897_v21, %v5009_v62  ;;  %v912_v9 = vrot.slane %v897_v21, %v5015_v1  ;;  %v904_v12 = vrot.slane %v890_v34, %v5030_v11  ;;  %v4215_v21 = vpop.eup %4214 }
0x154e   :  { %v5316_v57 = vpop.eup %4216 }
0x154f   :  { %v925_v3 = vmul.f32 %v908_v38, %v5081_v31  ;;  %v926_v4 = vmul.f32 %v912_v9, %v5086_v28  ;;  %v927_v20 = vmul.f32 %v908_v38, %v5091_v17  ;;  %v928_v35 = vmul.f32 %v912_v9, %v5100_v33  ;;  %v4219_v23 = vpop.eup %4218 }
0x1550   :  { %v916_v58 = vrot.slane %v904_v12, %v5009_v62  ;;  %v929_v52 = vmul.f32 %v908_v38, %v5108_v41  ;;  %v920_v31 = vrot.slane %v904_v12, %v5015_v1  ;;  %v930_v28 = vmul.f32 %v912_v9, %v5115_v43 }
0x1551   :  { %v931_v17 = vmul.f32 %v908_v38, %v5125_v51  ;;  %v941_v49 = vmul.f32 1.442695, %v925_v3  ;;  %v943_v59 = vmul.f32 1.442695, %v926_v4  ;;  %v945_v33 = vmul.f32 1.442695, %v927_v20  ;;  %v4221_v3 = vpop.eup %4220 }
0x1552   :  { %v932_v14 = vmul.f32 %v912_v9, %v5133_v54  ;;  %v947_v5 = vmul.f32 1.442695, %v928_v35  ;;  %v933_v41 = vmul.f32 %v916_v58, %v5142_v2  ;;  %v949_v36 = vmul.f32 1.442695, %v929_v52  ;;  %v4223_v35 = vpop.eup %4222 }
0x1553   :  { %4224 = vpow2.f32 %v941_v49  ;;  %v934_v55 = vmul.f32 %v920_v31, %v5147_v45  ;;  %v951_v43 = vmul.f32 1.442695, %v930_v28  ;;  %v935_v40 = vmul.f32 %v916_v58, %v5157_v25  ;;  %v6888_v45 = vld [vmem:[#allocation21_spill] sm:$0xff] }
0x1554   :  { %4226 = vpow2.f32 %v943_v59  ;;  %v953_v51 = vmul.f32 1.442695, %v931_v17  ;;  %v936_v34 = vmul.f32 %v920_v31, %v6886_v0  ;;  %v955_v54 = vmul.f32 1.442695, %v932_v14 }
0x1555   :  { %4228 = vpow2.f32 %v945_v33  ;;  %v937_v60 = vmul.f32 %v916_v58, %v6887_v53  ;;  %v957_v2 = vmul.f32 1.442695, %v933_v41  ;;  %v938_v38 = vmul.f32 %v920_v31, %v6888_v45 }
0x1556   :  { %4230 = vpow2.f32 %v947_v5  ;;  %v959_v9 = vmul.f32 1.442695, %v934_v55  ;;  %v832_v25 = vadd.f32 %v4211_v15, %v4197_v44  ;;  %v939_v12 = vmul.f32 %v916_v58, %v5183_v10 }
0x1557   :  { %4232 = vpow2.f32 %v949_v36  ;;  %v961_v19 = vmul.f32 1.442695, %v935_v40  ;;  %v940_v4 = vmul.f32 %v920_v31, %v5191_v39  ;;  %v963_v20 = vmul.f32 1.442695, %v936_v34 }
0x1558   :  { %4234 = vpow2.f32 %v951_v43  ;;  %v965_v13 = vmul.f32 1.442695, %v937_v60  ;;  %v797_v52 = vmul.f32 %v5265_v7, %v5053_v29  ;;  %v967_v28 = vmul.f32 1.442695, %v938_v38 }
0x1559   :  { %4236 = vpow2.f32 %v953_v51  ;;  %v833_v49 = vadd.f32 %v4201_v47, %v832_v25  ;;  %v969_v44 = vmul.f32 1.442695, %v939_v12  ;;  %v799_v58 = vmul.f32 %v5271_v42, %v5053_v29 }
0x155a   :  { %4238 = vpow2.f32 %v955_v54  ;;  %v971_v39 = vmul.f32 1.442695, %v940_v4  ;;  %v850_v33 = vadd.f32 %v4219_v23, %v4205_v63  ;;  %v826_v5 = vmul.f32 1.442695, %v797_v52 }
0x155b   :  { %4240 = vpow2.f32 %v957_v2  ;;  %v834_v59 = vadd.f32 %v4215_v21, %v833_v49  ;;  %v830_v55 = vmul.f32 1.442695, %v799_v58  ;;  %v841_v63 = vadd.f32 %v4213_v48, %v5295_v8 }
0x155c   :  { %4242 = vpow2.f32 %v959_v9  ;;  %v851_v40 = vadd.f32 %v4209_v56, %v850_v33 }
0x155d   :  { %v4225_v17 = vpop.eup %4224  ;;  %4244 = vpow2.f32 %v961_v19  ;;  %v835_v42 = vrot.slane %v834_v59, 4  ;;  %v842_v25 = vadd.f32 %v5301_v46, %v841_v63 }
0x155e   :  { %v4227_v10 = vpop.eup %4226  ;;  %4246 = vpow2.f32 %v963_v20  ;;  %v852_v45 = vadd.f32 %v4223_v35, %v851_v40 }
0x155f   :  { %v4229_v31 = vpop.eup %4228  ;;  %4248 = vpow2.f32 %v965_v13  ;;  %v836_v38 = vadd.f32 %v835_v42, %v834_v59  ;;  %v843_v8 = vadd.f32 %v5316_v57, %v842_v25 }
0x1560   :  { %v4231_v14 = vpop.eup %4230  ;;  %4250 = vpow2.f32 %v967_v28  ;;  %v973_v7 = vadd.f32 %v4229_v31, %v4225_v17  ;;  %v859_v17 = vadd.f32 %v4221_v3, %v5307_v22  ;;  %v853_v35 = vrot.slane %v852_v45, 4 }
0x1561   :  { %v4233_v41 = vpop.eup %4232  ;;  %4252 = vpow2.f32 %v969_v44  ;;  %v982_v36 = vadd.f32 %v4231_v14, %v4227_v10  ;;  %v837_v49 = vrot.slane %v836_v38, 2 }
0x1562   :  { %v4235_v47 = vpop.eup %4234  ;;  %4254 = vpow2.f32 %v971_v39  ;;  %v974_v43 = vadd.f32 %v4233_v41, %v973_v7  ;;  %v854_v57 = vadd.f32 %v853_v35, %v852_v45 }
0x1563   :  { %v4237_v15 = vpop.eup %4236  ;;  %v983_v51 = vadd.f32 %v4235_v47, %v982_v36  ;;  %4256 = vpow2.f32 %v826_v5  ;;  %v844_v5 = vrot.slane %v843_v8, 4  ;;  %v838_v41 = vadd.f32 %v837_v49, %v836_v38 }
0x1564   :  { %v4239_v0 = vpop.eup %4238  ;;  %v975_v34 = vadd.f32 %v4237_v15, %v974_v43  ;;  %4258 = vpow2.f32 %v830_v55 }
0x1565   :  { %v4241_v54 = vpop.eup %4240  ;;  %v984_v21 = vadd.f32 %v4239_v0, %v983_v51  ;;  %v839_v42 = vrot.slane %v838_v41, 1  ;;  %v855_v51 = vrot.slane %v854_v57, 2  ;;  %v845_v0 = vadd.f32 %v844_v5, %v843_v8 }
0x1566   :  { %v4243_v53 = vpop.eup %4242  ;;  %v976_v60 = vrot.slane %v975_v34, 4 }
0x1567   :  { %v4245_v2 = vpop.eup %4244  ;;  %v985_v9 = vrot.slane %v984_v21, 4 }
0x1568   :  { %v4247_v23 = vpop.eup %4246  ;;  %v977_v56 = vadd.f32 %v976_v60, %v975_v34  ;;  %v991_v12 = vadd.f32 %v4245_v2, %v4241_v54  ;;  %v856_v60 = vadd.f32 %v855_v51, %v854_v57  ;;  %v846_v2 = vrot.slane %v845_v0, 2 }
0x1569   :  { %v4249_v19 = vpop.eup %4248  ;;  %v986_v4 = vadd.f32 %v985_v9, %v984_v21  ;;  %v1000_v20 = vadd.f32 %v4247_v23, %v4243_v53  ;;  %v840_v53 = vadd.f32 %v839_v42, %v838_v41 }
0x156a   :  { %v4251_v13 = vpop.eup %4250  ;;  %v978_v48 = vrot.slane %v977_v56, 2  ;;  %v992_v52 = vadd.f32 %v4249_v19, %v991_v12  ;;  %v847_v12 = vadd.f32 %v846_v2, %v845_v0 }
0x156b   :  { %v4253_v28 = vpop.eup %4252  ;;  %v1001_v44 = vadd.f32 %v4251_v13, %v1000_v20  ;;  %v987_v46 = vrot.slane %v986_v4, 2  ;;  %v1009_v25 = vmul.f32 %v840_v53, %v5210_v6 }
0x156c   :  { %v4255_v10 = vpop.eup %4254  ;;  %v979_v58 = vadd.f32 %v978_v48, %v977_v56  ;;  %v993_v39 = vadd.f32 %v4253_v28, %v992_v52  ;;  %v857_v56 = vrot.slane %v856_v60, 1  ;;  %v848_v48 = vrot.slane %v847_v12, 1 }
0x156d   :  { %v1002_v31 = vadd.f32 %v4255_v10, %v1001_v44  ;;  %v4257_v59 = vpop.eup %4256  ;;  %v988_v22 = vadd.f32 %v987_v46, %v986_v4 }
0x156e   :  { %v980_v33 = vrot.slane %v979_v58, 1  ;;  %v994_v14 = vrot.slane %v993_v39, 4  ;;  %v860_v7 = vadd.f32 %v4257_v59, %v859_v17  ;;  %v4259_v47 = vpop.eup %4258  ;;  %v858_v8 = vadd.f32 %v857_v56, %v856_v60 }
0x156f   :  { %v1003_v36 = vrot.slane %v1002_v31, 4  ;;  %v989_v34 = vrot.slane %v988_v22, 1  ;;  %v849_v49 = vadd.f32 %v848_v48, %v847_v12  ;;  %v6889_v12 = vld [vmem:[#allocation3_spill] sm:$0xff] }
0x1570   :  { %v981_v55 = vadd.f32 %v980_v33, %v979_v58  ;;  %v995_v43 = vadd.f32 %v994_v14, %v993_v39  ;;  %v861_v40 = vadd.f32 %v4259_v47, %v860_v7  ;;  %v1011_v17 = vmul.f32 %v858_v8, %v5215_v30 }
0x1571   :  { %v1004_v3 = vadd.f32 %v1003_v36, %v1002_v31  ;;  %v990_v9 = vadd.f32 %v989_v34, %v988_v22  ;;  %v1010_v39 = vmul.f32 %v849_v49, %v5219_v50 }
0x1572   :  { %4260 = vrcp.f32 %v981_v55  ;;  %v996_v15 = vrot.slane %v995_v43, 2  ;;  %v862_v45 = vrot.slane %v861_v40, 4 }
0x1573   :  { %v1005_v54 = vrot.slane %v1004_v3, 2 }
0x1574   :  { %v997_v63 = vadd.f32 %v996_v15, %v995_v43  ;;  %v863_v19 = vadd.f32 %v862_v45, %v861_v40 }
0x1575   :  { %v1006_v23 = vadd.f32 %v1005_v54, %v1004_v3 }
0x1576   :  { %v998_v21 = vrot.slane %v997_v63, 1  ;;  %v864_v52 = vrot.slane %v863_v19, 2 }
0x1577   :  { %v1007_v20 = vrot.slane %v1006_v23, 1 }
0x1578   :  { %v999_v38 = vadd.f32 %v998_v21, %v997_v63  ;;  %v865_v35 = vadd.f32 %v864_v52, %v863_v19  ;;  %v1194_v19 = vrot.slane %v6889_v12, %v5009_v62 }
0x1579   :  { %v1008_v28 = vadd.f32 %v1007_v20, %v1006_v23 }
0x157a   :  { %4262 = vrcp.f32 %v999_v38  ;;  %v866_v46 = vrot.slane %v865_v35, 1 }
0x157b   :  { %4264 = vrcp.f32 %v990_v9  ;;  %v1079_v9 = vrot.slane %v4916_v16, 1  ;;  %v3414_v16 = vmul.f32 %v5263_v37, %v5250_v32 }
0x157c   :  { %v4261_v4 = vpop.eup %4260  ;;  %4266 = vrcp.f32 %v1008_v28  ;;  %v867_v59 = vadd.f32 %v866_v46, %v865_v35 }
0x157d   :  { %v1014_v13 = vmul.f32 %v4261_v4, %v1009_v25  ;;  %v1214_v4 = vrot.slane %v6889_v12, %v5015_v1 }
0x157e   :  { %v1012_v14 = vmul.f32 %v867_v59, %v5224_v61 }
0x157f   :  { %1023 = vrot.lane.b32.xlu1 %v1014_v13, %s4755_s17 }
0x1583   :  { %1031 = vrot.lane.b32.xlu1 %v1014_v13, %s4753_s0 }
0x1584   :  { %v4263_v44 = vpop.eup %4262 }
0x1585   :  { %v1018_v10 = vmul.f32 %v4263_v44, %v1011_v17  ;;  %v4265_v58 = vpop.eup %4264 }
0x1586   :  { %v1016_v31 = vmul.f32 %v4265_v58, %v1010_v39  ;;  %v4267_v33 = vpop.eup %4266 }
0x1587   :  { %1025 = vrot.lane.b32.xlu0 %v1018_v10, %s4755_s17  ;;  %1039 = vrot.lane.b32.xlu1 %v1014_v13, %s4754_s3  ;;  %v1020_v5 = vmul.f32 %v4267_v33, %v1012_v14 }
0x158b   :  { %1033 = vrot.lane.b32.xlu0 %v1018_v10, %s4753_s0  ;;  %1051 = vrot.lane.b32.xlu1 %v1016_v31, %s4755_s17 }
0x158f   :  { %1041 = vrot.lane.b32.xlu0 %v1018_v10, %s4754_s3  ;;  %1059 = vrot.lane.b32.xlu1 %v1016_v31, %s4753_s0 }
0x1593   :  { %1053 = vrot.lane.b32.xlu0 %v1020_v5, %s4755_s17  ;;  %1067 = vrot.lane.b32.xlu1 %v1016_v31, %s4754_s3 }
0x1597   :  { %1061 = vrot.lane.b32.xlu0 %v1020_v5, %s4753_s0 }
0x159b   :  { %1069 = vrot.lane.b32.xlu0 %v1020_v5, %s4754_s3 }
0x15f1   :  { %v1024_v7 = vpop.permute.xlu1 %1023 }
0x15f2   :  { %v1029_v57 = vadd.f32 %v1024_v7, %v1014_v13 }
0x15f5   :  { %v1032_v41 = vpop.permute.xlu1 %1031 }
0x15f6   :  { %v1037_v36 = vadd.f32 %v1032_v41, %v1029_v57 }
0x15f9   :  { %v1026_v47 = vpop.permute.xlu0 %1025  ;;  %v1040_v55 = vpop.permute.xlu1 %1039 }
0x15fa   :  { %v1045_v43 = vadd.f32 %v1040_v55, %v1037_v36  ;;  %v1030_v15 = vadd.f32 %v1026_v47, %v1018_v10 }
0x15fc   :  { %v1047_v40 = vadd.f32 %v1045_v43, %v1016_v31 }
0x15fd   :  { %v1034_v22 = vpop.permute.xlu0 %1033  ;;  %v1052_v3 = vpop.permute.xlu1 %1051 }
0x15fe   :  { %v1038_v42 = vadd.f32 %v1034_v22, %v1030_v15  ;;  %v1057_v34 = vadd.f32 %v1052_v3, %v1047_v40  ;;  %v6890_v3 = vld [vmem:[#allocation4_spill] sm:$0xff] }
0x1601   :  { %v1042_v51 = vpop.permute.xlu0 %1041  ;;  %v1060_v0 = vpop.permute.xlu1 %1059 }
0x1602   :  { %v1046_v63 = vadd.f32 %v1042_v51, %v1038_v42  ;;  %v1065_v54 = vadd.f32 %v1060_v0, %v1057_v34 }
0x1604   :  { %v1048_v60 = vadd.f32 %v1046_v63, %v1020_v5 }
0x1605   :  { %v1054_v21 = vpop.permute.xlu0 %1053  ;;  %v1068_v53 = vpop.permute.xlu1 %1067 }
0x1606   :  { %v1073_v2 = vadd.f32 %v1068_v53, %v1065_v54  ;;  %v1058_v38 = vadd.f32 %v1054_v21, %v1048_v60 }
0x1608   :  { %1076 = vrot.lane.b32.xlu1 %v1073_v2, %s4754_s3 }
0x1609   :  { %v1062_v45 = vpop.permute.xlu0 %1061 }
0x160a   :  { %v1066_v23 = vadd.f32 %v1062_v45, %v1058_v38 }
0x160c   :  { %1080 = vrot.lane.b32.xlu1 %v1079_v9, %s4755_s17 }
0x160d   :  { %v1070_v25 = vpop.permute.xlu0 %1069 }
0x160e   :  { %v1074_v56 = vadd.f32 %v1070_v25, %v1066_v23 }
0x1610   :  { %1084 = vrot.lane.b32.xlu0 %v1074_v56, %s4755_s17  ;;  %1197 = vbcast.lane.b32.xlu1 %v1194_v19, 352 }
0x1614   :  { %1201 = vbcast.lane.b32.xlu0 %v1194_v19, 360  ;;  %1205 = vbcast.lane.b32.xlu1 %v1194_v19, 368 }
0x1618   :  { %1209 = vbcast.lane.b32.xlu0 %v1194_v19, 376  ;;  %1217 = vbcast.lane.b32.xlu1 %v1214_v4, 352 }
0x161c   :  { %1221 = vbcast.lane.b32.xlu0 %v1214_v4, 360  ;;  %3416 = vrot.lane.b32.xlu1 %v3414_v16, %s4754_s3 }
0x1620   :  { %1229 = vbcast.lane.b32.xlu0 %v1214_v4, 376  ;;  %1225 = vbcast.lane.b32.xlu1 %v1214_v4, 368 }
0x1624   :  { %1322 = vrot.lane.b32.xlu0 %v6889_v12, %s4755_s17  ;;  %1319 = vrot.lane.b32.xlu1 %v6889_v12, %s4753_s0 }
0x167a   :  { %v1077_v20 = vpop.permute.xlu1 %1076 }
0x167b   :  { %v1087_v8 = vsel %vm152_vm4, %v4920_v18, %v1077_v20 }
0x167e   :  { %v1081_v13 = vpop.permute.xlu1 %1080 }
0x167f   :  { %v1088_v48 = vsel %vm416_vm5, %v1087_v8, %v1081_v13 }
0x1682   :  { %v1085_v52 = vpop.permute.xlu0 %1084  ;;  %v1198_v37 = vpop.permute.xlu1 %1197 }
0x1683   :  { %v1089_v28 = vsel %vm418_vm6, %v1088_v48, %v1085_v52  ;;  %v1231_v39 = vmul.f32 %v1198_v37, %v5044_v24  ;;  %v1232_v18 = vmul.f32 %v1198_v37, %v5047_v26 }
0x1684   :  { %1090 = vst [vmem:[%s6800_s6 + $0x1] sm:$0x1] %v1089_v28 }
0x1685   :  { %v1247_v14 = vmul.f32 1.442695, %v1231_v39  ;;  %v1249_v5 = vmul.f32 1.442695, %v1232_v18  ;;  %v5416_v39 = vld [vmem:[%s6799_s5 + $0x10] sm:$0xff] }
0x1686   :  { %v1202_v17 = vpop.permute.xlu0 %1201  ;;  %v1206_v49 = vpop.permute.xlu1 %1205 }
0x1687   :  { %v1233_v46 = vmul.f32 %v1202_v17, %v5044_v24  ;;  %v1234_v33 = vmul.f32 %v1202_v17, %v5047_v26  ;;  %v1235_v7 = vmul.f32 %v1206_v49, %v5044_v24  ;;  %v1236_v41 = vmul.f32 %v1206_v49, %v5047_v26  ;;  %v5404_v49 = vld [vmem:[%s6799_s5] sm:$0xff] }
0x1688   :  { %4268 = vpow2.f32 %v1247_v14 }
0x1689   :  { %v1251_v57 = vmul.f32 1.442695, %v1233_v46  ;;  %v1253_v55 = vmul.f32 1.442695, %v1234_v33  ;;  %4270 = vpow2.f32 %v1249_v5  ;;  %v1255_v40 = vmul.f32 1.442695, %v1235_v7 }
0x168a   :  { %v1210_v35 = vpop.permute.xlu0 %1209  ;;  %v1218_v44 = vpop.permute.xlu1 %1217  ;;  %v1257_v51 = vmul.f32 1.442695, %v1236_v41  ;;  %v5422_v33 = vld [vmem:[%s6799_s5 + $0x18] sm:$0xff]  ;;  %v5431_v41 = vld [vmem:[%s6799_s5 + $0x20] sm:$0xff] }
0x168b   :  { %v1237_v36 = vmul.f32 %v1210_v35, %v5044_v24  ;;  %v1238_v43 = vmul.f32 %v1210_v35, %v5047_v26  ;;  %v1239_v0 = vmul.f32 %v1218_v44, %v5050_v27  ;;  %v1240_v63 = vmul.f32 %v1218_v44, %v5053_v29  ;;  %v5410_v44 = vld [vmem:[%s6799_s5 + $0x8] sm:$0xff] }
0x168c   :  { %4272 = vpow2.f32 %v1251_v57 }
0x168d   :  { %v1259_v54 = vmul.f32 1.442695, %v1237_v36  ;;  %4274 = vpow2.f32 %v1253_v55  ;;  %v1261_v53 = vmul.f32 1.442695, %v1238_v43  ;;  %v1263_v38 = vmul.f32 1.442695, %v1239_v0 }
0x168e   :  { %v1222_v10 = vpop.permute.xlu0 %1221  ;;  %v5367_v58 = vpop.permute.xlu1 %3416  ;;  %4276 = vpow2.f32 %v1255_v40  ;;  %v1265_v9 = vmul.f32 1.442695, %v1240_v63  ;;  %v5438_v55 = vld [vmem:[%s6799_s5 + $0x28] sm:$0xff] }
0x168f   :  { %v1241_v60 = vmul.f32 %v1222_v10, %v5050_v27  ;;  %v1242_v2 = vmul.f32 %v1222_v10, %v5053_v29  ;;  %4278 = vpow2.f32 %v1257_v51 }
0x1690   :  { %4280 = vpow2.f32 %v1259_v54 }
0x1691   :  { %4282 = vpow2.f32 %v1261_v53  ;;  %v1267_v4 = vmul.f32 1.442695, %v1241_v60  ;;  %v1269_v16 = vmul.f32 1.442695, %v1242_v2  ;;  %v5460_v60 = vld [vmem:[%s6799_s5 + $0x40] sm:$0xff] }
0x1692   :  { %v5372_v31 = vpop.permute.xlu0 %1229  ;;  %v1226_v59 = vpop.permute.xlu1 %1225  ;;  %4284 = vpow2.f32 %v1263_v38  ;;  %v5466_v38 = vld [vmem:[%s6799_s5 + $0x48] sm:$0xff] }
0x1693   :  { %v1245_v23 = vmul.f32 %v5372_v31, %v5050_v27  ;;  %v1243_v25 = vmul.f32 %v1226_v59, %v5050_v27  ;;  %v1244_v20 = vmul.f32 %v1226_v59, %v5053_v29  ;;  %v5396_v48 = vpop.eup %4268  ;;  %4286 = vpow2.f32 %v1265_v9 }
0x1694   :  { %v5399_v28 = vpop.eup %4270  ;;  %4288 = vpow2.f32 %v1267_v4 }
0x1695   :  { %v1275_v52 = vmul.f32 1.442695, %v1245_v23  ;;  %v1271_v17 = vmul.f32 1.442695, %v1243_v25  ;;  %4290 = vpow2.f32 %v1269_v16  ;;  %v1273_v59 = vmul.f32 1.442695, %v1244_v20 }
0x1696   :  { %v1320_v47 = vpop.permute.xlu1 %1319  ;;  %v1323_v22 = vpop.permute.xlu0 %1322  ;;  %v5480_v20 = vld [vmem:[%s6799_s5 + $0x58] sm:$0xff] }
0x1697   :  { %v1325_v15 = vsel %vm152_vm4, %v6890_v3, %v1320_v47  ;;  %v4273_v46 = vpop.eup %4272  ;;  %4292 = vpow2.f32 %v1275_v52 }
0x1698   :  { %v1326_v42 = vsel %vm416_vm5, %v1325_v15, %v1323_v22  ;;  %v5425_v5 = vpop.eup %4274  ;;  %4294 = vpow2.f32 %v1271_v17  ;;  %v5446_v15 = vld [vmem:[%s6799_s5 + $0x30] sm:$0xff] }
0x1699   :  { %v1327_v34 = vsel %vm418_vm6, %v1326_v42, %v6889_v12  ;;  %v4277_v36 = vpop.eup %4276  ;;  %4296 = vpow2.f32 %v1273_v59 }
0x169a   :  { %v1329_v21 = vcombine.low %v1327_v34, %v1327_v34  ;;  %v5441_v22 = vpop.eup %4278  ;;  %v5452_v34 = vld [vmem:[%s6799_s5 + $0x38] sm:$0xff] }
0x169b   :  { %v4281_v63 = vpop.eup %4280 }
0x169c   :  { %v1336_v45 = vrot.slane %v1329_v21, %v5030_v11  ;;  %v5455_v53 = vpop.eup %4282 }
0x169d   :  { %v4285_v25 = vpop.eup %4284 }
0x169e   :  { %v1337_v56 = vcombine.high %v1336_v45, %v1336_v45  ;;  %v1344_v19 = vrot.slane %v1336_v45, %v5030_v11  ;;  %v5475_v16 = vpop.eup %4286 }
0x169f   :  { %v4289_v52 = vpop.eup %4288 }
0x16a0   :  { %v1355_v13 = vrot.slane %v1344_v19, %v5009_v62  ;;  %v1359_v8 = vrot.slane %v1344_v19, %v5015_v1  ;;  %v1351_v37 = vrot.slane %v1337_v56, %v5030_v11  ;;  %v5472_v56 = vld [vmem:[%s6799_s5 + $0x50] sm:$0xff] }
0x16a2   :  { %v1372_v35 = vmul.f32 %v5404_v49, %v1355_v13  ;;  %v1373_v10 = vmul.f32 %v5410_v44, %v1359_v8  ;;  %v1374_v18 = vmul.f32 %v5416_v39, %v1355_v13  ;;  %v1375_v14 = vmul.f32 %v5422_v33, %v1359_v8 }
0x16a3   :  { %v1363_v7 = vrot.slane %v1351_v37, %v5009_v62  ;;  %v1376_v57 = vmul.f32 %v5431_v41, %v1355_v13  ;;  %v1367_v47 = vrot.slane %v1351_v37, %v5015_v1  ;;  %v1377_v43 = vmul.f32 %v5438_v55, %v1359_v8  ;;  %v5486_v37 = vld [vmem:[%s6799_s5 + $0x60] sm:$0xff] }
0x16a4   :  { %v1378_v40 = vmul.f32 %v5446_v15, %v1355_v13  ;;  %v1388_v42 = vmul.f32 1.442695, %v1372_v35  ;;  %v1390_v51 = vmul.f32 1.442695, %v1373_v10  ;;  %v1392_v0 = vmul.f32 1.442695, %v1374_v18  ;;  %v5489_v10 = vpop.eup %4290 }
0x16a5   :  { %v1379_v54 = vmul.f32 %v5452_v34, %v1359_v8  ;;  %v1394_v21 = vmul.f32 1.442695, %v1375_v14  ;;  %v1380_v2 = vmul.f32 %v5460_v60, %v1363_v7  ;;  %v1396_v45 = vmul.f32 1.442695, %v1376_v57  ;;  %v5494_v18 = vld [vmem:[%s6799_s5 + $0x68] sm:$0xff]  ;;  %v4293_v57 = vpop.eup %4292 }
0x16a6   :  { %4298 = vpow2.f32 %v1388_v42  ;;  %v1381_v9 = vmul.f32 %v5466_v38, %v1367_v47  ;;  %v1398_v23 = vmul.f32 1.442695, %v1377_v43  ;;  %v1382_v19 = vmul.f32 %v5472_v56, %v1363_v7  ;;  %6891 = vst [vmem:[#allocation19_spill] sm:$0xff] %v5494_v18 }
0x16a7   :  { %4300 = vpow2.f32 %v1390_v51  ;;  %v1400_v4 = vmul.f32 1.442695, %v1378_v40  ;;  %v1383_v13 = vmul.f32 %v5480_v20, %v1367_v47  ;;  %v1402_v8 = vmul.f32 1.442695, %v1379_v54  ;;  %v5501_v40 = vld [vmem:[%s6799_s5 + $0x70] sm:$0xff]  ;;  %v5507_v54 = vld [vmem:[%s6799_s5 + $0x78] sm:$0xff] }
0x16a8   :  { %4302 = vpow2.f32 %v1392_v0  ;;  %v1384_v17 = vmul.f32 %v5486_v37, %v1363_v7  ;;  %v1404_v35 = vmul.f32 1.442695, %v1380_v2  ;;  %v1385_v59 = vmul.f32 %v5494_v18, %v1367_v47  ;;  %6892 = vst [vmem:[#allocation20_spill] sm:$0xff] %v5501_v40  ;;  %v4295_v0 = vpop.eup %4294 }
0x16a9   :  { %4304 = vpow2.f32 %v1394_v21  ;;  %v1406_v14 = vmul.f32 1.442695, %v1381_v9  ;;  %v1279_v43 = vadd.f32 %v4273_v46, %v5396_v48  ;;  %v1386_v42 = vmul.f32 %v5501_v40, %v1363_v7 }
0x16aa   :  { %4306 = vpow2.f32 %v1396_v45  ;;  %v1408_v51 = vmul.f32 1.442695, %v1382_v19  ;;  %v1387_v21 = vmul.f32 %v5507_v54, %v1367_v47  ;;  %v1410_v2 = vmul.f32 1.442695, %v1383_v13  ;;  %v5510_v45 = vpop.eup %4296 }
0x16ab   :  { %4308 = vpow2.f32 %v1398_v23  ;;  %v1280_v48 = vadd.f32 %v4277_v36, %v1279_v43  ;;  %v1412_v46 = vmul.f32 1.442695, %v1384_v17  ;;  %v1414_v9 = vmul.f32 1.442695, %v1385_v59 }
0x16ac   :  { %4310 = vpow2.f32 %v1400_v4  ;;  %v1416_v23 = vmul.f32 1.442695, %v1386_v42  ;;  %v1418_v4 = vmul.f32 1.442695, %v1387_v21  ;;  %v1246_v47 = vmul.f32 %v5372_v31, %v5053_v29 }
0x16ad   :  { %4312 = vpow2.f32 %v1402_v8  ;;  %v1281_v40 = vadd.f32 %v4281_v63, %v1280_v48  ;;  %v1297_v8 = vadd.f32 %v4289_v52, %v4285_v25  ;;  %v1288_v63 = vadd.f32 %v5425_v5, %v5399_v28 }
0x16ae   :  { %4314 = vpow2.f32 %v1404_v35 }
0x16af   :  { %4316 = vpow2.f32 %v1406_v14  ;;  %v1298_v43 = vadd.f32 %v4295_v0, %v1297_v8  ;;  %v1282_v42 = vrot.slane %v1281_v40, 4  ;;  %v1289_v25 = vadd.f32 %v5441_v22, %v1288_v63 }
0x16b0   :  { %v4299_v7 = vpop.eup %4298  ;;  %4318 = vpow2.f32 %v1408_v51 }
0x16b1   :  { %v4301_v19 = vpop.eup %4300  ;;  %4320 = vpow2.f32 %v1410_v2  ;;  %v1277_v2 = vmul.f32 1.442695, %v1246_v47 }
0x16b2   :  { %v4303_v27 = vpop.eup %4302  ;;  %4322 = vpow2.f32 %v1412_v46 }
0x16b3   :  { %v4305_v18 = vpop.eup %4304  ;;  %4324 = vpow2.f32 %v1414_v9  ;;  %v1420_v36 = vadd.f32 %v4303_v27, %v4299_v7  ;;  %v1283_v9 = vadd.f32 %v1282_v42, %v1281_v40  ;;  %v1299_v7 = vadd.f32 %v4293_v57, %v1298_v43 }
0x16b4   :  { %v4307_v13 = vpop.eup %4306  ;;  %4326 = vpow2.f32 %v1416_v23  ;;  %v1429_v17 = vadd.f32 %v4305_v18, %v4301_v19  ;;  %v1306_v42 = vadd.f32 %v5489_v10, %v5475_v16 }
0x16b5   :  { %v4309_v35 = vpop.eup %4308  ;;  %4328 = vpow2.f32 %v1418_v4  ;;  %v1421_v59 = vadd.f32 %v4307_v13, %v1420_v36  ;;  %v1300_v22 = vrot.slane %v1299_v7, 4 }
0x16b6   :  { %v4311_v14 = vpop.eup %4310  ;;  %v1430_v51 = vadd.f32 %v4309_v35, %v1429_v17  ;;  %4330 = vpow2.f32 %v1277_v2  ;;  %v1290_v17 = vadd.f32 %v5455_v53, %v1289_v25 }
0x16b7   :  { %v4313_v21 = vpop.eup %4312  ;;  %v1422_v48 = vadd.f32 %v4311_v14, %v1421_v59  ;;  %v1284_v59 = vrot.slane %v1283_v9, 2 }
0x16b8   :  { %v4315_v31 = vpop.eup %4314  ;;  %v1431_v46 = vadd.f32 %v4313_v21, %v1430_v51 }
0x16b9   :  { %v4317_v27 = vpop.eup %4316  ;;  %v1423_v52 = vrot.slane %v1422_v48, 4 }
0x16ba   :  { %v4319_v18 = vpop.eup %4318  ;;  %v1432_v23 = vrot.slane %v1431_v46, 4 }
0x16bb   :  { %v4321_v19 = vpop.eup %4320  ;;  %v1424_v0 = vadd.f32 %v1423_v52, %v1422_v48  ;;  %v1438_v4 = vadd.f32 %v4319_v18, %v4315_v31  ;;  %v1291_v48 = vrot.slane %v1290_v17, 4  ;;  %v1307_v31 = vadd.f32 %v5510_v45, %v1306_v42 }
0x16bc   :  { %v4323_v36 = vpop.eup %4322  ;;  %v1433_v13 = vadd.f32 %v1432_v23, %v1431_v46  ;;  %v1447_v8 = vadd.f32 %v4321_v19, %v4317_v27  ;;  %v1285_v46 = vadd.f32 %v1284_v59, %v1283_v9  ;;  %v1301_v27 = vadd.f32 %v1300_v22, %v1299_v7 }
0x16bd   :  { %v4325_v28 = vpop.eup %4324  ;;  %v1425_v5 = vrot.slane %v1424_v0, 2  ;;  %v1439_v47 = vadd.f32 %v4323_v36, %v1438_v4 }
0x16be   :  { %v4327_v35 = vpop.eup %4326  ;;  %v1448_v14 = vadd.f32 %v4325_v28, %v1447_v8  ;;  %v1434_v43 = vrot.slane %v1433_v13, 2  ;;  %v1286_v4 = vrot.slane %v1285_v46, 1  ;;  %v1302_v36 = vrot.slane %v1301_v27, 2 }
0x16bf   :  { %v4329_v51 = vpop.eup %4328  ;;  %v1426_v40 = vadd.f32 %v1425_v5, %v1424_v0  ;;  %v1440_v57 = vadd.f32 %v4327_v35, %v1439_v47  ;;  %v1292_v8 = vadd.f32 %v1291_v48, %v1290_v17 }
0x16c0   :  { %v1449_v21 = vadd.f32 %v4329_v51, %v1448_v14  ;;  %v1435_v18 = vadd.f32 %v1434_v43, %v1433_v13  ;;  %v4331_v19 = vpop.eup %4330  ;;  %v1287_v35 = vadd.f32 %v1286_v4, %v1285_v46  ;;  %v1303_v45 = vadd.f32 %v1302_v36, %v1301_v27 }
0x16c1   :  { %v1427_v63 = vrot.slane %v1426_v40, 1  ;;  %v1441_v2 = vrot.slane %v1440_v57, 4  ;;  %v1308_v16 = vadd.f32 %v4331_v19, %v1307_v31  ;;  %v1293_v9 = vrot.slane %v1292_v8, 2 }
0x16c2   :  { %v1450_v53 = vrot.slane %v1449_v21, 4  ;;  %v1436_v28 = vrot.slane %v1435_v18, 1  ;;  %v1456_v13 = vmul.f32 %v1287_v35, %v5210_v6  ;;  %v1304_v51 = vrot.slane %v1303_v45, 1 }
0x16c3   :  { %v1428_v25 = vadd.f32 %v1427_v63, %v1426_v40  ;;  %v1442_v52 = vadd.f32 %v1441_v2, %v1440_v57  ;;  %v1309_v7 = vrot.slane %v1308_v16, 4  ;;  %v1294_v40 = vadd.f32 %v1293_v9, %v1292_v8 }
0x16c4   :  { %v1451_v23 = vadd.f32 %v1450_v53, %v1449_v21  ;;  %v1437_v22 = vadd.f32 %v1436_v28, %v1435_v18  ;;  %v1305_v21 = vadd.f32 %v1304_v51, %v1303_v45  ;;  %v6896_v45 = vld [vmem:[#allocation7_spill] sm:$0xff] }
0x16c5   :  { %4332 = vrcp.f32 %v1428_v25  ;;  %v1443_v0 = vrot.slane %v1442_v52, 2  ;;  %v1310_v57 = vadd.f32 %v1309_v7, %v1308_v16  ;;  %v1295_v63 = vrot.slane %v1294_v40, 1 }
0x16c6   :  { %v1452_v5 = vrot.slane %v1451_v23, 2  ;;  %v1458_v31 = vmul.f32 %v1305_v21, %v5215_v30  ;;  %v1526_v16 = vrot.slane %v6889_v12, 1  ;;  %v2088_v9 = vrot.slane %v6896_v45, %v5009_v62 }
0x16c7   :  { %v1444_v10 = vadd.f32 %v1443_v0, %v1442_v52  ;;  %v1311_v2 = vrot.slane %v1310_v57, 2  ;;  %v1296_v46 = vadd.f32 %v1295_v63, %v1294_v40 }
0x16c8   :  { %v1453_v14 = vadd.f32 %v1452_v5, %v1451_v23  ;;  %v6894_v5 = vld [vmem:[#allocation9_spill] sm:$0xff] }
0x16c9   :  { %v1445_v47 = vrot.slane %v1444_v10, 1  ;;  %v1312_v27 = vadd.f32 %v1311_v2, %v1310_v57  ;;  %v1457_v18 = vmul.f32 %v1296_v46, %v5219_v50  ;;  %v5569_v7 = vrot.slane %v6894_v5, %v5009_v62 }
0x16ca   :  { %v1454_v17 = vrot.slane %v1453_v14, 1  ;;  %v2555_v51 = vrot.slane %v6894_v5, %v5015_v1 }
0x16cb   :  { %v1446_v59 = vadd.f32 %v1445_v47, %v1444_v10  ;;  %v1313_v23 = vrot.slane %v1312_v27, 1  ;;  %v6893_v10 = vld [vmem:[#allocation5_spill] sm:$0xff]  ;;  %v6895_v47 = vld [vmem:[#allocation11_spill] sm:$0xff] }
0x16cc   :  { %v1455_v48 = vadd.f32 %v1454_v17, %v1453_v14  ;;  %v5551_v28 = vrot.slane %v6893_v10, %v5009_v62  ;;  %v3409_v12 = vmul.f32 %v5250_v32, %v6895_v47 }
0x16cd   :  { %4334 = vrcp.f32 %v1446_v59  ;;  %v1314_v0 = vadd.f32 %v1313_v23, %v1312_v27  ;;  %v6897_v59 = vld [vmem:[#allocation14_spill] sm:$0xff] }
0x16ce   :  { %4336 = vrcp.f32 %v1437_v22  ;;  %v3419_v35 = vadd.f32 %v5367_v58, %v3409_v12  ;;  %v2982_v22 = vrot.slane %v6897_v59, %v5009_v62  ;;  %v1661_v58 = vrot.slane %v6893_v10, %v5015_v1 }
0x16cf   :  { %v4333_v43 = vpop.eup %4332  ;;  %4338 = vrcp.f32 %v1455_v48  ;;  %v1459_v36 = vmul.f32 %v1314_v0, %v5224_v61  ;;  %v5586_v40 = vrot.slane %v6897_v59, %v5015_v1 }
0x16d0   :  { %v5522_v42 = vmul.f32 %v4333_v43, %v1456_v13  ;;  %4340 = vtanh.f32 %v3419_v35  ;;  %v5579_v13 = vrot.slane %v6896_v45, %v5015_v1 }
0x16d2   :  { %1470 = vrot.lane.b32.xlu1 %v5522_v42, %s4755_s17 }
0x16d6   :  { %1478 = vrot.lane.b32.xlu1 %v5522_v42, %s4753_s0 }
0x16d7   :  { %v4335_v53 = vpop.eup %4334 }
0x16d8   :  { %v5529_v25 = vmul.f32 %v4335_v53, %v1458_v31  ;;  %v4337_v52 = vpop.eup %4336 }
0x16d9   :  { %v1463_v19 = vmul.f32 %v4337_v52, %v1457_v18  ;;  %v4339_v4 = vpop.eup %4338 }
0x16da   :  { %1472 = vrot.lane.b32.xlu0 %v5529_v25, %s4755_s17  ;;  %1486 = vrot.lane.b32.xlu1 %v5522_v42, %s4754_s3  ;;  %v1467_v8 = vmul.f32 %v4339_v4, %v1459_v36  ;;  %v4341_v14 = vpop.eup %4340 }
0x16de   :  { %1480 = vrot.lane.b32.xlu0 %v5529_v25, %s4753_s0  ;;  %1498 = vrot.lane.b32.xlu1 %v1463_v19, %s4755_s17 }
0x16e2   :  { %1488 = vrot.lane.b32.xlu0 %v5529_v25, %s4754_s3  ;;  %1506 = vrot.lane.b32.xlu1 %v1463_v19, %s4753_s0 }
0x16e6   :  { %1500 = vrot.lane.b32.xlu0 %v1467_v8, %s4755_s17  ;;  %1514 = vrot.lane.b32.xlu1 %v1463_v19, %s4754_s3 }
0x16ea   :  { %1508 = vrot.lane.b32.xlu0 %v1467_v8, %s4753_s0 }
0x16ee   :  { %1516 = vrot.lane.b32.xlu0 %v1467_v8, %s4754_s3 }
0x16f2   :  { %1527 = vrot.lane.b32.xlu0 %v1526_v16, %s4755_s17 }
0x16f6   :  { %1644 = vbcast.lane.b32.xlu0 %v5551_v28, 352 }
0x16fa   :  { %1766 = vrot.lane.b32.xlu0 %v6893_v10, %s4753_s0 }
0x16fe   :  { %2660 = vrot.lane.b32.xlu0 %v6894_v5, %s4753_s0 }
0x1702   :  { %1769 = vrot.lane.b32.xlu0 %v6893_v10, %s4755_s17 }
0x1706   :  { %2663 = vrot.lane.b32.xlu0 %v6894_v5, %s4755_s17 }
0x170a   :  { %2095 = vbcast.lane.b32.xlu0 %v2088_v9, 360 }
0x170e   :  { %2542 = vbcast.lane.b32.xlu0 %v5569_v7, 360 }
0x1712   :  { %2989 = vbcast.lane.b32.xlu0 %v2982_v22, 360 }
0x1716   :  { %3422 = vrot.lane.b32.xlu0 %v4341_v14, %s4753_s0 }
0x171a   :  { %1664 = vbcast.lane.b32.xlu0 %v1661_v58, 352 }
0x171e   :  { %2099 = vbcast.lane.b32.xlu0 %v2088_v9, 368 }
0x1722   :  { %2115 = vbcast.lane.b32.xlu0 %v5579_v13, 360 }
0x1726   :  { %2558 = vbcast.lane.b32.xlu0 %v2555_v51, 352 }
0x172a   :  { %2993 = vbcast.lane.b32.xlu0 %v2982_v22, 368 }
0x172e   :  { %3009 = vbcast.lane.b32.xlu0 %v5586_v40, 360 }
0x1732   :  { %1656 = vbcast.lane.b32.xlu0 %v5551_v28, 376 }
0x1736   :  { %2103 = vbcast.lane.b32.xlu0 %v2088_v9, 376 }
0x173a   :  { %2550 = vbcast.lane.b32.xlu0 %v5569_v7, 376 }
0x173e   :  { %2997 = vbcast.lane.b32.xlu0 %v2982_v22, 376 }
0x1742   :  { %1676 = vbcast.lane.b32.xlu0 %v1661_v58, 376 }
0x1744   :  { %v1471_v57 = vpop.permute.xlu1 %1470 }
0x1745   :  { %v1476_v17 = vadd.f32 %v1471_v57, %v5522_v42 }
0x1746   :  { %2570 = vbcast.lane.b32.xlu0 %v2555_v51, 376 }
0x1748   :  { %v1479_v43 = vpop.permute.xlu1 %1478 }
0x1749   :  { %v1484_v21 = vadd.f32 %v1479_v43, %v1476_v17 }
0x174c   :  { %v1473_v63 = vpop.permute.xlu0 %1472  ;;  %v1487_v2 = vpop.permute.xlu1 %1486 }
0x174d   :  { %v1492_v48 = vadd.f32 %v1487_v2, %v1484_v21  ;;  %v1477_v27 = vadd.f32 %v1473_v63, %v5529_v25  ;;  %v6898_v2 = vld [vmem:[#allocation6_spill] sm:$0xff] }
0x174f   :  { %v1494_v53 = vadd.f32 %v1492_v48, %v1463_v19 }
0x1750   :  { %v1481_v31 = vpop.permute.xlu0 %1480  ;;  %v1499_v46 = vpop.permute.xlu1 %1498 }
0x1751   :  { %v1485_v52 = vadd.f32 %v1481_v31, %v1477_v27  ;;  %v1504_v4 = vadd.f32 %v1499_v46, %v1494_v53  ;;  %v6899_v53 = vld [vmem:[#allocation10_spill] sm:$0xff] }
0x1754   :  { %v1489_v18 = vpop.permute.xlu0 %1488  ;;  %v1507_v23 = vpop.permute.xlu1 %1506 }
0x1755   :  { %v1493_v0 = vadd.f32 %v1489_v18, %v1485_v52  ;;  %v1512_v36 = vadd.f32 %v1507_v23, %v1504_v4 }
0x1757   :  { %v1495_v12 = vadd.f32 %v1493_v0, %v1467_v8 }
0x1758   :  { %v1501_v16 = vpop.permute.xlu0 %1500  ;;  %v1515_v47 = vpop.permute.xlu1 %1514 }
0x1759   :  { %v1520_v35 = vadd.f32 %v1515_v47, %v1512_v36  ;;  %v1505_v14 = vadd.f32 %v1501_v16, %v1495_v12 }
0x175b   :  { %1523 = vrot.lane.b32.xlu1 %v1520_v35, %s4754_s3 }
0x175c   :  { %v1509_v42 = vpop.permute.xlu0 %1508 }
0x175d   :  { %v1513_v57 = vadd.f32 %v1509_v42, %v1505_v14 }
0x1760   :  { %v1517_v43 = vpop.permute.xlu0 %1516 }
0x1761   :  { %v1521_v17 = vadd.f32 %v1517_v43, %v1513_v57 }
0x1763   :  { %1531 = vrot.lane.b32.xlu1 %v1521_v17, %s4755_s17 }
0x1764   :  { %v5606_v25 = vpop.permute.xlu0 %1527 }
0x1767   :  { %1648 = vbcast.lane.b32.xlu1 %v5551_v28, 360 }
0x1768   :  { %v1645_v19 = vpop.permute.xlu0 %1644 }
0x1769   :  { %v1678_v4 = vmul.f32 %v1645_v19, %v5044_v24  ;;  %v1679_v16 = vmul.f32 %v1645_v19, %v5047_v26 }
0x176b   :  { %2213 = vrot.lane.b32.xlu1 %v6896_v45, %s4753_s0  ;;  %v1694_v42 = vmul.f32 1.442695, %v1678_v4  ;;  %v1696_v43 = vmul.f32 1.442695, %v1679_v16 }
0x176c   :  { %v1767_v8 = vpop.permute.xlu0 %1766 }
0x176d   :  { %4342 = vpow2.f32 %v1694_v42 }
0x176e   :  { %4344 = vpow2.f32 %v1696_v43 }
0x176f   :  { %3107 = vrot.lane.b32.xlu1 %v6897_v59, %s4753_s0 }
0x1770   :  { %v2661_v21 = vpop.permute.xlu0 %2660 }
0x1773   :  { %2216 = vrot.lane.b32.xlu1 %v6896_v45, %s4755_s17 }
0x1774   :  { %v1770_v63 = vpop.permute.xlu0 %1769 }
0x1777   :  { %3110 = vrot.lane.b32.xlu1 %v6897_v59, %s4755_s17 }
0x177b   :  { %2091 = vbcast.lane.b32.xlu1 %v2088_v9, 352  ;;  %v2664_v9 = vpop.permute.xlu0 %2663 }
0x177f   :  { %2538 = vbcast.lane.b32.xlu1 %v5569_v7, 352 }
0x1783   :  { %2985 = vbcast.lane.b32.xlu1 %v2982_v22, 352 }
0x1787   :  { %1652 = vbcast.lane.b32.xlu1 %v5551_v28, 368  ;;  %v5612_v28 = vpop.permute.xlu0 %2095 }
0x178b   :  { %1668 = vbcast.lane.b32.xlu1 %v1661_v58, 360  ;;  %v5615_v22 = vpop.permute.xlu0 %2542 }
0x178f   :  { %2111 = vbcast.lane.b32.xlu1 %v5579_v13, 352  ;;  %v5624_v31 = vpop.permute.xlu0 %2989 }
0x1793   :  { %2546 = vbcast.lane.b32.xlu1 %v5569_v7, 368  ;;  %v1772_v7 = vsel %vm152_vm4, %v6898_v2, %v1767_v8  ;;  %v5627_v27 = vpop.permute.xlu0 %3422 }
0x1794   :  { %v1773_v48 = vsel %vm416_vm5, %v1772_v7, %v1770_v63 }
0x1797   :  { %2562 = vbcast.lane.b32.xlu1 %v2555_v51, 360  ;;  %v5635_v23 = vpop.permute.xlu0 %1664 }
0x179b   :  { %3005 = vbcast.lane.b32.xlu1 %v5586_v40, 352  ;;  %v5643_v57 = vpop.permute.xlu0 %2099 }
0x179f   :  { %1672 = vbcast.lane.b32.xlu1 %v1661_v58, 368  ;;  %v1774_v58 = vsel %vm418_vm6, %v1773_v48, %v6893_v10  ;;  %v5658_v4 = vpop.permute.xlu0 %2115 }
0x17a3   :  { %2119 = vbcast.lane.b32.xlu1 %v5579_v13, 368  ;;  %v5674_v61 = vpop.permute.xlu0 %2558 }
0x17a7   :  { %2566 = vbcast.lane.b32.xlu1 %v2555_v51, 368  ;;  %v1776_v51 = vcombine.low %v1774_v58, %v1774_v58 }
0x17a9   :  { %v1783_v46 = vrot.slane %v1776_v51, %v5030_v11 }
0x17ab   :  { %3013 = vbcast.lane.b32.xlu1 %v5586_v40, 368  ;;  %v1791_v18 = vrot.slane %v1783_v46, %v5030_v11  ;;  %v1784_v0 = vcombine.high %v1783_v46, %v1783_v46 }
0x17ad   :  { %v1802_v36 = vrot.slane %v1791_v18, %v5009_v62  ;;  %v1806_v47 = vrot.slane %v1791_v18, %v5015_v1  ;;  %v1798_v35 = vrot.slane %v1784_v0, %v5030_v11  ;;  %v2127_v0 = vmul.f32 %v5612_v28, %v5044_v24 }
0x17af   :  { %2123 = vbcast.lane.b32.xlu1 %v5579_v13, 376  ;;  %v2666_v13 = vsel %vm152_vm4, %v6899_v53, %v2661_v21  ;;  %v1819_v14 = vmul.f32 %v5404_v49, %v1802_v36  ;;  %v1820_v17 = vmul.f32 %v5410_v44, %v1806_v47  ;;  %v1821_v21 = vmul.f32 %v5416_v39, %v1802_v36 }
0x17b0   :  { %v2667_v52 = vsel %vm416_vm5, %v2666_v13, %v2664_v9  ;;  %v1810_v63 = vrot.slane %v1798_v35, %v5009_v62  ;;  %v1814_v19 = vrot.slane %v1798_v35, %v5015_v1  ;;  %v1822_v9 = vmul.f32 %v5422_v33, %v1806_v47 }
0x17b1   :  { %v1823_v7 = vmul.f32 %v5431_v41, %v1802_v36  ;;  %v1835_v48 = vmul.f32 1.442695, %v1819_v14  ;;  %v1824_v51 = vmul.f32 %v5438_v55, %v1806_v47  ;;  %v1837_v46 = vmul.f32 1.442695, %v1820_v17 }
0x17b2   :  { %v1826_v18 = vmul.f32 %v5452_v34, %v1806_v47  ;;  %v1827_v16 = vmul.f32 %v5460_v60, %v1810_v63  ;;  %v1841_v35 = vmul.f32 1.442695, %v1822_v9  ;;  %v1829_v14 = vmul.f32 %v5472_v56, %v1810_v63 }
0x17b3   :  { %3017 = vbcast.lane.b32.xlu1 %v5586_v40, 376  ;;  %v2668_v40 = vsel %vm418_vm6, %v2667_v52, %v6894_v5  ;;  %v1825_v52 = vmul.f32 %v5446_v15, %v1802_v36  ;;  %4346 = vpow2.f32 %v1835_v48  ;;  %v1843_v36 = vmul.f32 1.442695, %v1823_v7  ;;  %v6901_v7 = vld [vmem:[#allocation20_spill] sm:$0xff] }
0x17b4   :  { %v2670_v12 = vcombine.low %v2668_v40, %v2668_v40  ;;  %v1839_v40 = vmul.f32 1.442695, %v1821_v21  ;;  %v1830_v47 = vmul.f32 %v5480_v20, %v1814_v19  ;;  %4348 = vpow2.f32 %v1837_v46 }
0x17b5   :  { %v1845_v17 = vmul.f32 1.442695, %v1824_v51  ;;  %v1831_v53 = vmul.f32 %v5486_v37, %v1810_v63  ;;  %v1847_v2 = vmul.f32 1.442695, %v1825_v52  ;;  %v1849_v48 = vmul.f32 1.442695, %v1826_v18 }
0x17b6   :  { %v2677_v8 = vrot.slane %v2670_v12, %v5030_v11  ;;  %v1828_v12 = vmul.f32 %v5466_v38, %v1814_v19  ;;  %4350 = vpow2.f32 %v1839_v40  ;;  %v1833_v10 = vmul.f32 %v6901_v7, %v1810_v63  ;;  %v5681_v40 = vpop.eup %4342 }
0x17b7   :  { %4352 = vpow2.f32 %v1841_v35  ;;  %v1851_v51 = vmul.f32 1.442695, %v1827_v16  ;;  %v1855_v52 = vmul.f32 1.442695, %v1829_v14 }
0x17b8   :  { %v2685_v13 = vrot.slane %v2677_v8, %v5030_v11  ;;  %v2678_v43 = vcombine.high %v2677_v8, %v2677_v8  ;;  %4354 = vpow2.f32 %v1843_v36  ;;  %v1857_v36 = vmul.f32 1.442695, %v1830_v47 }
0x17b9   :  { %4356 = vpow2.f32 %v1845_v17  ;;  %v1863_v14 = vmul.f32 1.442695, %v1833_v10  ;;  %v5692_v17 = vmul.f32 1.442695, %v2127_v0  ;;  %v2574_v0 = vmul.f32 %v5615_v22, %v5044_v24 }
0x17ba   :  { %v2696_v21 = vrot.slane %v2685_v13, %v5009_v62  ;;  %v2692_v46 = vrot.slane %v2678_v43, %v5030_v11  ;;  %4358 = vpow2.f32 %v1847_v2  ;;  %v2700_v63 = vrot.slane %v2685_v13, %v5015_v1 }
0x17bb   :  { %4360 = vpow2.f32 %v1849_v48  ;;  %v1859_v43 = vmul.f32 1.442695, %v1831_v53  ;;  %v5696_v48 = vpop.permute.xlu0 %2993 }
0x17bc   :  { %v2713_v18 = vmul.f32 %v5404_v49, %v2696_v21  ;;  %v2715_v16 = vmul.f32 %v5416_v39, %v2696_v21  ;;  %4362 = vpow2.f32 %v1851_v51  ;;  %v2704_v2 = vrot.slane %v2692_v46, %v5009_v62 }
0x17bd   :  { %4364 = vpow2.f32 %v1855_v52  ;;  %v2714_v47 = vmul.f32 %v5410_v44, %v2700_v63  ;;  %v2717_v10 = vmul.f32 %v5431_v41, %v2696_v21  ;;  %v2719_v41 = vmul.f32 %v5446_v15, %v2696_v21 }
0x17be   :  { %v2729_v13 = vmul.f32 1.442695, %v2713_v18  ;;  %v2733_v53 = vmul.f32 1.442695, %v2715_v16  ;;  %v2721_v44 = vmul.f32 %v5460_v60, %v2704_v2  ;;  %v2718_v18 = vmul.f32 %v5438_v55, %v2700_v63 }
0x17bf   :  { %v2725_v55 = vmul.f32 %v5486_v37, %v2704_v2  ;;  %v2737_v15 = vmul.f32 1.442695, %v2717_v10  ;;  %v2741_v10 = vmul.f32 1.442695, %v2719_v41 }
0x17c0   :  { %v2739_v37 = vmul.f32 1.442695, %v2718_v18 }
0x17cd   :  { %v1524_v58 = vpop.permute.xlu1 %1523 }
0x17ce   :  { %v1534_v42 = vsel %vm152_vm4, %v6890_v3, %v1524_v58  ;;  %v6900_v3 = vld [vmem:[#allocation19_spill] sm:$0xff] }
0x17cf   :  { %v1535_v9 = vsel %vm416_vm5, %v1534_v42, %v5606_v25  ;;  %v1832_v58 = vmul.f32 %v6900_v3, %v1814_v19  ;;  %v1834_v25 = vmul.f32 %v5507_v54, %v1814_v19  ;;  %v5687_v42 = vpop.eup %4344  ;;  %v2128_v19 = vmul.f32 %v5612_v28, %v5047_v26 }
0x17d0   :  { %v4347_v39 = vpop.eup %4346 }
0x17d1   :  { %v1861_v49 = vmul.f32 1.442695, %v1832_v58  ;;  %v5700_v58 = vpop.eup %4348 }
0x17d2   :  { %v4351_v51 = vpop.eup %4350 }
0x17d3   :  { %v5711_v52 = vpop.eup %4352 }
0x17d4   :  { %v4355_v16 = vpop.eup %4354 }
0x17d5   :  { %v1532_v5 = vpop.permute.xlu1 %1531 }
0x17d6   :  { %v1536_v8 = vsel %vm418_vm6, %v1535_v9, %v1532_v5  ;;  %v1853_v5 = vmul.f32 1.442695, %v1828_v12  ;;  %v1865_v12 = vmul.f32 1.442695, %v1834_v25  ;;  %v2708_v9 = vrot.slane %v2692_v46, %v5015_v1 }
0x17d7   :  { %1537 = vst [vmem:[%s6800_s6 + $0x2] sm:$0x1] %v1536_v8  ;;  %v5703_v8 = vmul.f32 1.442695, %v2128_v19  ;;  %v2716_v46 = vmul.f32 %v5422_v33, %v2700_v63  ;;  %v2575_v25 = vmul.f32 %v5615_v22, %v5047_v26  ;;  %v2731_v33 = vmul.f32 1.442695, %v2714_v47  ;;  %v5720_v19 = vpop.eup %4356 }
0x17d8   :  { %4366 = vpow2.f32 %v1853_v5  ;;  %v2723_v5 = vmul.f32 %v5472_v56, %v2704_v2  ;;  %v2724_v22 = vmul.f32 %v5480_v20, %v2708_v9  ;;  %v5724_v21 = vpop.eup %4358  ;;  %v2726_v56 = vmul.f32 %v6900_v3, %v2708_v9 }
0x17d9   :  { %v5685_v35 = vpop.permute.xlu1 %1648  ;;  %4368 = vpow2.f32 %v1857_v36  ;;  %v2720_v36 = vmul.f32 %v5452_v34, %v2700_v63  ;;  %v2727_v34 = vmul.f32 %v6901_v7, %v2704_v2  ;;  %v5728_v63 = vpop.permute.xlu0 %3009  ;;  %v2735_v47 = vmul.f32 1.442695, %v2716_v46 }
0x17da   :  { %4370 = vpow2.f32 %v1859_v43  ;;  %v2722_v43 = vmul.f32 %v5466_v38, %v2708_v9  ;;  %v2745_v38 = vmul.f32 1.442695, %v2721_v44  ;;  %v2749_v20 = vmul.f32 1.442695, %v2723_v5 }
0x17db   :  { %4372 = vpow2.f32 %v2729_v13  ;;  %v5730_v13 = vpop.eup %4360  ;;  %v2743_v50 = vmul.f32 1.442695, %v2720_v36  ;;  %v2751_v2 = vmul.f32 1.442695, %v2724_v22  ;;  %v3021_v44 = vmul.f32 %v5624_v31, %v5044_v24 }
0x17dc   :  { %4374 = vpow2.f32 %v2733_v53  ;;  %v4363_v53 = vpop.eup %4362  ;;  %v2747_v7 = vmul.f32 1.442695, %v2722_v43  ;;  %v2755_v18 = vmul.f32 1.442695, %v2726_v56  ;;  %v2757_v41 = vmul.f32 1.442695, %v2727_v34 }
0x17dd   :  { %v5698_v28 = vpop.permute.xlu1 %2213  ;;  %4376 = vpow2.f32 %v1861_v49  ;;  %v2728_v49 = vmul.f32 %v5507_v54, %v2708_v9  ;;  %v4365_v3 = vpop.eup %4364  ;;  %v2753_v54 = vmul.f32 1.442695, %v2725_v55  ;;  %v1867_v9 = vadd.f32 %v4351_v51, %v4347_v39 }
0x17de   :  { %4378 = vpow2.f32 %v1863_v14  ;;  %v5743_v43 = vmul.f32 1.442695, %v2574_v0  ;;  %v5751_v39 = vmul.f32 1.442695, %v2575_v25  ;;  %v5753_v51 = vmul.f32 1.442695, %v3021_v44 }
0x17df   :  { %4380 = vpow2.f32 %v1865_v12  ;;  %v3022_v12 = vmul.f32 %v5624_v31, %v5047_v26  ;;  %v2759_v5 = vmul.f32 1.442695, %v2728_v49  ;;  %v1687_v56 = vmul.f32 %v5635_v23, %v5053_v29 }
0x17e0   :  { %4382 = vpow2.f32 %v2731_v33  ;;  %v6902_v33 = vld [vmem:[#allocation18_spill] sm:$0xff]  ;;  %v2129_v49 = vmul.f32 %v5643_v57, %v5044_v24  ;;  %v2130_v25 = vmul.f32 %v5643_v57, %v5047_v26 }
0x17e1   :  { %v5718_v60 = vpop.permute.xlu1 %3107  ;;  %4384 = vpow2.f32 %v2737_v15  ;;  %v1686_v22 = vmul.f32 %v5635_v23, %v6902_v33  ;;  %v5747_v15 = vpop.permute.xlu0 %1656  ;;  %v5757_v0 = vmul.f32 1.442695, %v3022_v12  ;;  %v1876_v23 = vadd.f32 %v5711_v52, %v5700_v58 }
0x17e2   :  { %v5737_v30 = vpop.eup %4366  ;;  %4386 = vpow2.f32 %v2745_v38  ;;  %v1885_v38 = vadd.f32 %v4365_v3, %v4363_v53  ;;  %v2135_v53 = vmul.f32 %v5658_v4, %v6902_v33  ;;  %v2136_v3 = vmul.f32 %v5658_v4, %v5053_v29 }
0x17e3   :  { %v5741_v46 = vpop.eup %4368  ;;  %4388 = vpow2.f32 %v2749_v20  ;;  %v2580_v57 = vmul.f32 %v5674_v61, %v6902_v33  ;;  %v2581_v12 = vmul.f32 %v5674_v61, %v5053_v29 }
0x17e4   :  { %v4371_v36 = vpop.eup %4370  ;;  %4390 = vpow2.f32 %v2735_v47  ;;  %v1868_v47 = vadd.f32 %v4355_v16, %v1867_v9  ;;  %v2149_v9 = vmul.f32 1.442695, %v2129_v49  ;;  %v5789_v61 = vmul.f32 1.442695, %v2136_v3 }
0x17e5   :  { %v5733_v14 = vpop.permute.xlu1 %2216  ;;  %v4373_v31 = vpop.eup %4372  ;;  %4392 = vpow2.f32 %v2739_v37  ;;  %v1886_v44 = vadd.f32 %v4371_v36, %v1885_v38  ;;  %v5784_v36 = vmul.f32 1.442695, %v2130_v25  ;;  %v1877_v38 = vadd.f32 %v5720_v19, %v1876_v23 }
0x17e6   :  { %v4375_v34 = vpop.eup %4374  ;;  %4394 = vpow2.f32 %v2741_v10  ;;  %v5769_v10 = vmul.f32 1.442695, %v1686_v22  ;;  %v5781_v22 = vpop.permute.xlu0 %2103  ;;  %v1869_v4 = vadd.f32 %v5724_v21, %v1868_v47  ;;  %v5795_v21 = vmul.f32 1.442695, %v2580_v57 }
0x17e7   :  { %v5761_v20 = vpop.eup %4376  ;;  %4396 = vpow2.f32 %v2743_v50  ;;  %v2761_v58 = vadd.f32 %v4375_v34, %v4373_v31  ;;  %v3024_v19 = vmul.f32 %v5696_v48, %v5047_v26  ;;  %v1878_v23 = vadd.f32 %v5730_v13, %v1877_v38 }
0x17e8   :  { %v4379_v37 = vpop.eup %4378  ;;  %4398 = vpow2.f32 %v2747_v7  ;;  %v1712_v7 = vmul.f32 1.442695, %v1687_v56  ;;  %v1870_v25 = vrot.slane %v1869_v4, 4 }
0x17e9   :  { %v5749_v55 = vpop.permute.xlu1 %3110  ;;  %v5775_v50 = vpop.eup %4380  ;;  %4400 = vpow2.f32 %v2753_v54  ;;  %v5786_v54 = vmul.f32 1.442695, %v2135_v53  ;;  %v1887_v56 = vadd.f32 %v4379_v37, %v1886_v44 }
0x17ea   :  { %v4383_v52 = vpop.eup %4382  ;;  %4402 = vpow2.f32 %v2751_v2  ;;  %v3023_v2 = vmul.f32 %v5696_v48, %v5044_v24  ;;  %v5813_v48 = vpop.permute.xlu0 %2550 }
0x17eb   :  { %v4385_v6 = vpop.eup %4384  ;;  %4404 = vpow2.f32 %v2755_v18  ;;  %v5797_v18 = vmul.f32 1.442695, %v2581_v12  ;;  %v1888_v44 = vrot.slane %v1887_v56, 4 }
0x17ec   :  { %4406 = vpow2.f32 %v2757_v41  ;;  %v2762_v49 = vadd.f32 %v4385_v6, %v2761_v58  ;;  %v3029_v41 = vmul.f32 %v5728_v63, %v6902_v33  ;;  %v1894_v6 = vadd.f32 %v5741_v46, %v5737_v30 }
0x17ed   :  { %v5773_v16 = vpop.permute.xlu1 %2091  ;;  %4408 = vpow2.f32 %v2759_v5  ;;  %v3030_v5 = vmul.f32 %v5728_v63, %v5053_v29  ;;  %v1684_v63 = vmul.f32 %v5747_v15, %v5044_v24  ;;  %v3045_v46 = vmul.f32 1.442695, %v3024_v19 }
0x17ee   :  { %6903 = vst [vmem:[#allocation21_spill] sm:$0xff] %v5773_v16  ;;  %v4387_v16 = vpop.eup %4386  ;;  %4410 = vpow2.f32 %v5692_v17  ;;  %v5811_v17 = vmul.f32 1.442695, %v3023_v2  ;;  %v1871_v58 = vadd.f32 %v1870_v25, %v1869_v4 }
0x17ef   :  { %v4389_v34 = vpop.eup %4388  ;;  %4412 = vpow2.f32 %v5703_v8  ;;  %v3057_v2 = vmul.f32 1.442695, %v3030_v5  ;;  %v1706_v4 = vmul.f32 1.442695, %v1684_v63  ;;  %v2998_v5 = vpop.permute.xlu0 %2997 }
0x17f0   :  { %v4391_v47 = vpop.eup %4390  ;;  %4414 = vpow2.f32 %v5743_v43  ;;  %v2779_v57 = vadd.f32 %v4389_v34, %v4387_v16  ;;  %v3055_v43 = vmul.f32 1.442695, %v3029_v41  ;;  %v1879_v16 = vrot.slane %v1878_v23, 4 }
0x17f1   :  { %v5793_v31 = vpop.permute.xlu1 %2538  ;;  %v4393_v53 = vpop.eup %4392  ;;  %4416 = vpow2.f32 %v5751_v39  ;;  %v2770_v12 = vadd.f32 %v4391_v47, %v4383_v52  ;;  %v1895_v34 = vadd.f32 %v5761_v20, %v1894_v6  ;;  %v1685_v52 = vmul.f32 %v5747_v15, %v5047_v26 }
0x17f2   :  { %v4395_v37 = vpop.eup %4394  ;;  %4418 = vpow2.f32 %v5753_v51  ;;  %v2131_v20 = vmul.f32 %v5781_v22, %v5044_v24  ;;  %v1872_v15 = vrot.slane %v1871_v58, 2 }
0x17f3   :  { %v4397_v8 = vpop.eup %4396  ;;  %v2763_v13 = vadd.f32 %v4395_v37, %v2762_v49  ;;  %4420 = vpow2.f32 %v5757_v0  ;;  %v1889_v49 = vadd.f32 %v1888_v44, %v1887_v56  ;;  %v2771_v41 = vadd.f32 %v4393_v53, %v2770_v12 }
0x17f4   :  { %v5820_v30 = vpop.eup %4398  ;;  %4422 = vpow2.f32 %v5769_v10  ;;  %v2132_v10 = vmul.f32 %v5781_v22, %v5047_v26  ;;  %v1880_v37 = vadd.f32 %v1879_v16, %v1878_v23  ;;  %v1896_v53 = vadd.f32 %v5775_v50, %v1895_v34 }
0x17f5   :  { %v5815_v3 = vpop.permute.xlu1 %2985  ;;  %6904 = vst [vmem:[#allocation3_spill] sm:$0xff] %v5820_v30  ;;  %v4401_v38 = vpop.eup %4400  ;;  %4424 = vpow2.f32 %v1712_v7  ;;  %v2764_v0 = vrot.slane %v2763_v13, 4  ;;  %v6908_v7 = vld [vmem:[#allocation8_spill] sm:$0xff]  ;;  %v1890_v44 = vrot.slane %v1889_v49, 2  ;;  %v2153_v50 = vmul.f32 1.442695, %v2131_v20 }
0x17f6   :  { %v5825_v39 = vpop.eup %4402  ;;  %v2780_v47 = vadd.f32 %v4401_v38, %v2779_v57  ;;  %4426 = vpow2.f32 %v2149_v9  ;;  %v2219_v6 = vsel %vm152_vm4, %v6908_v7, %v5698_v28  ;;  %v2772_v38 = vadd.f32 %v4397_v8, %v2771_v41 }
0x17f7   :  { %6905 = vst [vmem:[#allocation4_spill] sm:$0xff] %v5825_v39  ;;  %v5830_v51 = vpop.eup %4404  ;;  %4428 = vpow2.f32 %v5784_v36  ;;  %v2220_v22 = vsel %vm416_vm5, %v2219_v6, %v5733_v14  ;;  %v1708_v36 = vmul.f32 1.442695, %v1685_v52  ;;  %v2765_v12 = vadd.f32 %v2764_v0, %v2763_v13  ;;  %v1677_v52 = vpop.permute.xlu0 %1676 }
0x17f8   :  { %6906 = vst [vmem:[#allocation11_spill] sm:$0xff] %v5830_v51  ;;  %v4407_v25 = vpop.eup %4406  ;;  %4430 = vpow2.f32 %v5786_v54  ;;  %v2155_v23 = vmul.f32 1.442695, %v2132_v10  ;;  %v5858_v54 = vadd.f32 %v1872_v15, %v1871_v58  ;;  %v1881_v34 = vrot.slane %v1880_v37, 2 }
0x17f9   :  { %v5832_v19 = vpop.permute.xlu1 %1652  ;;  %v5838_v56 = vpop.eup %4408  ;;  %v2781_v57 = vadd.f32 %v4407_v25, %v2780_v47  ;;  %4432 = vpow2.f32 %v5789_v61  ;;  %v2221_v61 = vsel %vm418_vm6, %v2220_v22, %v6896_v45  ;;  %v1897_v13 = vrot.slane %v1896_v53, 4 }
0x17fa   :  { %6907 = vst [vmem:[#allocation19_spill] sm:$0xff] %v5838_v56  ;;  %v5845_v9 = vpop.eup %4410  ;;  %4434 = vpow2.f32 %v5795_v21  ;;  %v2578_v21 = vmul.f32 %v5813_v48, %v5044_v24  ;;  %v5870_v47 = vadd.f32 %v1890_v44, %v1889_v49  ;;  %v2766_v41 = vrot.slane %v2765_v12, 2 }
0x17fb   :  { %6909 = vst [vmem:[#allocation20_spill] sm:$0xff] %v5845_v9  ;;  %v5850_v63 = vpop.eup %4412  ;;  %4436 = vpow2.f32 %v5797_v18  ;;  %v2782_v58 = vrot.slane %v2781_v57, 4  ;;  %v2579_v18 = vmul.f32 %v5813_v48, %v5047_v26  ;;  %v2773_v25 = vrot.slane %v2772_v38, 4 }
0x17fc   :  { %6910 = vst [vmem:[#allocation26_spill] sm:$0xff] %v5850_v63  ;;  %v5853_v28 = vpop.eup %4414  ;;  %4438 = vpow2.f32 %v5811_v17  ;;  %v3025_v17 = vmul.f32 %v2998_v5, %v5044_v24  ;;  %v2223_v10 = vcombine.low %v2221_v61, %v2221_v61  ;;  %v3026_v49 = vmul.f32 %v2998_v5, %v5047_v26 }
0x17fd   :  { %v5856_v16 = vpop.permute.xlu1 %1668  ;;  %v5860_v14 = vpop.eup %4416  ;;  %4440 = vpow2.f32 %v3045_v46  ;;  %v5883_v22 = vadd.f32 %v1881_v34, %v1880_v37  ;;  %v1898_v46 = vadd.f32 %v1897_v13, %v1896_v53  ;;  %v2600_v48 = vmul.f32 1.442695, %v2578_v21 }
0x17fe   :  { %6911 = vst [vmem:[#allocation27_spill] sm:$0xff] %v5860_v14  ;;  %v5865_v8 = vpop.eup %4418  ;;  %4442 = vpow2.f32 %v3055_v43  ;;  %v1692_v7 = vmul.f32 %v1677_v52, %v6902_v33  ;;  %v2783_v45 = vadd.f32 %v2782_v58, %v2781_v57  ;;  %v2602_v15 = vmul.f32 1.442695, %v2579_v18  ;;  %v2571_v34 = vpop.permute.xlu0 %2570 }
0x17ff   :  { %6912 = vst [vmem:[#allocation28_spill] sm:$0xff] %v5865_v8  ;;  %v5872_v0 = vpop.eup %4420  ;;  %4444 = vpow2.f32 %v3057_v2  ;;  %v1680_v2 = vmul.f32 %v5685_v35, %v5044_v24  ;;  %v2774_v5 = vadd.f32 %v2773_v25, %v2772_v38  ;;  %v3047_v53 = vmul.f32 1.442695, %v3025_v17  ;;  %v6107_v8 = vld [vmem:[%s6799_s5 + $0x68] sm:$0xff] }
0x1800   :  { %6913 = vst [vmem:[#allocation29_spill] sm:$0xff] %v5872_v0  ;;  %v5876_v20 = vpop.eup %4422  ;;  %4446 = vpow2.f32 %v1706_v4  ;;  %v1693_v4 = vmul.f32 %v1677_v52, %v5053_v29  ;;  %v5898_v13 = vrot.slane %v2223_v10, %v5030_v11  ;;  %v3049_v57 = vmul.f32 1.442695, %v3026_v49 }
0x1801   :  { %v5880_v6 = vpop.eup %4424  ;;  %v5888_v43 = vpop.permute.xlu1 %2111  ;;  %4448 = vpow2.f32 %v1708_v36  ;;  %v1681_v36 = vmul.f32 %v5685_v35, %v5047_v26  ;;  %v1899_v58 = vrot.slane %v1898_v46, 2  ;;  %v1722_v38 = vmul.f32 1.442695, %v1692_v7 }
0x1802   :  { %6914 = vst [vmem:[#allocation30_spill] sm:$0xff] %v5880_v6  ;;  %v5885_v44 = vpop.eup %4426  ;;  %4450 = vpow2.f32 %v2153_v50  ;;  %v2767_v50 = vadd.f32 %v2766_v41, %v2765_v12  ;;  %v2784_v25 = vrot.slane %v2783_v45, 2  ;;  %v2586_v52 = vmul.f32 %v2571_v34, %v6902_v33 }
0x1803   :  { %6915 = vst [vmem:[#allocation31_spill] sm:$0xff] %v5885_v44  ;;  %v5890_v61 = vpop.eup %4428  ;;  %4452 = vpow2.f32 %v2155_v23  ;;  %v1698_v10 = vmul.f32 1.442695, %v1680_v2  ;;  %v2775_v56 = vrot.slane %v2774_v5, 2  ;;  %v1724_v23 = vmul.f32 1.442695, %v1693_v4 }
0x1804   :  { %6916 = vst [vmem:[#allocation32_spill] sm:$0xff] %v5890_v61  ;;  %v5894_v37 = vpop.eup %4430  ;;  %4454 = vpow2.f32 %v2600_v48  ;;  %v2587_v35 = vmul.f32 %v2571_v34, %v5053_v29  ;;  %v2238_v49 = vrot.slane %v5898_v13, %v5030_v11  ;;  %v1700_v12 = vmul.f32 1.442695, %v1681_v36 }
0x1805   :  { %6917 = vst [vmem:[#allocation33_spill] sm:$0xff] %v5894_v37  ;;  %v5900_v21 = vpop.eup %4432  ;;  %4456 = vpow2.f32 %v2602_v15  ;;  %v5914_v48 = vpop.permute.xlu1 %2546  ;;  %v1892_v41 = vrot.slane %v5870_v47, 1  ;;  %v1900_v15 = vadd.f32 %v1899_v58, %v1898_v46  ;;  %v1883_v34 = vrot.slane %v5883_v22, 1 }
0x1806   :  { %6918 = vst [vmem:[#allocation34_spill] sm:$0xff] %v5900_v21  ;;  %v5904_v18 = vpop.eup %4434  ;;  %4458 = vpow2.f32 %v3047_v53  ;;  %v6924_v53 = vld [vmem:[#allocation15_spill] sm:$0xff]  ;;  %v2616_v39 = vmul.f32 1.442695, %v2586_v52  ;;  %v2776_v36 = vadd.f32 %v2775_v56, %v2774_v5  ;;  %v2618_v46 = vmul.f32 1.442695, %v2587_v35 }
0x1807   :  { %6919 = vst [vmem:[#allocation35_spill] sm:$0xff] %v5904_v18  ;;  %v5906_v17 = vpop.eup %4436  ;;  %4460 = vpow2.f32 %v3049_v57  ;;  %v3113_v4 = vsel %vm152_vm4, %v6924_v53, %v5718_v60  ;;  %v2249_v58 = vrot.slane %v2238_v49, %v5009_v62  ;;  %v1901_v52 = vrot.slane %v1900_v15, 1 }
0x1808   :  { %6920 = vst [vmem:[#allocation36_spill] sm:$0xff] %v5906_v17  ;;  %v5909_v21 = vpop.eup %4438  ;;  %4462 = vpow2.f32 %v1722_v38  ;;  %v2785_v17 = vadd.f32 %v2784_v25, %v2783_v45  ;;  %v3114_v57 = vsel %vm416_vm5, %v3113_v4, %v5749_v55  ;;  %v2768_v38 = vrot.slane %v2767_v50, 1 }
0x1809   :  { %6921 = vst [vmem:[#allocation37_spill] sm:$0xff] %v5909_v21  ;;  %v5916_v7 = vpop.eup %4440  ;;  %4464 = vpow2.f32 %v1698_v10  ;;  %v6926_v45 = vrot.slane %v5858_v54, 1  ;;  %v1893_v25 = vadd.f32 %v1892_v41, %v5870_v47  ;;  %v2231_v55 = vcombine.high %v5898_v13, %v5898_v13  ;;  %v5959_v13 = vld [vmem:[%s6799_s5] sm:$0xff] }
0x180a   :  { %6922 = vst [vmem:[#allocation38_spill] sm:$0xff] %v5916_v7  ;;  %v5919_v2 = vpop.eup %4442  ;;  %4466 = vpow2.f32 %v1724_v23  ;;  %v2253_v56 = vrot.slane %v2238_v49, %v5015_v1  ;;  %v3115_v5 = vsel %vm418_vm6, %v3114_v57, %v6897_v59  ;;  %v5945_v23 = vpop.permute.xlu1 %2562  ;;  %v2786_v35 = vrot.slane %v2785_v17, 1 }
0x180b   :  { %6923 = vst [vmem:[#allocation39_spill] sm:$0xff] %v5919_v2  ;;  %v5925_v51 = vpop.eup %4444  ;;  %4468 = vpow2.f32 %v1700_v12  ;;  %v1875_v60 = vadd.f32 %v6926_v45, %v5858_v54  ;;  %6928 = vst [vmem:[#allocation42_spill] sm:$0xff] %v5945_v23  ;;  %v5951_v54 = vmul.f32 %v5627_v27, %v5250_v32  ;;  %v1884_v47 = vadd.f32 %v1883_v34, %v5883_v22  ;;  %v5972_v34 = vld [vmem:[%s6799_s5 + $0x8] sm:$0xff] }
0x180c   :  { %6925 = vst [vmem:[#allocation40_spill] sm:$0xff] %v5925_v51  ;;  %v5929_v30 = vpop.eup %4446  ;;  %4470 = vpow2.f32 %v2616_v39  ;;  %v2777_v41 = vrot.slane %v2776_v36, 1  ;;  %v2266_v49 = vmul.f32 %v5959_v13, %v2249_v58  ;;  %v2769_v57 = vadd.f32 %v2768_v38, %v2767_v50 }
0x180d   :  { %v5932_v7 = vpop.eup %4448  ;;  %6930 = vst [vmem:[#allocation44_spill] sm:$0xff] %v5951_v54  ;;  %4472 = vpow2.f32 %v2618_v46  ;;  %v3117_v53 = vcombine.low %v3115_v5, %v3115_v5  ;;  %v1682_v32 = vmul.f32 %v5832_v19, %v5044_v24  ;;  %v1902_v27 = vadd.f32 %v1901_v52, %v1900_v15 }
0x180e   :  { %v5938_v10 = vpop.eup %4450  ;;  %4474 = vrcp.f32 %v1875_v60  ;;  %v2245_v22 = vrot.slane %v2231_v55, %v5030_v11  ;;  %v2267_v46 = vmul.f32 %v5972_v34, %v2253_v56  ;;  %v2787_v50 = vadd.f32 %v2786_v35, %v2785_v17  ;;  %v5980_v60 = vld [vmem:[%s6799_s5 + $0x10] sm:$0xff]  ;;  %v5992_v17 = vld [vmem:[%s6799_s5 + $0x18] sm:$0xff]  ;;  %v5995_v59 = vpop.permute.xlu1 %3005 }
0x180f   :  { %6927 = vst [vmem:[#allocation41_spill] sm:$0xff] %v5938_v10  ;;  %v5947_v12 = vpop.eup %4452  ;;  %4476 = vrcp.f32 %v1893_v25  ;;  %v2268_v15 = vmul.f32 %v5980_v60, %v2249_v58  ;;  %v5985_v52 = vrot.slane %v5951_v54, %v5009_v62  ;;  %v2778_v55 = vadd.f32 %v2777_v41, %v2776_v36  ;;  %6936 = vst [vmem:[#allocation50_spill] sm:$0xff] %v5995_v59  ;;  %v6004_v36 = vld [vmem:[%s6799_s5 + $0x20] sm:$0xff]  ;;  %v6121_v59 = vld [vmem:[%s6799_s5 + $0x78] sm:$0xff] }
0x1810   :  { %6929 = vst [vmem:[#allocation43_spill] sm:$0xff] %v5947_v12  ;;  %v5954_v4 = vpop.eup %4454  ;;  %4478 = vrcp.f32 %v1884_v47  ;;  %v2269_v25 = vmul.f32 %v5992_v17, %v2253_v56  ;;  %v2282_v35 = vmul.f32 1.442695, %v2266_v49  ;;  %v5999_v51 = vrot.slane %v5951_v54, %v5015_v1 }
0x1811   :  { %6931 = vst [vmem:[#allocation45_spill] sm:$0xff] %v5954_v4  ;;  %v5962_v45 = vpop.eup %4456  ;;  %6935 = vst [vmem:[#allocation49_spill] sm:$0xff] %v5985_v52  ;;  %4480 = vrcp.f32 %v2769_v57  ;;  %v2270_v47 = vmul.f32 %v6004_v36, %v2249_v58  ;;  %v6008_v41 = vrot.slane %v3117_v53, %v5030_v11  ;;  %v1702_v12 = vmul.f32 1.442695, %v1682_v32  ;;  %v6016_v57 = vld [vmem:[%s6799_s5 + $0x28] sm:$0xff]  ;;  %v6023_v53 = vld [vmem:[%s6799_s5 + $0x30] sm:$0xff] }
0x1812   :  { %6932 = vst [vmem:[#allocation46_spill] sm:$0xff] %v5962_v45  ;;  %v5966_v39 = vpop.eup %4458  ;;  %6937 = vst [vmem:[#allocation51_spill] sm:$0xff] %v5999_v51  ;;  %4482 = vrcp.f32 %v1902_v27  ;;  %v2257_v0 = vrot.slane %v2245_v22, %v5009_v62  ;;  %v2271_v61 = vmul.f32 %v6016_v57, %v2253_v56  ;;  %v2284_v45 = vmul.f32 1.442695, %v2267_v46  ;;  %v6032_v46 = vld [vmem:[%s6799_s5 + $0x38] sm:$0xff] }
0x1813   :  { %6933 = vst [vmem:[#allocation47_spill] sm:$0xff] %v5966_v39  ;;  %v5975_v38 = vpop.eup %4460  ;;  %4484 = vrcp.f32 %v2787_v50  ;;  %v2261_v14 = vrot.slane %v2245_v22, %v5015_v1  ;;  %v2272_v32 = vmul.f32 %v6023_v53, %v2249_v58  ;;  %v2286_v27 = vmul.f32 1.442695, %v2268_v15 }
0x1814   :  { %6934 = vst [vmem:[#allocation48_spill] sm:$0xff] %v5975_v38  ;;  %v5987_v5 = vpop.eup %4462  ;;  %4486 = vrcp.f32 %v2778_v55  ;;  %v2273_v50 = vmul.f32 %v6032_v46, %v2253_v56  ;;  %v2288_v22 = vmul.f32 1.442695, %v2269_v25  ;;  %v2290_v18 = vmul.f32 1.442695, %v2270_v47  ;;  %v6051_v56 = vld [vmem:[%s6799_s5 + $0x40] sm:$0xff] }
0x1815   :  { %v4465_v38 = vpop.eup %4464  ;;  %4488 = vpow2.f32 %v2282_v35  ;;  %v6039_v58 = vrot.slane %v6008_v41, %v5030_v11  ;;  %v2274_v55 = vmul.f32 %v6051_v56, %v2257_v0  ;;  %v2292_v25 = vmul.f32 1.442695, %v2271_v61  ;;  %v6054_v35 = vpop.permute.xlu1 %1672  ;;  %v6061_v47 = vld [vmem:[%s6799_s5 + $0x48] sm:$0xff] }
0x1816   :  { %v6010_v49 = vpop.eup %4466  ;;  %v6027_v2 = vadd.f32 %v4465_v38, %v5681_v40  ;;  %4490 = vpow2.f32 %v1702_v12  ;;  %v1688_v40 = vmul.f32 %v5856_v16, %v6902_v33  ;;  %v2296_v61 = vmul.f32 1.442695, %v2273_v50  ;;  %v6087_v50 = vld [vmem:[%s6799_s5 + $0x50] sm:$0xff] }
0x1817   :  { %6938 = vst [vmem:[#allocation52_spill] sm:$0xff] %v6010_v49  ;;  %v4469_v63 = vpop.eup %4468  ;;  %4492 = vpow2.f32 %v2284_v45  ;;  %v1683_v39 = vmul.f32 %v5832_v19, %v5047_v26  ;;  %v1690_v21 = vmul.f32 %v6054_v35, %v6902_v33  ;;  %v2276_v19 = vmul.f32 %v6087_v50, %v2257_v0 }
0x1818   :  { %v6035_v51 = vpop.eup %4470  ;;  %v6046_v15 = vadd.f32 %v4469_v63, %v5687_v42  ;;  %v2275_v42 = vmul.f32 %v6061_v47, %v2261_v14  ;;  %4494 = vpow2.f32 %v2286_v27  ;;  %v2294_v63 = vmul.f32 1.442695, %v2272_v32 }
0x1819   :  { %6939 = vst [vmem:[#allocation53_spill] sm:$0xff] %v6035_v51  ;;  %v6043_v38 = vpop.eup %4472  ;;  %4496 = vpow2.f32 %v2288_v22  ;;  %v6078_v32 = vrot.slane %v6039_v58, %v5009_v62  ;;  %v1714_v27 = vmul.f32 1.442695, %v1688_v40  ;;  %v2298_v40 = vmul.f32 1.442695, %v2274_v55  ;;  %v6115_v55 = vld [vmem:[%s6799_s5 + $0x70] sm:$0xff] }
0x181a   :  { %6940 = vst [vmem:[#allocation54_spill] sm:$0xff] %v6043_v38  ;;  %v6056_v12 = vpop.eup %4474  ;;  %v6941_v38 = vld [vmem:[#allocation21_spill] sm:$0xff]  ;;  %4498 = vpow2.f32 %v2290_v18  ;;  %v6093_v18 = vld [vmem:[%s6799_s5 + $0x58] sm:$0xff]  ;;  %v2300_v49 = vmul.f32 1.442695, %v2275_v42  ;;  %v2281_v44 = vmul.f32 %v6121_v59, %v2261_v14  ;;  %v3125_v42 = vcombine.high %v6008_v41, %v6008_v41 }
0x181b   :  { %v2125_v51 = vmul.f32 %v6941_v38, %v5044_v24  ;;  %v6066_v37 = vpop.eup %4476  ;;  %v6070_v45 = vmul.f32 %v6941_v38, %v5047_v26  ;;  %v2277_v38 = vmul.f32 %v6093_v18, %v2261_v14  ;;  %4500 = vpow2.f32 %v2292_v25 }
0x181c   :  { %6942 = vst [vmem:[#allocation21_spill] sm:$0xff] %v6066_v37  ;;  %v6074_v52 = vpop.eup %4478  ;;  %v2279_v37 = vmul.f32 %v6107_v8, %v2261_v14  ;;  %4502 = vpow2.f32 %v2294_v63  ;;  %v1704_v4 = vmul.f32 1.442695, %v1683_v39  ;;  %v1718_v54 = vmul.f32 1.442695, %v1690_v21 }
0x181d   :  { %6943 = vst [vmem:[#allocation55_spill] sm:$0xff] %v6074_v52  ;;  %v6082_v22 = vpop.eup %4480  ;;  %4504 = vpow2.f32 %v2296_v61  ;;  %v2302_v6 = vmul.f32 1.442695, %v2276_v19  ;;  %v2304_v9 = vmul.f32 1.442695, %v2277_v38  ;;  %v3162_v14 = vmul.f32 %v5980_v60, %v6078_v32 }
0x181e   :  { %6944 = vst [vmem:[#allocation56_spill] sm:$0xff] %v6082_v22  ;;  %v6096_v52 = vpop.eup %4482  ;;  %v6101_v22 = vld [vmem:[%s6799_s5 + $0x60] sm:$0xff]  ;;  %4506 = vpow2.f32 %v1714_v27  ;;  %v2572_v41 = vmul.f32 %v5793_v31, %v5044_v24  ;;  %v6140_v21 = vmul.f32 1.442695, %v2281_v44  ;;  %v3139_v38 = vrot.slane %v3125_v42, %v5030_v11  ;;  %v6957_v11 = vld [vmem:[#allocation31_spill] sm:$0xff] }
0x181f   :  { %6945 = vst [vmem:[#allocation57_spill] sm:$0xff] %v6096_v52  ;;  %v2278_v10 = vmul.f32 %v6101_v22, %v2257_v0  ;;  %v6110_v25 = vpop.eup %4484  ;;  %v2280_v52 = vmul.f32 %v6115_v55, %v2257_v0  ;;  %4508 = vpow2.f32 %v2298_v40  ;;  %v2141_v40 = vmul.f32 1.442695, %v2125_v51 }
0x1820   :  { %6946 = vst [vmem:[#allocation58_spill] sm:$0xff] %v6110_v25  ;;  %v6124_v63 = vpop.eup %4486  ;;  %v3160_v25 = vmul.f32 %v5959_v13, %v6078_v32  ;;  %4510 = vpow2.f32 %v2300_v49  ;;  %v3180_v49 = vmul.f32 1.442695, %v3162_v14  ;;  %v6160_v51 = vmul.f32 1.442695, %v6070_v45 }
0x1821   :  { %6947 = vst [vmem:[#allocation59_spill] sm:$0xff] %v6124_v63  ;;  %v6130_v0 = vpop.eup %4488  ;;  %v2306_v39 = vmul.f32 1.442695, %v2278_v10  ;;  %v2308_v63 = vmul.f32 1.442695, %v2279_v37  ;;  %4512 = vpow2.f32 %v1704_v4  ;;  %v2576_v10 = vmul.f32 %v5914_v48, %v5044_v24 }
0x1822   :  { %v4491_v61 = vpop.eup %4490  ;;  %v6138_v13 = vmul.f32 1.442695, %v2280_v52  ;;  %v3176_v60 = vmul.f32 1.442695, %v3160_v25  ;;  %4514 = vpow2.f32 %v1718_v54  ;;  %v2588_v4 = vmul.f32 1.442695, %v2572_v41 }
0x1823   :  { %v6136_v23 = vpop.eup %4492  ;;  %v1727_v27 = vadd.f32 %v4491_v61, %v6027_v2  ;;  %4516 = vpow2.f32 %v2302_v6  ;;  %v3147_v2 = vrot.slane %v6039_v58, %v5015_v1  ;;  %v1689_v25 = vmul.f32 %v5856_v16, %v5053_v29 }
0x1824   :  { %v4495_v19 = vpop.eup %4494  ;;  %4518 = vpow2.f32 %v2304_v9  ;;  %v3164_v6 = vmul.f32 %v6004_v36, %v6078_v32  ;;  %v3151_v58 = vrot.slane %v3139_v38, %v5009_v62  ;;  %v2596_v14 = vmul.f32 1.442695, %v2576_v10 }
0x1825   :  { %v6146_v37 = vpop.eup %4496  ;;  %v1728_v52 = vadd.f32 %v5929_v30, %v1727_v27  ;;  %4520 = vpow2.f32 %v2306_v39  ;;  %v6162_v30 = vpop.permute.xlu1 %2119  ;;  %v1691_v16 = vmul.f32 %v6054_v35, %v5053_v29  ;;  %v6172_v39 = vrot.slane %v3139_v38, %v5015_v1 }
0x1826   :  { %v6149_v44 = vpop.eup %4498  ;;  %4522 = vpow2.f32 %v3176_v60  ;;  %v6176_v36 = vmul.f32 %v5793_v31, %v5047_v26  ;;  %v3161_v27 = vmul.f32 %v5972_v34, %v3147_v2  ;;  %v3163_v60 = vmul.f32 %v5992_v17, %v3147_v2 }
0x1827   :  { %v6155_v42 = vpop.eup %4500  ;;  %v1729_v54 = vrot.slane %v1728_v52, 4  ;;  %4524 = vpow2.f32 %v3180_v49  ;;  %v1716_v10 = vmul.f32 1.442695, %v1689_v25  ;;  %v6183_v35 = vmul.f32 %v6016_v57, %v3147_v2 }
0x1828   :  { %v6164_v9 = vpop.eup %4502  ;;  %4526 = vpow2.f32 %v2588_v4  ;;  %v3184_v38 = vmul.f32 1.442695, %v3164_v6  ;;  %v3166_v31 = vmul.f32 %v6023_v53, %v6078_v32  ;;  %v1720_v34 = vmul.f32 1.442695, %v1691_v16 }
0x1829   :  { %v6169_v61 = vpop.eup %4504  ;;  %v1730_v45 = vadd.f32 %v1729_v54, %v1728_v52  ;;  %4528 = vpow2.f32 %v2308_v63  ;;  %v6190_v52 = vmul.f32 %v6032_v46, %v3147_v2  ;;  %v3019_v63 = vmul.f32 %v5815_v3, %v5044_v24  ;;  %v6195_v4 = vpop.permute.xlu1 %2566 }
0x182a   :  { %v4507_v41 = vpop.eup %4506  ;;  %4530 = vpow2.f32 %v2596_v14  ;;  %v3168_v54 = vmul.f32 %v6051_v56, %v3151_v58  ;;  %v6200_v53 = vmul.f32 %v6061_v47, %v6172_v39  ;;  %v2314_v46 = vadd.f32 %v4495_v19, %v6130_v0 }
0x182b   :  { %v6180_v62 = vpop.eup %4508  ;;  %v1731_v49 = vrot.slane %v1730_v45, 2  ;;  %4532 = vpow2.f32 %v2141_v40  ;;  %v1744_v57 = vadd.f32 %v4507_v41, %v5876_v20  ;;  %v3170_v40 = vmul.f32 %v6087_v50, %v3151_v58 }
0x182c   :  { %v6185_v1 = vpop.eup %4510  ;;  %4534 = vpow2.f32 %v1716_v10  ;;  %v6210_v16 = vmul.f32 %v6093_v18, %v6172_v39  ;;  %v3172_v56 = vmul.f32 %v6101_v22, %v3151_v58  ;;  %v3188_v47 = vmul.f32 1.442695, %v3166_v31 }
0x182d   :  { %v4513_v17 = vpop.eup %4512  ;;  %v1732_v25 = vadd.f32 %v1731_v49, %v1730_v45  ;;  %4536 = vpow2.f32 %v3184_v38  ;;  %v3035_v0 = vmul.f32 1.442695, %v3019_v63  ;;  %v6220_v38 = vmul.f32 %v6107_v8, %v6172_v39 }
0x182e   :  { %v4515_v6 = vpop.eup %4514  ;;  %4538 = vpow2.f32 %v1720_v34  ;;  %v1736_v19 = vadd.f32 %v4513_v17, %v6046_v15  ;;  %v3178_v18 = vmul.f32 1.442695, %v3161_v27  ;;  %v2315_v22 = vadd.f32 %v6149_v44, %v2314_v46  ;;  %v6224_v34 = vpop.permute.xlu1 %3013  ;;  %v6948_v15 = vld [vmem:[#allocation22_spill] sm:$0xff] }
0x182f   :  { %v6203_v32 = vpop.eup %4516  ;;  %v1745_v2 = vadd.f32 %v4515_v6, %v1744_v57  ;;  %v1733_v20 = vrot.slane %v1732_v25, 1  ;;  %4540 = vpow2.f32 %v6138_v13  ;;  %v3182_v31 = vmul.f32 1.442695, %v3163_v60 }
0x1830   :  { %v6206_v14 = vpop.eup %4518  ;;  %4542 = vpow2.f32 %v6140_v21  ;;  %v3174_v57 = vmul.f32 %v6115_v55, %v3151_v58  ;;  %v3192_v13 = vmul.f32 1.442695, %v3168_v54  ;;  %v2133_v8 = vmul.f32 %v5888_v43, %v6902_v33 }
0x1831   :  { %v6213_v45 = vpop.eup %4520  ;;  %v1746_v50 = vadd.f32 %v5987_v5, %v1745_v2  ;;  %v1734_v41 = vadd.f32 %v1733_v20, %v1732_v25  ;;  %4544 = vpow2.f32 %v3188_v47  ;;  %v1737_v60 = vadd.f32 %v5932_v7, %v1736_v19 }
0x1832   :  { %v4523_v10 = vpop.eup %4522  ;;  %4546 = vpow2.f32 %v3035_v0  ;;  %v6238_v6 = vmul.f32 %v6121_v59, %v6172_v39  ;;  %v3196_v55 = vmul.f32 1.442695, %v3170_v40  ;;  %v2316_v58 = vadd.f32 %v6164_v9, %v2315_v22  ;;  %v6951_v39 = vld [vmem:[#allocation42_spill] sm:$0xff]  ;;  %v6249_v19 = vpop.permute.xlu1 %2123 }
0x1833   :  { %v4525_v49 = vpop.eup %4524  ;;  %v1903_v17 = vmul.f32 %v1734_v41, %v6948_v15  ;;  %v1747_v5 = vrot.slane %v1746_v50, 4  ;;  %4548 = vpow2.f32 %v3178_v18  ;;  %v6245_v7 = vmul.f32 1.442695, %v6183_v35  ;;  %v6952_v18 = vld [vmem:[#allocation20_spill] sm:$0xff] }
0x1834   :  { %v4527_v63 = vpop.eup %4526  ;;  %4550 = vpow2.f32 %v3182_v31  ;;  %v3208_v2 = vadd.f32 %v4525_v49, %v4523_v10  ;;  %v3200_v59 = vmul.f32 1.442695, %v3172_v56  ;;  %v2582_v40 = vmul.f32 %v6951_v39, %v6902_v33  ;;  %v6953_v49 = vld [vmem:[#allocation30_spill] sm:$0xff] }
0x1835   :  { %v6230_v27 = vpop.eup %4528  ;;  %v6233_v44 = vmul.f32 %v6056_v12, %v1903_v17  ;;  %v1748_v21 = vadd.f32 %v1747_v5, %v1746_v50  ;;  %v2620_v46 = vadd.f32 %v4527_v63, %v5853_v28  ;;  %4552 = vpow2.f32 %v3192_v13  ;;  %v6954_v17 = vld [vmem:[#allocation44_spill] sm:$0xff] }
0x1836   :  { %6949 = vst [vmem:[#allocation22_spill] sm:$0xff] %v6230_v27  ;;  %v4531_v25 = vpop.eup %4530  ;;  %v2157_v9 = vmul.f32 1.442695, %v2133_v8  ;;  %v1738_v50 = vrot.slane %v1737_v60, 4  ;;  %4554 = vpow2.f32 %v3196_v55  ;;  %v2137_v35 = vmul.f32 %v6162_v30, %v6902_v33 }
0x1837   :  { %6950 = vst [vmem:[#allocation60_spill] sm:$0xff] %v6233_v44  ;;  %v4533_v54 = vpop.eup %4532  ;;  %1917 = vrot.lane.b32.xlu1 %v6233_v44, %s4755_s17  ;;  %v1749_v12 = vrot.slane %v1748_v21, 2  ;;  %v2621_v0 = vadd.f32 %v4531_v25, %v2620_v46  ;;  %v2317_v22 = vrot.slane %v2316_v58, 4  ;;  %v2584_v31 = vmul.f32 %v6195_v4, %v6902_v33 }
0x1838   :  { %v4535_v20 = vpop.eup %4534  ;;  %v2173_v10 = vadd.f32 %v4533_v54, %v6952_v18  ;;  %4556 = vpow2.f32 %v3200_v59  ;;  %v3204_v8 = vmul.f32 1.442695, %v3174_v57  ;;  %v2139_v25 = vmul.f32 %v6249_v19, %v6902_v33 }
0x1839   :  { %v4537_v47 = vpop.eup %4536  ;;  %v1750_v28 = vadd.f32 %v1749_v12, %v1748_v21  ;;  %v1753_v56 = vadd.f32 %v4535_v20, %v6953_v49  ;;  %v2608_v21 = vmul.f32 1.442695, %v2582_v40  ;;  %v1739_v12 = vadd.f32 %v1738_v50, %v1737_v60  ;;  %v6956_v20 = vld [vmem:[#allocation45_spill] sm:$0xff]  ;;  %v6276_v50 = vpop.permute.xlu1 %3017 }
0x183a   :  { %v4539_v41 = vpop.eup %4538  ;;  %v3209_v63 = vadd.f32 %v4537_v47, %v3208_v2  ;;  %v2622_v18 = vadd.f32 %v6956_v20, %v2621_v0  ;;  %v2174_v24 = vadd.f32 %v6957_v11, %v2173_v10  ;;  %v6958_v2 = vld [vmem:[#allocation50_spill] sm:$0xff]  ;;  %v2165_v27 = vmul.f32 1.442695, %v2137_v35  ;;  %6960 = vst [vmem:[#allocation20_spill] sm:$0xff] %v6276_v50  ;;  %v6961_v10 = vld [vmem:[#allocation52_spill] sm:$0xff] }
0x183b   :  { %3554 = vrot.lane.b32.xlu1 %v6954_v17, %s4753_s0  ;;  %v1751_v5 = vrot.slane %v1750_v28, 1  ;;  %v6259_v13 = vpop.eup %4540  ;;  %v1754_v54 = vadd.f32 %v4539_v41, %v1753_v56  ;;  %v3027_v47 = vmul.f32 %v6958_v2, %v6902_v33  ;;  %v2318_v59 = vadd.f32 %v2317_v22, %v2316_v58  ;;  %v6962_v22 = vld [vmem:[#allocation21_spill] sm:$0xff] }
0x183c   :  { %v6263_v55 = vpop.eup %4542  ;;  %4558 = vpow2.f32 %v2157_v9  ;;  %v2612_v40 = vmul.f32 1.442695, %v2584_v31  ;;  %v3031_v11 = vmul.f32 %v6224_v34, %v6902_v33  ;;  %v2169_v0 = vmul.f32 1.442695, %v2139_v25  ;;  %v6964_v25 = vld [vmem:[#allocation41_spill] sm:$0xff] }
0x183d   :  { %6955 = vst [vmem:[#allocation42_spill] sm:$0xff] %v6263_v55  ;;  %v1752_v46 = vadd.f32 %v1751_v5, %v1750_v28  ;;  %v4545_v49 = vpop.eup %4544  ;;  %v6959_v55 = vld [vmem:[#allocation23_spill] sm:$0xff]  ;;  %4560 = vpow2.f32 %v2608_v21  ;;  %v2332_v58 = vadd.f32 %v6203_v32, %v6180_v62  ;;  %v1755_v35 = vadd.f32 %v6961_v10, %v1754_v54  ;;  %v6963_v21 = vld [vmem:[#allocation28_spill] sm:$0xff] }
0x183e   :  { %v4547_v57 = vpop.eup %4546  ;;  %v3210_v28 = vadd.f32 %v4545_v49, %v3209_v63  ;;  %v1740_v31 = vrot.slane %v1739_v12, 2  ;;  %v2623_v5 = vrot.slane %v2622_v18, 4  ;;  %v3051_v20 = vmul.f32 1.442695, %v3027_v47 }
0x183f   :  { %1925 = vrot.lane.b32.xlu1 %v6233_v44, %s4753_s0  ;;  %v1905_v41 = vmul.f32 %v1752_v46, %v6959_v55  ;;  %v6272_v60 = vpop.eup %4548  ;;  %v3067_v46 = vadd.f32 %v4547_v57, %v6963_v21  ;;  %4562 = vpow2.f32 %v2165_v27  ;;  %v2175_v49 = vadd.f32 %v6964_v25, %v2174_v24 }
0x1840   :  { %v6280_v9 = vpop.eup %4550  ;;  %4564 = vpow2.f32 %v2612_v40  ;;  %v3033_v62 = vmul.f32 %v6276_v50, %v6902_v33  ;;  %v2319_v32 = vrot.slane %v2318_v59, 2  ;;  %v3211_v54 = vrot.slane %v3210_v28, 4  ;;  %v6965_v33 = vld [vmem:[#allocation37_spill] sm:$0xff] }
0x1841   :  { %v6284_v56 = vmul.f32 %v6962_v22, %v1905_v41  ;;  %v4553_v63 = vpop.eup %4552  ;;  %v6295_v10 = vmul.f32 1.442695, %v6190_v52  ;;  %v2577_v27 = vmul.f32 %v5914_v48, %v5047_v26  ;;  %4566 = vpow2.f32 %v2169_v0  ;;  %v6966_v50 = vld [vmem:[#allocation49_spill] sm:$0xff] }
0x1842   :  { %v4555_v41 = vpop.eup %4554  ;;  %v2333_v24 = vadd.f32 %v6213_v45, %v2332_v58  ;;  %v3059_v47 = vmul.f32 1.442695, %v3031_v11  ;;  %v1741_v57 = vadd.f32 %v1740_v31, %v1739_v12  ;;  %v2624_v40 = vadd.f32 %v2623_v5, %v2622_v18  ;;  %v6967_v5 = vld [vmem:[#allocation47_spill] sm:$0xff] }
0x1843   :  { %1933 = vrot.lane.b32.xlu1 %v6233_v44, %s4754_s3  ;;  %1919 = vrot.lane.b32.xlu0 %v6284_v56, %s4755_s17  ;;  %v1756_v22 = vrot.slane %v1755_v35, 4  ;;  %v4557_v21 = vpop.eup %4556  ;;  %4568 = vpow2.f32 %v3204_v8  ;;  %v2590_v25 = vmul.f32 1.442695, %v6176_v36  ;;  %v3068_v44 = vadd.f32 %v6965_v33, %v3067_v46 }
0x1844   :  { %v2176_v55 = vrot.slane %v2175_v49, 4  ;;  %4570 = vpow2.f32 %v3051_v20  ;;  %v3063_v52 = vmul.f32 1.442695, %v3033_v62  ;;  %v2320_v48 = vadd.f32 %v2319_v32, %v2318_v59 }
0x1845   :  { %v3212_v45 = vadd.f32 %v3211_v54, %v3210_v28  ;;  %4572 = vpow2.f32 %v6160_v51  ;;  %v2598_v12 = vmul.f32 1.442695, %v2577_v27  ;;  %v2334_v18 = vadd.f32 %v6259_v13, %v2333_v24  ;;  %v6969_v54 = vld [vmem:[#allocation35_spill] sm:$0xff] }
0x1846   :  { %v2323_v36 = vadd.f32 %v6146_v37, %v6136_v23  ;;  %v4559_v8 = vpop.eup %4558  ;;  %4574 = vpow2.f32 %v3059_v47  ;;  %v1742_v33 = vrot.slane %v1741_v57, 1  ;;  %v2625_v11 = vrot.slane %v2624_v40, 2 }
0x1847   :  { %3432 = vbcast.lane.b32.xlu1 %v6966_v50, 352  ;;  %3551 = vrot.lane.b32.xlu0 %v6954_v17, %s4754_s3  ;;  %v1757_v0 = vadd.f32 %v1756_v22, %v1755_v35  ;;  %v4561_v58 = vpop.eup %4560  ;;  %4576 = vpow2.f32 %v2590_v25  ;;  %v2177_v31 = vadd.f32 %v2176_v55, %v2175_v49  ;;  %v3069_v46 = vadd.f32 %v6967_v5, %v3068_v44  ;;  %v6970_v25 = vld [vmem:[#allocation51_spill] sm:$0xff] }
0x1848   :  { %v3226_v59 = vadd.f32 %v4555_v41, %v4553_v63  ;;  %v6311_v28 = vmul.f32 1.442695, %v6200_v53  ;;  %4578 = vpow2.f32 %v3063_v52  ;;  %v2321_v23 = vrot.slane %v2320_v48, 1  ;;  %v6968_v63 = vld [vmem:[#allocation33_spill] sm:$0xff] }
0x1849   :  { %v3213_v37 = vrot.slane %v3212_v45, 2  ;;  %v4563_v51 = vpop.eup %4562  ;;  %v3020_v13 = vmul.f32 %v5815_v3, %v5047_v26  ;;  %4580 = vpow2.f32 %v2598_v12  ;;  %v2335_v55 = vrot.slane %v2334_v18, 4 }
0x184a   :  { %v2324_v44 = vadd.f32 %v6155_v42, %v2323_v36  ;;  %v4565_v35 = vpop.eup %4564  ;;  %v2191_v53 = vadd.f32 %v4559_v8, %v6968_v63  ;;  %v1743_v20 = vadd.f32 %v1742_v33, %v1741_v57  ;;  %v2626_v49 = vadd.f32 %v2625_v11, %v2624_v40 }
0x184b   :  { %3440 = vbcast.lane.b32.xlu1 %v6966_v50, 368  ;;  %1927 = vrot.lane.b32.xlu0 %v6284_v56, %s4753_s0  ;;  %v1758_v62 = vrot.slane %v1757_v0, 2  ;;  %v4567_v32 = vpop.eup %4566  ;;  %v2638_v41 = vadd.f32 %v4561_v58, %v6969_v54  ;;  %v2178_v27 = vrot.slane %v2177_v31, 2  ;;  %v3070_v24 = vrot.slane %v3069_v46, 4 }
0x184c   :  { %v3227_v47 = vadd.f32 %v4557_v21, %v3226_v59  ;;  %v6322_v22 = vmul.f32 1.442695, %v6210_v16  ;;  %v2192_v3 = vadd.f32 %v4563_v51, %v2191_v53  ;;  %v2322_v42 = vadd.f32 %v2321_v23, %v2320_v48  ;;  %v6971_v21 = vld [vmem:[#allocation24_spill] sm:$0xff]  ;;  %v6972_v23 = vld [vmem:[#allocation39_spill] sm:$0xff] }
0x184d   :  { %v3214_v52 = vadd.f32 %v3213_v37, %v3212_v45  ;;  %v4569_v57 = vpop.eup %4568  ;;  %4582 = vpow2.f32 %v6245_v7  ;;  %v3037_v40 = vmul.f32 1.442695, %v3020_v13  ;;  %v2639_v12 = vadd.f32 %v4565_v35, %v2638_v41 }
0x184e   :  { %v2336_v36 = vadd.f32 %v2335_v55, %v2334_v18  ;;  %v4571_v8 = vpop.eup %4570  ;;  %v2193_v33 = vadd.f32 %v4567_v32, %v2192_v3  ;;  %v1904_v11 = vmul.f32 %v1743_v20, %v6971_v21  ;;  %v2627_v16 = vrot.slane %v2626_v49, 1 }
0x184f   :  { %3456 = vbcast.lane.b32.xlu1 %v6970_v25, 360  ;;  %3557 = vrot.lane.b32.xlu0 %v6954_v17, %s4755_s17  ;;  %v1759_v58 = vadd.f32 %v1758_v62, %v1757_v0  ;;  %v4573_v5 = vpop.eup %4572  ;;  %4584 = vpow2.f32 %v6295_v10  ;;  %v2179_v59 = vadd.f32 %v2178_v27, %v2177_v31  ;;  %v3071_v51 = vadd.f32 %v3070_v24, %v3069_v46  ;;  %v6973_v31 = vld [vmem:[#allocation53_spill] sm:$0xff] }
0x1850   :  { %v3228_v63 = vadd.f32 %v4569_v57, %v3227_v47  ;;  %v4575_v48 = vpop.eup %4574  ;;  %v6331_v45 = vmul.f32 1.442695, %v6220_v38  ;;  %4586 = vrcp.f32 %v2322_v42  ;;  %v3215_v7 = vrot.slane %v3214_v52, 1  ;;  %v6974_v38 = vld [vmem:[#allocation55_spill] sm:$0xff] }
0x1851   :  { %v2325_v18 = vadd.f32 %v6169_v61, %v2324_v44  ;;  %v4577_v0 = vpop.eup %4576  ;;  %4588 = vpow2.f32 %v3037_v40  ;;  %v3085_v10 = vadd.f32 %v4571_v8, %v6972_v23  ;;  %v2640_v46 = vadd.f32 %v6973_v31, %v2639_v12  ;;  %v6975_v61 = vld [vmem:[#allocation27_spill] sm:$0xff] }
0x1852   :  { %v2337_v37 = vrot.slane %v2336_v36, 2  ;;  %v4579_v13 = vpop.eup %4578  ;;  %v2194_v55 = vrot.slane %v2193_v33, 4  ;;  %v6340_v35 = vmul.f32 %v6974_v38, %v1904_v11  ;;  %v2628_v53 = vadd.f32 %v2627_v16, %v2626_v49 }
0x1853   :  { %3460 = vbcast.lane.b32.xlu1 %v6970_v25, 368  ;;  %1935 = vrot.lane.b32.xlu0 %v6284_v56, %s4754_s3  ;;  %v1760_v20 = vrot.slane %v1759_v58, 1  ;;  %v4581_v62 = vpop.eup %4580  ;;  %v3086_v32 = vadd.f32 %v4575_v48, %v3085_v10  ;;  %v2180_v54 = vrot.slane %v2179_v59, 1  ;;  %v3072_v41 = vrot.slane %v3071_v51, 2 }
0x1854   :  { %v3229_v27 = vrot.slane %v3228_v63, 4  ;;  %4590 = vpow2.f32 %v6311_v28  ;;  %v2629_v44 = vadd.f32 %v4577_v0, %v6975_v61  ;;  %v2134_v24 = vmul.f32 %v5888_v43, %v5053_v29 }
0x1855   :  { %v3216_v47 = vadd.f32 %v3215_v7, %v3214_v52  ;;  %v3087_v49 = vadd.f32 %v4579_v13, %v3086_v32  ;;  %v2641_v3 = vrot.slane %v2640_v46, 4  ;;  %v2326_v42 = vrot.slane %v2325_v18, 4  ;;  %v6976_v52 = vld [vmem:[#allocation26_spill] sm:$0xff] }
0x1856   :  { %v3217_v57 = vadd.f32 %v6280_v9, %v6272_v60  ;;  %v2630_v40 = vadd.f32 %v4581_v62, %v2629_v44  ;;  %v2797_v28 = vmul.f32 %v2628_v53, %v6948_v15  ;;  %v1761_v12 = vadd.f32 %v1760_v20, %v1759_v58 }
0x1857   :  { %1945 = vrot.lane.b32.xlu1 %v6340_v35, %s4755_s17  ;;  %3436 = vbcast.lane.b32.xlu0 %v6966_v50, 360  ;;  %v2195_v8 = vadd.f32 %v2194_v55, %v2193_v33  ;;  %v4583_v11 = vpop.eup %4582  ;;  %v2181_v16 = vadd.f32 %v2180_v54, %v2179_v59  ;;  %v3073_v43 = vadd.f32 %v3072_v41, %v3071_v51  ;;  %v6353_v23 = vmul.f32 1.442695, %v6238_v6  ;;  %v6978_v6 = vld [vmem:[#allocation25_spill] sm:$0xff] }
0x1858   :  { %v2338_v48 = vadd.f32 %v2337_v37, %v2336_v36  ;;  %v3230_v0 = vadd.f32 %v3229_v27, %v3228_v63  ;;  %v2182_v7 = vadd.f32 %v4573_v5, %v6976_v52  ;;  %v2159_v10 = vmul.f32 1.442695, %v2134_v24  ;;  %v6977_v36 = vld [vmem:[#allocation56_spill] sm:$0xff]  ;;  %v6979_v5 = vld [vmem:[#allocation46_spill] sm:$0xff]  ;;  %v6981_v24 = vld [vmem:[#allocation57_spill] sm:$0xff] }
0x1859   :  { %4592 = vrcp.f32 %v3216_v47  ;;  %v4585_v60 = vpop.eup %4584  ;;  %v3088_v9 = vrot.slane %v3087_v49, 4  ;;  %v2642_v33 = vadd.f32 %v2641_v3, %v2640_v46  ;;  %v2327_v58 = vadd.f32 %v2326_v42, %v2325_v18  ;;  %v6980_v46 = vld [vmem:[#allocation32_spill] sm:$0xff] }
0x185a   :  { %v3218_v59 = vadd.f32 %v4583_v11, %v3217_v57  ;;  %v4587_v51 = vpop.eup %4586  ;;  %v6360_v63 = vmul.f32 %v6977_v36, %v2797_v28  ;;  %v1906_v31 = vmul.f32 %v1761_v12, %v6978_v6  ;;  %v2196_v37 = vrot.slane %v2195_v8, 2  ;;  %v6984_v36 = vld [vmem:[#allocation38_spill] sm:$0xff] }
0x185b   :  { %1953 = vrot.lane.b32.xlu1 %v6340_v35, %s4753_s0  ;;  %3452 = vbcast.lane.b32.xlu0 %v6970_v25, 352  ;;  %v2631_v13 = vadd.f32 %v6979_v5, %v2630_v40  ;;  %v4589_v55 = vpop.eup %4588  ;;  %v2350_v38 = vmul.f32 %v2181_v16, %v6948_v15  ;;  %v3074_v53 = vrot.slane %v3073_v43, 1  ;;  %v2339_v20 = vrot.slane %v2338_v48, 1  ;;  %v6983_v16 = vld [vmem:[#allocation43_spill] sm:$0xff] }
0x185c   :  { %v3231_v62 = vrot.slane %v3230_v0, 2  ;;  %4594 = vpow2.f32 %v6322_v22  ;;  %v2183_v18 = vadd.f32 %v6980_v46, %v2182_v7  ;;  %v2583_v32 = vmul.f32 %v6951_v39, %v5053_v29 }
0x185d   :  { %v3028_v54 = vmul.f32 %v6958_v2, %v5053_v29  ;;  %v2138_v41 = vmul.f32 %v6162_v30, %v5053_v29  ;;  %v6376_v27 = vmul.f32 %v4587_v51, %v2350_v38  ;;  %v2643_v61 = vrot.slane %v2642_v33, 2 }
0x185e   :  { %v3219_v22 = vadd.f32 %v4585_v60, %v3218_v59  ;;  %v6378_v44 = vpop.eup %4590  ;;  %v6381_v47 = vmul.f32 %v6981_v24, %v1906_v31  ;;  %v2197_v39 = vadd.f32 %v2196_v37, %v2195_v8  ;;  %v2632_v3 = vrot.slane %v2631_v13, 4 }
0x185f   :  { %2811 = vrot.lane.b32.xlu1 %v6360_v63, %s4755_s17  ;;  %3444 = vbcast.lane.b32.xlu0 %v6966_v50, 376  ;;  %v3089_v2 = vadd.f32 %v3088_v9, %v3087_v49  ;;  %v3075_v42 = vadd.f32 %v3074_v53, %v3073_v43  ;;  %v2340_v57 = vadd.f32 %v2339_v20, %v2338_v48  ;;  %v2328_v40 = vrot.slane %v2327_v58, 2  ;;  %v6982_v50 = vld [vmem:[#allocation29_spill] sm:$0xff] }
0x1860   :  { %v3232_v28 = vadd.f32 %v3231_v62, %v3230_v0  ;;  %v3076_v12 = vadd.f32 %v4589_v55, %v6982_v50  ;;  %v2610_v11 = vmul.f32 1.442695, %v2583_v32  ;;  %v2585_v30 = vmul.f32 %v6195_v4, %v5053_v29  ;;  %v6986_v32 = vld [vmem:[#allocation48_spill] sm:$0xff] }
0x1861   :  { %v2184_v8 = vadd.f32 %v6983_v16, %v2183_v18  ;;  %4596 = vpow2.f32 %v6331_v45  ;;  %v2167_v49 = vmul.f32 1.442695, %v2138_v41  ;;  %v2140_v43 = vmul.f32 %v6249_v19, %v5053_v29  ;;  %v6990_v50 = vld [vmem:[#allocation4_spill] sm:$0xff] }
0x1862   :  { %v3220_v48 = vrot.slane %v3219_v22, 4  ;;  %v2644_v52 = vadd.f32 %v2643_v61, %v2642_v33  ;;  %v2198_v7 = vrot.slane %v2197_v39, 1  ;;  %v2633_v60 = vadd.f32 %v2632_v3, %v2631_v13 }
0x1863   :  { %2372 = vrot.lane.b32.xlu1 %v6376_v27, %s4753_s0  ;;  %1947 = vrot.lane.b32.xlu0 %v6381_v47, %s4755_s17  ;;  %v4593_v0 = vpop.eup %4592  ;;  %v3090_v4 = vrot.slane %v3089_v2, 2  ;;  %v3244_v9 = vmul.f32 %v3075_v42, %v6948_v15  ;;  %4598 = vrcp.f32 %v2340_v57  ;;  %v2329_v59 = vadd.f32 %v2328_v40, %v2327_v58  ;;  %v6988_v57 = vld [vmem:[#allocation22_spill] sm:$0xff] }
0x1864   :  { %v3233_v51 = vrot.slane %v3232_v28, 1  ;;  %v3077_v31 = vadd.f32 %v6984_v36, %v3076_v12  ;;  %4600 = vpow2.f32 %v2159_v10  ;;  %v2614_v37 = vmul.f32 1.442695, %v2585_v30 }
0x1865   :  { %v2185_v19 = vrot.slane %v2184_v8, 4  ;;  %4602 = vpow2.f32 %v2610_v11  ;;  %v2171_v45 = vmul.f32 1.442695, %v2140_v43  ;;  %v6399_v33 = vmul.f32 %v4593_v0, %v3244_v9  ;;  %v6992_v9 = vld [vmem:[#allocation11_spill] sm:$0xff] }
0x1866   :  { %v3221_v5 = vadd.f32 %v3220_v48, %v3219_v22  ;;  %v4595_v13 = vpop.eup %4594  ;;  %v2645_v55 = vrot.slane %v2644_v52, 1  ;;  %v2199_v38 = vadd.f32 %v2198_v7, %v2197_v39  ;;  %v2634_v58 = vrot.slane %v2633_v60, 2  ;;  %v6987_v39 = vld [vmem:[#allocation23_spill] sm:$0xff] }
0x1867   :  { %2819 = vrot.lane.b32.xlu1 %v6360_v63, %s4753_s0  ;;  %3464 = vbcast.lane.b32.xlu0 %v6970_v25, 376  ;;  %v3091_v53 = vadd.f32 %v3090_v4, %v3089_v2  ;;  %4604 = vpow2.f32 %v2167_v49  ;;  %v3032_v10 = vmul.f32 %v6224_v34, %v5053_v29  ;;  %v3234_v20 = vadd.f32 %v3233_v51, %v3232_v28  ;;  %v6985_v25 = vld [vmem:[#allocation20_spill] sm:$0xff]  ;;  %v6989_v28 = vld [vmem:[#allocation3_spill] sm:$0xff] }
0x1868   :  { %v2341_v62 = vadd.f32 %v6206_v14, %v6185_v1  ;;  %4606 = vpow2.f32 %v2614_v37  ;;  %v3034_v46 = vmul.f32 %v6985_v25, %v5053_v29  ;;  %v2186_v18 = vadd.f32 %v2185_v19, %v2184_v8 }
0x1869   :  { %v3078_v41 = vadd.f32 %v6986_v32, %v3077_v31  ;;  %v3053_v61 = vmul.f32 1.442695, %v3028_v54  ;;  %4608 = vpow2.f32 %v2171_v45  ;;  %v2330_v34 = vrot.slane %v2329_v59, 1 }
0x186a   :  { %v3222_v22 = vrot.slane %v3221_v5, 2  ;;  %v2646_v24 = vadd.f32 %v2645_v55, %v2644_v52  ;;  %v2352_v1 = vmul.f32 %v2199_v38, %v6987_v39  ;;  %v2635_v14 = vadd.f32 %v2634_v58, %v2633_v60  ;;  %v6991_v60 = vld [vmem:[#allocation42_spill] sm:$0xff] }
0x186b   :  { %3266 = vrot.lane.b32.xlu1 %v6399_v33, %s4753_s0  ;;  %2364 = vrot.lane.b32.xlu0 %v6376_v27, %s4755_s17  ;;  %v3092_v3 = vrot.slane %v3091_v53, 1  ;;  %v4597_v2 = vpop.eup %4596  ;;  %v3061_v42 = vmul.f32 1.442695, %v3032_v10  ;;  %4610 = vrcp.f32 %v3234_v20  ;;  %v2342_v40 = vadd.f32 %v6988_v57, %v2341_v62  ;;  %v6994_v38 = vld [vmem:[#allocation58_spill] sm:$0xff]  ;;  %v6995_v20 = vld [vmem:[#allocation19_spill] sm:$0xff] }
0x186c   :  { %v2788_v12 = vadd.f32 %v6990_v50, %v6989_v28  ;;  %4612 = vpow2.f32 %v6353_v23  ;;  %v3065_v11 = vmul.f32 1.442695, %v3034_v46  ;;  %v2187_v54 = vrot.slane %v2186_v18, 2  ;;  %v6996_v46 = vld [vmem:[#allocation36_spill] sm:$0xff] }
0x186d   :  { %v3079_v30 = vrot.slane %v3078_v41, 4  ;;  %v4599_v16 = vpop.eup %4598  ;;  %4614 = vpow2.f32 %v3053_v61  ;;  %v2331_v8 = vadd.f32 %v2330_v34, %v2329_v59  ;;  %v3223_v49 = vadd.f32 %v3222_v22, %v3221_v5  ;;  %v6993_v5 = vld [vmem:[#allocation34_spill] sm:$0xff] }
0x186e   :  { %v4601_v43 = vpop.eup %4600  ;;  %v2799_v48 = vmul.f32 %v2646_v24, %v6987_v39  ;;  %v6422_v0 = vmul.f32 %v4599_v16, %v2352_v1  ;;  %v2636_v52 = vrot.slane %v2635_v14, 1  ;;  %v3093_v23 = vadd.f32 %v3092_v3, %v3091_v53 }
0x186f   :  { %2380 = vrot.lane.b32.xlu1 %v6376_v27, %s4754_s3  ;;  %3258 = vrot.lane.b32.xlu0 %v6399_v33, %s4755_s17  ;;  %v4603_v7 = vpop.eup %4602  ;;  %4616 = vpow2.f32 %v3061_v42  ;;  %v2343_v4 = vadd.f32 %v6991_v60, %v2342_v40  ;;  %v2789_v51 = vadd.f32 %v6992_v9, %v2788_v12  ;;  %v3235_v36 = vadd.f32 %v4595_v13, %v6378_v44 }
0x1870   :  { %4618 = vpow2.f32 %v3065_v11  ;;  %v2188_v59 = vadd.f32 %v2187_v54, %v2186_v18  ;;  %v3080_v31 = vadd.f32 %v3079_v30, %v3078_v41  ;;  %v3224_v19 = vrot.slane %v3223_v49, 1  ;;  %v6997_v30 = vld [vmem:[#allocation40_spill] sm:$0xff] }
0x1871   :  { %v4605_v37 = vpop.eup %4604  ;;  %4620 = vrcp.f32 %v2331_v8  ;;  %v2200_v55 = vadd.f32 %v4601_v43, %v6993_v5  ;;  %v6433_v58 = vmul.f32 %v6994_v38, %v2799_v48  ;;  %v2637_v53 = vadd.f32 %v2636_v52, %v2635_v14  ;;  %v6998_v8 = vld [vmem:[#allocation54_spill] sm:$0xff]  ;;  %v6999_v48 = vld [vmem:[#allocation59_spill] sm:$0xff] }
0x1872   :  { %v4607_v45 = vpop.eup %4606  ;;  %v3246_v44 = vmul.f32 %v3093_v23, %v6987_v39  ;;  %v2344_v10 = vrot.slane %v2343_v4, 4  ;;  %v2790_v62 = vadd.f32 %v6995_v20, %v2789_v51  ;;  %v3236_v25 = vadd.f32 %v4597_v2, %v3235_v36 }
0x1873   :  { %2827 = vrot.lane.b32.xlu1 %v6360_v63, %s4754_s3  ;;  %2366 = vrot.lane.b32.xlu0 %v6422_v0, %s4755_s17  ;;  %v4609_v13 = vpop.eup %4608  ;;  %v2647_v18 = vadd.f32 %v4603_v7, %v6996_v46  ;;  %v2201_v32 = vadd.f32 %v4605_v37, %v2200_v55  ;;  %v2189_v41 = vrot.slane %v2188_v59, 1  ;;  %v3081_v61 = vrot.slane %v3080_v31, 2 }
0x1874   :  { %v3225_v22 = vadd.f32 %v3224_v19, %v3223_v49  ;;  %v2798_v3 = vmul.f32 %v2637_v53, %v6971_v21  ;;  %v2345_v57 = vadd.f32 %v2344_v10, %v2343_v4  ;;  %v2791_v40 = vrot.slane %v2790_v62, 4 }
0x1875   :  { %v4611_v34 = vpop.eup %4610  ;;  %v2648_v1 = vadd.f32 %v4607_v45, %v2647_v18  ;;  %v2202_v14 = vadd.f32 %v4609_v13, %v2201_v32  ;;  %v2190_v50 = vadd.f32 %v2189_v41, %v2188_v59  ;;  %v3082_v12 = vadd.f32 %v3081_v61, %v3080_v31 }
0x1876   :  { %v4613_v24 = vpop.eup %4612  ;;  %v6443_v42 = vmul.f32 %v4611_v34, %v3246_v44  ;;  %4622 = vrcp.f32 %v3225_v22  ;;  %v6452_v52 = vmul.f32 %v6999_v48, %v2798_v3  ;;  %v2346_v7 = vrot.slane %v2345_v57, 2 }
0x1877   :  { %3274 = vrot.lane.b32.xlu1 %v6399_v33, %s4754_s3  ;;  %2813 = vrot.lane.b32.xlu0 %v6433_v58, %s4755_s17  ;;  %v4615_v2 = vpop.eup %4614  ;;  %v3237_v28 = vadd.f32 %v4613_v24, %v3236_v25  ;;  %v2649_v49 = vadd.f32 %v6998_v8, %v2648_v1  ;;  %v2203_v43 = vrot.slane %v2202_v14, 4  ;;  %v2792_v60 = vadd.f32 %v2791_v40, %v2790_v62 }
0x1878   :  { %v3094_v16 = vadd.f32 %v4615_v2, %v6997_v30  ;;  %v2351_v51 = vmul.f32 %v2190_v50, %v6971_v21  ;;  %v3083_v36 = vrot.slane %v3082_v12, 1  ;;  %v2347_v45 = vadd.f32 %v2346_v7, %v2345_v57 }
0x1879   :  { %v4617_v11 = vpop.eup %4616  ;;  %v3238_v4 = vrot.slane %v3237_v28, 4  ;;  %v2204_v37 = vadd.f32 %v2203_v43, %v2202_v14  ;;  %v2650_v19 = vrot.slane %v2649_v49, 4  ;;  %v2793_v5 = vrot.slane %v2792_v60, 2 }
0x187a   :  { %v4619_v54 = vpop.eup %4618  ;;  %v3095_v9 = vadd.f32 %v4617_v11, %v3094_v16  ;;  %v3084_v38 = vadd.f32 %v3083_v36, %v3082_v12  ;;  %v2348_v20 = vrot.slane %v2347_v45, 1  ;;  %v7000_v36 = vld [vmem:[#allocation60_spill] sm:$0xff] }
0x187b   :  { %2829 = vrot.lane.b32.xlu1 %v6433_v58, %s4754_s3  ;;  %3260 = vrot.lane.b32.xlu0 %v6443_v42, %s4755_s17  ;;  %v4621_v23 = vpop.eup %4620  ;;  %v3239_v55 = vadd.f32 %v3238_v4, %v3237_v28  ;;  %v2205_v44 = vrot.slane %v2204_v37, 2  ;;  %v2651_v13 = vadd.f32 %v2650_v19, %v2649_v49  ;;  %v2794_v62 = vadd.f32 %v2793_v5, %v2792_v60 }
0x187c   :  { %v3096_v59 = vadd.f32 %v4619_v54, %v3095_v9  ;;  %v6459_v31 = vmul.f32 %v4621_v23, %v2351_v51  ;;  %v3245_v46 = vmul.f32 %v3084_v38, %v6971_v21  ;;  %v2349_v34 = vadd.f32 %v2348_v20, %v2347_v45 }
0x187d   :  { %v3240_v25 = vrot.slane %v3239_v55, 2  ;;  %v2206_v32 = vadd.f32 %v2205_v44, %v2204_v37  ;;  %v2652_v41 = vrot.slane %v2651_v13, 2  ;;  %v2795_v22 = vrot.slane %v2794_v62, 1 }
0x187e   :  { %v3097_v53 = vrot.slane %v3096_v59, 4  ;;  %4624 = vrcp.f32 %v2349_v34 }
0x187f   :  { %2839 = vrot.lane.b32.xlu1 %v6452_v52, %s4755_s17  ;;  %2374 = vrot.lane.b32.xlu0 %v6422_v0, %s4753_s0  ;;  %v3241_v24 = vadd.f32 %v3240_v25, %v3239_v55  ;;  %v2207_v1 = vrot.slane %v2206_v32, 1  ;;  %v2653_v14 = vadd.f32 %v2652_v41, %v2651_v13  ;;  %v2796_v2 = vadd.f32 %v2795_v22, %v2794_v62  ;;  %v7001_v62 = vld [vmem:[#allocation17_spill] sm:$0xff] }
0x1880   :  { %v4623_v10 = vpop.eup %4622  ;;  %v3098_v61 = vadd.f32 %v3097_v53, %v3096_v59 }
0x1881   :  { %v6470_v18 = vmul.f32 %v4623_v10, %v3245_v46  ;;  %v3242_v57 = vrot.slane %v3241_v24, 1  ;;  %v2208_v40 = vadd.f32 %v2207_v1, %v2206_v32  ;;  %v2654_v28 = vrot.slane %v2653_v14, 1 }
0x1882   :  { %v3099_v3 = vrot.slane %v3098_v61, 2  ;;  %4626 = vrcp.f32 %v2796_v2  ;;  %v7002_v2 = vld [vmem:[#allocation18_spill] sm:$0xff] }
0x1883   :  { %2400 = vrot.lane.b32.xlu1 %v6459_v31, %s4753_s0  ;;  %2821 = vrot.lane.b32.xlu0 %v6433_v58, %s4753_s0  ;;  %v3243_v12 = vadd.f32 %v3242_v57, %v3241_v24  ;;  %v2353_v11 = vmul.f32 %v2208_v40, %v6978_v6  ;;  %v2655_v54 = vadd.f32 %v2654_v28, %v2653_v14 }
0x1884   :  { %v3100_v50 = vadd.f32 %v3099_v3, %v3098_v61 }
0x1885   :  { %4628 = vrcp.f32 %v3243_v12  ;;  %v2800_v49 = vmul.f32 %v2655_v54, %v6978_v6 }
0x1886   :  { %v3101_v30 = vrot.slane %v3100_v50, 1 }
0x1887   :  { %2847 = vrot.lane.b32.xlu1 %v6452_v52, %s4753_s0  ;;  %3268 = vrot.lane.b32.xlu0 %v6443_v42, %s4753_s0 }
0x1888   :  { %v4625_v16 = vpop.eup %4624  ;;  %v3102_v43 = vadd.f32 %v3101_v30, %v3100_v50 }
0x1889   :  { %v6489_v8 = vmul.f32 %v4625_v16, %v2353_v11  ;;  %v7003_v11 = vld [vmem:[#allocation16_spill] sm:$0xff] }
0x188a   :  { %v3247_v7 = vmul.f32 %v3102_v43, %v6978_v6 }
0x188b   :  { %3294 = vrot.lane.b32.xlu1 %v6470_v18, %s4753_s0  ;;  %2382 = vrot.lane.b32.xlu0 %v6422_v0, %s4754_s3 }
0x188c   :  { %v4627_v48 = vpop.eup %4626 }
0x188d   :  { %v6496_v23 = vmul.f32 %v4627_v48, %v2800_v49 }
0x188f   :  { %1961 = vrot.lane.b32.xlu1 %v6340_v35, %s4754_s3  ;;  %3276 = vrot.lane.b32.xlu0 %v6443_v42, %s4754_s3  ;;  %v4629_v60 = vpop.eup %4628 }
0x1890   :  { %v6501_v4 = vmul.f32 %v4629_v60, %v3247_v7 }
0x1893   :  { %2408 = vrot.lane.b32.xlu1 %v6459_v31, %s4754_s3  ;;  %2392 = vrot.lane.b32.xlu0 %v6459_v31, %s4755_s17 }
0x1897   :  { %2855 = vrot.lane.b32.xlu1 %v6452_v52, %s4754_s3  ;;  %3286 = vrot.lane.b32.xlu0 %v6470_v18, %s4755_s17 }
0x189b   :  { %3302 = vrot.lane.b32.xlu1 %v6470_v18, %s4754_s3  ;;  %2394 = vrot.lane.b32.xlu0 %v6489_v8, %s4755_s17 }
0x189f   :  { %2841 = vrot.lane.b32.xlu0 %v6496_v23, %s4755_s17 }
0x18a3   :  { %3288 = vrot.lane.b32.xlu0 %v6501_v4, %s4755_s17 }
0x18a7   :  { %1955 = vrot.lane.b32.xlu0 %v6381_v47, %s4753_s0 }
0x18a9   :  { %v1918_v9 = vpop.permute.xlu1 %1917 }
0x18aa   :  { %v1923_v59 = vadd.f32 %v1918_v9, %v7000_v36 }
0x18ab   :  { %2402 = vrot.lane.b32.xlu0 %v6489_v8, %s4753_s0 }
0x18ad   :  { %v3555_v51 = vpop.permute.xlu1 %3554 }
0x18af   :  { %2849 = vrot.lane.b32.xlu0 %v6496_v23, %s4753_s0 }
0x18b1   :  { %v1926_v37 = vpop.permute.xlu1 %1925 }
0x18b2   :  { %v1931_v19 = vadd.f32 %v1926_v37, %v1923_v59 }
0x18b3   :  { %3296 = vrot.lane.b32.xlu0 %v6501_v4, %s4753_s0 }
0x18b5   :  { %v1934_v45 = vpop.permute.xlu1 %1933  ;;  %v1920_v5 = vpop.permute.xlu0 %1919 }
0x18b6   :  { %v1939_v55 = vadd.f32 %v1934_v45, %v1931_v19  ;;  %v1924_v44 = vadd.f32 %v1920_v5, %v6284_v56  ;;  %v7004_v19 = vld [vmem:[#allocation12_spill] sm:$0xff] }
0x18b7   :  { %1963 = vrot.lane.b32.xlu0 %v6381_v47, %s4754_s3 }
0x18b8   :  { %v1941_v12 = vadd.f32 %v1939_v55, %v6340_v35  ;;  %v7005_v55 = vld [vmem:[#allocation13_spill] sm:$0xff] }
0x18b9   :  { %v3433_v38 = vpop.permute.xlu1 %3432  ;;  %v6516_v53 = vpop.permute.xlu0 %3551 }
0x18ba   :  { %v3466_v25 = vmul.f32 %v3433_v38, %v7001_v62  ;;  %v3467_v46 = vmul.f32 %v3433_v38, %v5047_v26  ;;  %v3560_v41 = vsel %vm152_vm4, %v6516_v53, %v3555_v51 }
0x18bc   :  { %v3482_v22 = vmul.f32 1.442695, %v3466_v25  ;;  %v3484_v3 = vmul.f32 1.442695, %v3467_v46  ;;  %v4735_v25 = vld [vmem:[%s6799_s5 + $0x8] sm:$0xff] }
0x18bd   :  { %v3441_v13 = vpop.permute.xlu1 %3440  ;;  %v1928_v10 = vpop.permute.xlu0 %1927 }
0x18be   :  { %v1932_v20 = vadd.f32 %v1928_v10, %v1924_v44  ;;  %v3470_v24 = vmul.f32 %v3441_v13, %v7001_v62  ;;  %v3471_v1 = vmul.f32 %v3441_v13, %v5047_v26  ;;  %4630 = vpow2.f32 %v3482_v22  ;;  %v4734_v13 = vld [vmem:[%s6799_s5] sm:$0xff] }
0x18bf   :  { %4632 = vpow2.f32 %v3484_v3 }
0x18c0   :  { %v3490_v30 = vmul.f32 1.442695, %v3470_v24  ;;  %v3492_v43 = vmul.f32 1.442695, %v3471_v1  ;;  %v4738_v1 = vld [vmem:[%s6799_s5 + $0x20] sm:$0xff] }
0x18c1   :  { %v3457_v32 = vpop.permute.xlu1 %3456  ;;  %v3558_v61 = vpop.permute.xlu0 %3557 }
0x18c2   :  { %v3561_v34 = vsel %vm416_vm5, %v3560_v41, %v3558_v61  ;;  %v3476_v57 = vmul.f32 %v3457_v32, %v7002_v2  ;;  %v3477_v50 = vmul.f32 %v3457_v32, %v5053_v29  ;;  %4634 = vpow2.f32 %v3490_v30  ;;  %v4736_v32 = vld [vmem:[%s6799_s5 + $0x10] sm:$0xff]  ;;  %v4737_v61 = vld [vmem:[%s6799_s5 + $0x18] sm:$0xff] }
0x18c3   :  { %v3562_v56 = vsel %vm418_vm6, %v3561_v34, %v6954_v17  ;;  %4636 = vpow2.f32 %v3492_v43 }
0x18c4   :  { %v3564_v14 = vcombine.low %v3562_v56, %v3562_v56  ;;  %v3502_v9 = vmul.f32 1.442695, %v3476_v57  ;;  %v3504_v35 = vmul.f32 1.442695, %v3477_v50  ;;  %v4739_v57 = vld [vmem:[%s6799_s5 + $0x28] sm:$0xff] }
0x18c5   :  { %v3461_v40 = vpop.permute.xlu1 %3460  ;;  %v1936_v28 = vpop.permute.xlu0 %1935 }
0x18c6   :  { %v3571_v54 = vrot.slane %v3564_v14, %v7003_v11  ;;  %v3478_v16 = vmul.f32 %v3461_v40, %v7002_v2  ;;  %v6533_v49 = vadd.f32 %v1936_v28, %v1932_v20  ;;  %v3479_v48 = vmul.f32 %v3461_v40, %v5053_v29  ;;  %v4740_v28 = vld [vmem:[%s6799_s5 + $0x30] sm:$0xff] }
0x18c7   :  { %4638 = vpow2.f32 %v3502_v9  ;;  %v4742_v9 = vld [vmem:[%s6799_s5 + $0x40] sm:$0xff] }
0x18c8   :  { %v3572_v7 = vcombine.high %v3571_v54, %v3571_v54  ;;  %v3579_v60 = vrot.slane %v3571_v54, %v7003_v11  ;;  %v3506_v5 = vmul.f32 1.442695, %v3478_v16  ;;  %v3508_v44 = vmul.f32 1.442695, %v3479_v48  ;;  %v4741_v54 = vld [vmem:[%s6799_s5 + $0x38] sm:$0xff] }
0x18c9   :  { %v1946_v51 = vpop.permute.xlu1 %1945  ;;  %v6537_v36 = vpop.permute.xlu0 %3436  ;;  %4640 = vpow2.f32 %v3504_v35 }
0x18ca   :  { %v1951_v59 = vadd.f32 %v1946_v51, %v1941_v12  ;;  %v3586_v37 = vrot.slane %v3572_v7, %v7003_v11  ;;  %v3590_v45 = vrot.slane %v3579_v60, %v7004_v19  ;;  %v3594_v38 = vrot.slane %v3579_v60, %v7005_v55  ;;  %v6569_v11 = vpop.eup %4630 }
0x18cb   :  { %4642 = vpow2.f32 %v3506_v5  ;;  %v4744_v5 = vld [vmem:[%s6799_s5 + $0x50] sm:$0xff] }
0x18cc   :  { %v3607_v10 = vmul.f32 %v4734_v13, %v3590_v45  ;;  %v3608_v46 = vmul.f32 %v4735_v25, %v3594_v38  ;;  %v3609_v41 = vmul.f32 %v4736_v32, %v3590_v45  ;;  %v3610_v34 = vmul.f32 %v4737_v61, %v3594_v38  ;;  %v4745_v13 = vld [vmem:[%s6799_s5 + $0x58] sm:$0xff] }
0x18cd   :  { %v1954_v20 = vpop.permute.xlu1 %1953  ;;  %v6554_v22 = vpop.permute.xlu0 %3452  ;;  %v3598_v56 = vrot.slane %v3586_v37, %v7004_v19  ;;  %v3611_v14 = vmul.f32 %v4738_v1, %v3590_v45  ;;  %v3602_v3 = vrot.slane %v3586_v37, %v7005_v55  ;;  %v3612_v40 = vmul.f32 %v4739_v57, %v3594_v38  ;;  %v4743_v37 = vld [vmem:[%s6799_s5 + $0x48] sm:$0xff] }
0x18ce   :  { %v6556_v24 = vadd.f32 %v1954_v20, %v1951_v59  ;;  %4644 = vpow2.f32 %v3508_v44  ;;  %v3613_v50 = vmul.f32 %v4740_v28, %v3590_v45  ;;  %v3623_v12 = vmul.f32 1.442695, %v3607_v10  ;;  %v6581_v59 = vpop.eup %4632  ;;  %v4747_v57 = vld [vmem:[%s6799_s5 + $0x68] sm:$0xff] }
0x18cf   :  { %v3614_v30 = vmul.f32 %v4741_v54, %v3594_v38  ;;  %v3625_v16 = vmul.f32 1.442695, %v3608_v46  ;;  %v3627_v43 = vmul.f32 1.442695, %v3609_v41  ;;  %v3629_v48 = vmul.f32 1.442695, %v3610_v34  ;;  %v6589_v44 = vpop.eup %4634 }
0x18d0   :  { %v3615_v51 = vmul.f32 %v4742_v9, %v3598_v56  ;;  %4646 = vpow2.f32 %v3623_v12  ;;  %v3631_v35 = vmul.f32 1.442695, %v3611_v14  ;;  %v3616_v19 = vmul.f32 %v4743_v37, %v3602_v3  ;;  %v6596_v32 = vpop.eup %4636  ;;  %v4746_v41 = vld [vmem:[%s6799_s5 + $0x60] sm:$0xff]  ;;  %v4748_v12 = vld [vmem:[%s6799_s5 + $0x70] sm:$0xff] }
0x18d1   :  { %v6574_v7 = vpop.permute.xlu1 %2811  ;;  %v6576_v60 = vpop.permute.xlu0 %3444  ;;  %4648 = vpow2.f32 %v3625_v16  ;;  %v3633_v45 = vmul.f32 1.442695, %v3612_v40  ;;  %v3617_v55 = vmul.f32 %v4744_v5, %v3598_v56  ;;  %v3635_v38 = vmul.f32 1.442695, %v3613_v50 }
0x18d2   :  { %4650 = vpow2.f32 %v3627_v43  ;;  %v3618_v10 = vmul.f32 %v4745_v13, %v3602_v3  ;;  %v3637_v20 = vmul.f32 1.442695, %v3614_v30  ;;  %v3619_v61 = vmul.f32 %v4746_v41, %v3598_v56  ;;  %v6603_v14 = vpop.eup %4638 }
0x18d3   :  { %4652 = vpow2.f32 %v3629_v48  ;;  %v3639_v34 = vmul.f32 1.442695, %v3615_v51  ;;  %v1942_v1 = vadd.f32 %v6533_v49, %v6381_v47  ;;  %v3620_v40 = vmul.f32 %v4747_v57, %v3602_v3  ;;  %v6608_v50 = vpop.eup %4640  ;;  %v4749_v49 = vld [vmem:[%s6799_s5 + $0x78] sm:$0xff] }
0x18d4   :  { %4654 = vpow2.f32 %v3631_v35  ;;  %v3641_v28 = vmul.f32 1.442695, %v3616_v19  ;;  %v3621_v54 = vmul.f32 %v4748_v12, %v3598_v56  ;;  %v3643_v30 = vmul.f32 1.442695, %v3617_v55 }
0x18d5   :  { %v6594_v25 = vpop.permute.xlu1 %2372  ;;  %v1948_v46 = vpop.permute.xlu0 %1947  ;;  %4656 = vpow2.f32 %v3633_v45  ;;  %v3622_v43 = vmul.f32 %v4749_v49, %v3602_v3  ;;  %v3645_v48 = vmul.f32 1.442695, %v3618_v10  ;;  %v3647_v56 = vmul.f32 1.442695, %v3619_v61 }
0x18d6   :  { %4658 = vpow2.f32 %v3635_v38  ;;  %v6613_v16 = vadd.f32 %v1948_v46, %v1942_v1  ;;  %v6615_v47 = vpop.eup %4642  ;;  %v3468_v37 = vmul.f32 %v6537_v36, %v7001_v62  ;;  %v3649_v19 = vmul.f32 1.442695, %v3620_v40 }
0x18d7   :  { %4660 = vpow2.f32 %v3637_v20  ;;  %v3469_v45 = vmul.f32 %v6537_v36, %v5047_v26  ;;  %v3651_v3 = vmul.f32 1.442695, %v3621_v54  ;;  %v3474_v55 = vmul.f32 %v6554_v22, %v7002_v2 }
0x18d8   :  { %v6622_v35 = vpop.eup %4644  ;;  %4662 = vpow2.f32 %v3639_v34  ;;  %v3653_v13 = vmul.f32 1.442695, %v3622_v43  ;;  %v3475_v10 = vmul.f32 %v6554_v22, %v5053_v29  ;;  %v3486_v61 = vmul.f32 1.442695, %v3468_v37 }
0x18d9   :  { %v6620_v9 = vpop.permute.xlu1 %2819  ;;  %v3465_v51 = vpop.permute.xlu0 %3464  ;;  %4664 = vpow2.f32 %v3641_v28  ;;  %v3472_v36 = vmul.f32 %v6576_v60, %v7001_v62  ;;  %v3488_v1 = vmul.f32 1.442695, %v3469_v45  ;;  %v3473_v57 = vmul.f32 %v6576_v60, %v5047_v26 }
0x18da   :  { %v4647_v5 = vpop.eup %4646  ;;  %4666 = vpow2.f32 %v3643_v30  ;;  %v3498_v22 = vmul.f32 1.442695, %v3474_v55  ;;  %v3480_v12 = vmul.f32 %v3465_v51, %v7002_v2  ;;  %v3500_v49 = vmul.f32 1.442695, %v3475_v10 }
0x18db   :  { %v4649_v38 = vpop.eup %4648  ;;  %4668 = vpow2.f32 %v3645_v48  ;;  %v3481_v62 = vmul.f32 %v3465_v51, %v5053_v29  ;;  %v3494_v26 = vmul.f32 1.442695, %v3472_v36  ;;  %v3496_v45 = vmul.f32 1.442695, %v3473_v57 }
0x18dc   :  { %v4651_v41 = vpop.eup %4650  ;;  %4670 = vpow2.f32 %v3647_v56 }
0x18dd   :  { %v6632_v20 = vpop.permute.xlu1 %3266  ;;  %v6634_v46 = vpop.permute.xlu0 %2364  ;;  %4672 = vpow2.f32 %v3649_v19  ;;  %v3655_v40 = vadd.f32 %v4651_v41, %v4647_v5  ;;  %v3512_v29 = vmul.f32 1.442695, %v3481_v62 }
0x18de   :  { %v4653_v34 = vpop.eup %4652  ;;  %4674 = vpow2.f32 %v3651_v3  ;;  %v3510_v3 = vmul.f32 1.442695, %v3480_v12 }
0x18df   :  { %v4655_v28 = vpop.eup %4654  ;;  %v3664_v54 = vadd.f32 %v4653_v34, %v4649_v38  ;;  %4676 = vpow2.f32 %v3653_v13 }
0x18e0   :  { %v4657_v30 = vpop.eup %4656  ;;  %v3656_v56 = vadd.f32 %v4655_v28, %v3655_v40  ;;  %4678 = vpow2.f32 %v3486_v61 }
0x18e1   :  { %v6641_v43 = vpop.permute.xlu1 %2380  ;;  %v6644_v48 = vpop.permute.xlu0 %3258  ;;  %v3665_v60 = vadd.f32 %v4657_v30, %v3664_v54  ;;  %4680 = vpow2.f32 %v3488_v1 }
0x18e2   :  { %v4659_v37 = vpop.eup %4658  ;;  %4682 = vpow2.f32 %v3498_v22 }
0x18e3   :  { %v4661_v19 = vpop.eup %4660  ;;  %v3657_v5 = vadd.f32 %v4659_v37, %v3656_v56  ;;  %4684 = vpow2.f32 %v3500_v49 }
0x18e4   :  { %v4663_v2 = vpop.eup %4662  ;;  %v3666_v55 = vadd.f32 %v4661_v19, %v3665_v60  ;;  %4686 = vpow2.f32 %v3494_v26 }
0x18e5   :  { %v4665_v38 = vpop.eup %4664  ;;  %v6646_v13 = vpop.permute.xlu1 %2827  ;;  %v3658_v10 = vrot.slane %v3657_v5, 4  ;;  %4688 = vpow2.f32 %v3496_v45 }
0x18e6   :  { %v2367_v51 = vpop.permute.xlu0 %2366  ;;  %v4667_v41 = vpop.eup %4666  ;;  %v3667_v1 = vrot.slane %v3666_v55, 4  ;;  %4690 = vpow2.f32 %v3510_v3 }
0x18e7   :  { %v4669_v61 = vpop.eup %4668  ;;  %v3659_v36 = vadd.f32 %v3658_v10, %v3657_v5  ;;  %v3673_v34 = vadd.f32 %v4667_v41, %v4663_v2  ;;  %4692 = vpow2.f32 %v3512_v29 }
0x18e8   :  { %v4671_v57 = vpop.eup %4670  ;;  %v3682_v40 = vadd.f32 %v4669_v61, %v4665_v38  ;;  %v3668_v60 = vadd.f32 %v3667_v1, %v3666_v55  ;;  %v2371_v61 = vadd.f32 %v2367_v51, %v6422_v0 }
0x18e9   :  { %v4673_v28 = vpop.eup %4672  ;;  %v6648_v22 = vpop.permute.xlu1 %3274  ;;  %v3660_v54 = vrot.slane %v3659_v36, 2  ;;  %v3674_v30 = vadd.f32 %v4671_v57, %v3673_v34 }
0x18ea   :  { %v2814_v12 = vpop.permute.xlu0 %2813  ;;  %v4675_v49 = vpop.eup %4674  ;;  %v3683_v62 = vadd.f32 %v4673_v28, %v3682_v40  ;;  %v3669_v28 = vrot.slane %v3668_v60, 2 }
0x18eb   :  { %v4677_v56 = vpop.eup %4676  ;;  %v3661_v37 = vadd.f32 %v3660_v54, %v3659_v36  ;;  %v3675_v26 = vadd.f32 %v4675_v49, %v3674_v30 }
0x18ec   :  { %v4679_v19 = vpop.eup %4678  ;;  %v3684_v45 = vadd.f32 %v4677_v56, %v3683_v62 }
0x18ed   :  { %v4681_v5 = vpop.eup %4680  ;;  %v3514_v2 = vadd.f32 %v4679_v19, %v6569_v11  ;;  %v3662_v38 = vrot.slane %v3661_v37, 1  ;;  %v3676_v10 = vrot.slane %v3675_v26, 4  ;;  %v2830_v55 = vpop.permute.xlu1 %2829 }
0x18ee   :  { %v3261_v3 = vpop.permute.xlu0 %3260  ;;  %v4683_v29 = vpop.eup %4682  ;;  %v3523_v41 = vadd.f32 %v4681_v5, %v6581_v59  ;;  %v3685_v34 = vrot.slane %v3684_v45, 4 }
0x18ef   :  { %v4685_v57 = vpop.eup %4684  ;;  %v3532_v40 = vadd.f32 %v4683_v29, %v6603_v14  ;;  %v3515_v36 = vadd.f32 %v6589_v44, %v3514_v2  ;;  %v3677_v1 = vadd.f32 %v3676_v10, %v3675_v26  ;;  %v3663_v49 = vadd.f32 %v3662_v38, %v3661_v37 }
0x18f0   :  { %v4687_v54 = vpop.eup %4686  ;;  %v3541_v11 = vadd.f32 %v4685_v57, %v6608_v50  ;;  %v3524_v30 = vadd.f32 %v6596_v32, %v3523_v41  ;;  %v3686_v62 = vadd.f32 %v3685_v34, %v3684_v45  ;;  %v2818_v26 = vadd.f32 %v2814_v12, %v6433_v58 }
0x18f1   :  { %v4689_v56 = vpop.eup %4688  ;;  %v3516_v59 = vadd.f32 %v4687_v54, %v3515_v36  ;;  %v3533_v0 = vadd.f32 %v6615_v47, %v3532_v40  ;;  %v3678_v19 = vrot.slane %v3677_v1, 2  ;;  %v3670_v32 = vadd.f32 %v3669_v28, %v3668_v60  ;;  %v6660_v47 = vpop.permute.xlu1 %2839 }
0x18f2   :  { %v2375_v51 = vpop.permute.xlu0 %2374  ;;  %v4691_v5 = vpop.eup %4690  ;;  %v3525_v14 = vadd.f32 %v4689_v56, %v3524_v30  ;;  %v3542_v44 = vadd.f32 %v6622_v35, %v3541_v11  ;;  %4694 = vrcp.f32 %v3663_v49  ;;  %v3687_v38 = vrot.slane %v3686_v62, 2 }
0x18f3   :  { %v2379_v2 = vadd.f32 %v2375_v51, %v2371_v61  ;;  %v4693_v10 = vpop.eup %4692  ;;  %v3517_v29 = vrot.slane %v3516_v59, 4  ;;  %v3534_v50 = vadd.f32 %v4691_v5, %v3533_v0  ;;  %v3679_v57 = vadd.f32 %v3678_v19, %v3677_v1 }
0x18f4   :  { %v3526_v37 = vrot.slane %v3525_v14, 4  ;;  %v3543_v45 = vadd.f32 %v4693_v10, %v3542_v44  ;;  %v3688_v30 = vadd.f32 %v3687_v38, %v3686_v62  ;;  %v3265_v1 = vadd.f32 %v3261_v3, %v6443_v42 }
0x18f5   :  { %v3535_v41 = vrot.slane %v3534_v50, 4  ;;  %v3518_v40 = vadd.f32 %v3517_v29, %v3516_v59  ;;  %v3680_v36 = vrot.slane %v3679_v57, 1  ;;  %v3671_v28 = vrot.slane %v3670_v32, 1  ;;  %v6665_v59 = vpop.permute.xlu1 %2400 }
0x18f6   :  { %v2822_v34 = vpop.permute.xlu0 %2821  ;;  %v3544_v54 = vrot.slane %v3543_v45, 4  ;;  %v3527_v11 = vadd.f32 %v3526_v37, %v3525_v14 }
0x18f7   :  { %v2826_v35 = vadd.f32 %v2822_v34, %v2818_v26  ;;  %v3519_v58 = vrot.slane %v3518_v40, 2  ;;  %v3536_v12 = vadd.f32 %v3535_v41, %v3534_v50  ;;  %v3681_v61 = vadd.f32 %v3680_v36, %v3679_v57 }
0x18f8   :  { %v3545_v49 = vadd.f32 %v3544_v54, %v3543_v45  ;;  %v3528_v14 = vrot.slane %v3527_v11, 2  ;;  %v3689_v26 = vrot.slane %v3688_v30, 1  ;;  %v3672_v10 = vadd.f32 %v3671_v28, %v3670_v32 }
0x18f9   :  { %v6663_v60 = vadd.f32 %v2830_v55, %v2826_v35  ;;  %v3520_v0 = vadd.f32 %v3519_v58, %v3518_v40  ;;  %v3537_v51 = vrot.slane %v3536_v12, 2  ;;  %4696 = vrcp.f32 %v3681_v61  ;;  %v6668_v34 = vpop.permute.xlu1 %2847 }
0x18fa   :  { %v3269_v56 = vpop.permute.xlu0 %3268  ;;  %v3546_v29 = vrot.slane %v3545_v49, 2  ;;  %v3529_v45 = vadd.f32 %v3528_v14, %v3527_v11  ;;  %v3690_v38 = vadd.f32 %v3689_v26, %v3688_v30  ;;  %4698 = vrcp.f32 %v3672_v10 }
0x18fb   :  { %v3273_v19 = vadd.f32 %v3269_v56, %v3265_v1  ;;  %v3521_v5 = vrot.slane %v3520_v0, 1  ;;  %v3538_v44 = vadd.f32 %v3537_v51, %v3536_v12  ;;  %v2370_v12 = vadd.f32 %v6634_v46, %v6376_v27 }
0x18fc   :  { %v4695_v3 = vpop.eup %4694  ;;  %v3547_v41 = vadd.f32 %v3546_v29, %v3545_v49  ;;  %4700 = vrcp.f32 %v3690_v38  ;;  %v3264_v56 = vadd.f32 %v6644_v48, %v6399_v33 }
0x18fd   :  { %v3522_v62 = vadd.f32 %v3521_v5, %v3520_v0  ;;  %v3539_v50 = vrot.slane %v3538_v44, 1  ;;  %v3295_v61 = vpop.permute.xlu1 %3294  ;;  %v2378_v49 = vadd.f32 %v6594_v25, %v2370_v12 }
0x18fe   :  { %v2383_v42 = vpop.permute.xlu0 %2382  ;;  %v3548_v11 = vrot.slane %v3547_v41, 1 }
0x18ff   :  { %v2387_v55 = vadd.f32 %v2383_v42, %v2379_v2  ;;  %v3691_v57 = vmul.f32 %v3522_v62, %v6948_v15  ;;  %v3540_v37 = vadd.f32 %v3539_v50, %v3538_v44  ;;  %v3530_v2 = vrot.slane %v3529_v45, 1 }
0x1900   :  { %v3549_v30 = vadd.f32 %v3548_v11, %v3547_v41  ;;  %v3272_v44 = vadd.f32 %v6632_v20, %v3264_v56  ;;  %v2386_v33 = vadd.f32 %v6641_v43, %v2378_v49 }
0x1901   :  { %v6670_v40 = vmul.f32 %v4695_v3, %v3691_v57  ;;  %v3693_v36 = vmul.f32 %v3540_v37, %v6987_v39  ;;  %v3531_v39 = vadd.f32 %v3530_v2, %v3529_v45  ;;  %v2389_v0 = vadd.f32 %v2387_v55, %v6489_v8 }
0x1902   :  { %v3277_v32 = vpop.permute.xlu0 %3276  ;;  %v3694_v46 = vmul.f32 %v3549_v30, %v6978_v6  ;;  %v2836_v6 = vadd.f32 %v6663_v60, %v6496_v23  ;;  %v2388_v26 = vadd.f32 %v2386_v33, %v6459_v31  ;;  %v3280_v20 = vadd.f32 %v6648_v22, %v3272_v44 }
0x1903   :  { %v3281_v54 = vadd.f32 %v3277_v32, %v3273_v19  ;;  %v4697_v35 = vpop.eup %4696  ;;  %3705 = vrot.lane.b32.xlu1 %v6670_v40, %s4755_s17  ;;  %v3692_v27 = vmul.f32 %v3531_v39, %v6971_v21  ;;  %v1962_v19 = vpop.permute.xlu1 %1961  ;;  %v2817_v55 = vadd.f32 %v6574_v7, %v6360_v63 }
0x1904   :  { %v6675_v15 = vmul.f32 %v4697_v35, %v3693_v36  ;;  %v4699_v28 = vpop.eup %4698  ;;  %v3282_v42 = vadd.f32 %v3280_v20, %v6470_v18 }
0x1905   :  { %v6693_v5 = vmul.f32 %v4699_v28, %v3692_v27  ;;  %v3283_v62 = vadd.f32 %v3281_v54, %v6501_v4  ;;  %v2825_v37 = vadd.f32 %v6620_v9, %v2817_v55  ;;  %v7006_v9 = vld [vmem:[#allocation5_spill] sm:$0xff] }
0x1906   :  { %v2393_v58 = vpop.permute.xlu0 %2392  ;;  %3707 = vrot.lane.b32.xlu0 %v6675_v15, %s4755_s17  ;;  %v4701_v51 = vpop.eup %4700  ;;  %v1973_v54 = vrot.slane %v7006_v9, 1 }
0x1907   :  { %3713 = vrot.lane.b32.xlu1 %v6670_v40, %s4753_s0  ;;  %v6701_v21 = vmul.f32 %v4701_v51, %v3694_v46  ;;  %v2409_v29 = vpop.permute.xlu1 %2408  ;;  %v2398_v43 = vadd.f32 %v2393_v58, %v2388_v26  ;;  %v2833_v38 = vadd.f32 %v6646_v13, %v2825_v37  ;;  %v1967_v13 = vadd.f32 %v1962_v19, %v6556_v24  ;;  %v7007_v58 = vld [vmem:[#allocation9_spill] sm:$0xff]  ;;  %v7009_v24 = vld [vmem:[#allocation14_spill] sm:$0xff]  ;;  %v7010_v37 = vld [vmem:[#allocation8_spill] sm:$0xff] }
0x1908   :  { %v2867_v12 = vrot.slane %v7007_v58, 1  ;;  %v3314_v39 = vrot.slane %v7009_v24, 1 }
0x1909   :  { %v2835_v7 = vadd.f32 %v2833_v38, %v6452_v52 }
0x190a   :  { %v3287_v1 = vpop.permute.xlu0 %3286  ;;  %3715 = vrot.lane.b32.xlu0 %v6675_v15, %s4753_s0 }
0x190b   :  { %3721 = vrot.lane.b32.xlu1 %v6670_v40, %s4754_s3  ;;  %v3292_v22 = vadd.f32 %v3287_v1, %v3282_v42  ;;  %v2856_v60 = vpop.permute.xlu1 %2855  ;;  %v2845_v35 = vadd.f32 %v6660_v47, %v2835_v7  ;;  %v7008_v47 = vld [vmem:[#allocation7_spill] sm:$0xff] }
0x190d   :  { %v3300_v57 = vadd.f32 %v3295_v61, %v3292_v22  ;;  %v2853_v11 = vadd.f32 %v6668_v34, %v2845_v35  ;;  %v2420_v61 = vrot.slane %v7008_v47, 1 }
0x190e   :  { %v2395_v25 = vpop.permute.xlu0 %2394  ;;  %2857 = vrot.lane.b32.xlu0 %v6496_v23, %s4754_s3  ;;  %v2406_v23 = vadd.f32 %v6665_v59, %v2398_v43 }
0x190f   :  { %v2399_v48 = vadd.f32 %v2395_v25, %v2389_v0  ;;  %3733 = vrot.lane.b32.xlu1 %v6693_v5, %s4755_s17  ;;  %v3303_v41 = vpop.permute.xlu1 %3302  ;;  %v2861_v52 = vadd.f32 %v2856_v60, %v2853_v11 }
0x1910   :  { %v2414_v18 = vadd.f32 %v2409_v29, %v2406_v23  ;;  %v3308_v36 = vadd.f32 %v3303_v41, %v3300_v57  ;;  %v7011_v41 = vld [vmem:[#allocation15_spill] sm:$0xff] }
0x1912   :  { %v2842_v14 = vpop.permute.xlu0 %2841  ;;  %3735 = vrot.lane.b32.xlu0 %v6701_v21, %s4755_s17 }
0x1913   :  { %v2846_v10 = vadd.f32 %v2842_v14, %v2836_v6  ;;  %3741 = vrot.lane.b32.xlu1 %v6693_v5, %s4753_s0 }
0x1916   :  { %v3289_v50 = vpop.permute.xlu0 %3288  ;;  %3743 = vrot.lane.b32.xlu0 %v6701_v21, %s4753_s0 }
0x1917   :  { %v3293_v31 = vadd.f32 %v3289_v50, %v3283_v62  ;;  %3749 = vrot.lane.b32.xlu1 %v6693_v5, %s4754_s3 }
0x191a   :  { %v1956_v3 = vpop.permute.xlu0 %1955  ;;  %3751 = vrot.lane.b32.xlu0 %v6701_v21, %s4754_s3 }
0x191b   :  { %3723 = vrot.lane.b32.xlu1 %v6675_v15, %s4754_s3  ;;  %v1960_v30 = vadd.f32 %v1956_v3, %v6613_v16 }
0x191e   :  { %v2403_v45 = vpop.permute.xlu0 %2402  ;;  %2417 = vrot.lane.b32.xlu0 %v2414_v18, %s4754_s3 }
0x191f   :  { %v2407_v59 = vadd.f32 %v2403_v45, %v2399_v48  ;;  %2410 = vrot.lane.b32.xlu1 %v6489_v8, %s4754_s3 }
0x1922   :  { %v2850_v32 = vpop.permute.xlu0 %2849  ;;  %3311 = vrot.lane.b32.xlu0 %v3308_v36, %s4754_s3 }
0x1923   :  { %v2854_v63 = vadd.f32 %v2850_v32, %v2846_v10  ;;  %3304 = vrot.lane.b32.xlu1 %v6501_v4, %s4754_s3  ;;  %v3761_v4 = vrot.slane %v6954_v17, 1 }
0x1926   :  { %v3297_v2 = vpop.permute.xlu0 %3296  ;;  %1974 = vrot.lane.b32.xlu0 %v1973_v54, %s4755_s17 }
0x1927   :  { %v3301_v8 = vadd.f32 %v3297_v2, %v3293_v31  ;;  %1970 = vrot.lane.b32.xlu1 %v1967_v13, %s4754_s3 }
0x192a   :  { %2868 = vrot.lane.b32.xlu0 %v2867_v12, %s4755_s17  ;;  %v1964_v34 = vpop.permute.xlu0 %1963 }
0x192b   :  { %2864 = vrot.lane.b32.xlu1 %v2861_v52, %s4754_s3  ;;  %v1968_v1 = vadd.f32 %v1964_v34, %v1960_v30 }
0x192e   :  { %3762 = vrot.lane.b32.xlu0 %v3761_v4, %s4755_s17 }
0x192f   :  { %2421 = vrot.lane.b32.xlu1 %v2420_v61, %s4755_s17 }
0x1933   :  { %3315 = vrot.lane.b32.xlu1 %v3314_v39, %s4755_s17 }
0x1937   :  { %1978 = vrot.lane.b32.xlu1 %v1968_v1, %s4755_s17 }
0x1975   :  { %v3706_v28 = vpop.permute.xlu1 %3705 }
0x1976   :  { %v3711_v17 = vadd.f32 %v3706_v28, %v6670_v40 }
0x1978   :  { %v3708_v49 = vpop.permute.xlu0 %3707 }
0x1979   :  { %v3714_v56 = vpop.permute.xlu1 %3713  ;;  %v3712_v20 = vadd.f32 %v3708_v49, %v6675_v15 }
0x197a   :  { %v3719_v27 = vadd.f32 %v3714_v56, %v3711_v17 }
0x197c   :  { %v3716_v46 = vpop.permute.xlu0 %3715 }
0x197d   :  { %v3722_v0 = vpop.permute.xlu1 %3721  ;;  %v3720_v40 = vadd.f32 %v3716_v46, %v3712_v20 }
0x197e   :  { %v3727_v51 = vadd.f32 %v3722_v0, %v3719_v27 }
0x1980   :  { %v2858_v19 = vpop.permute.xlu0 %2857  ;;  %v3729_v33 = vadd.f32 %v3727_v51, %v6693_v5 }
0x1981   :  { %v2862_v25 = vadd.f32 %v2858_v19, %v2854_v63  ;;  %v3734_v44 = vpop.permute.xlu1 %3733  ;;  %v7012_v63 = vld [vmem:[#allocation6_spill] sm:$0xff] }
0x1982   :  { %v3739_v48 = vadd.f32 %v3734_v44, %v3729_v33 }
0x1983   :  { %2872 = vrot.lane.b32.xlu1 %v2862_v25, %s4755_s17 }
0x1984   :  { %v3736_v14 = vpop.permute.xlu0 %3735 }
0x1985   :  { %v3742_v16 = vpop.permute.xlu1 %3741 }
0x1986   :  { %v3747_v6 = vadd.f32 %v3742_v16, %v3739_v48 }
0x1988   :  { %v3744_v62 = vpop.permute.xlu0 %3743 }
0x1989   :  { %v3750_v26 = vpop.permute.xlu1 %3749 }
0x198a   :  { %v3755_v10 = vadd.f32 %v3750_v26, %v3747_v6 }
0x198c   :  { %3758 = vrot.lane.b32.xlu1 %v3755_v10, %s4754_s3  ;;  %v3752_v22 = vpop.permute.xlu0 %3751 }
0x198d   :  { %v3724_v29 = vpop.permute.xlu1 %3723 }
0x198e   :  { %v3728_v43 = vadd.f32 %v3724_v29, %v3720_v40 }
0x1990   :  { %v3730_v50 = vadd.f32 %v3728_v43, %v6701_v21  ;;  %v2418_v18 = vpop.permute.xlu0 %2417 }
0x1991   :  { %v2411_v42 = vpop.permute.xlu1 %2410  ;;  %v2428_v21 = vsel %vm152_vm4, %v7010_v37, %v2418_v18 }
0x1992   :  { %v3740_v5 = vadd.f32 %v3736_v14, %v3730_v50  ;;  %v2415_v31 = vadd.f32 %v2411_v42, %v2407_v59 }
0x1994   :  { %v3748_v23 = vadd.f32 %v3744_v62, %v3740_v5  ;;  %2425 = vrot.lane.b32.xlu0 %v2415_v31, %s4755_s17  ;;  %v3312_v38 = vpop.permute.xlu0 %3311 }
0x1995   :  { %v3305_v60 = vpop.permute.xlu1 %3304  ;;  %v3322_v36 = vsel %vm152_vm4, %v7011_v41, %v3312_v38 }
0x1996   :  { %v3309_v3 = vadd.f32 %v3305_v60, %v3301_v8  ;;  %v3756_v55 = vadd.f32 %v3752_v22, %v3748_v23  ;;  %v7013_v8 = vld [vmem:[#allocation10_spill] sm:$0xff] }
0x1998   :  { %3319 = vrot.lane.b32.xlu0 %v3309_v3, %s4755_s17  ;;  %3766 = vrot.lane.b32.xlu1 %v3756_v55, %s4755_s17  ;;  %v1975_v54 = vpop.permute.xlu0 %1974 }
0x1999   :  { %v1971_v15 = vpop.permute.xlu1 %1970 }
0x199a   :  { %v1981_v7 = vsel %vm152_vm4, %v7012_v63, %v1971_v15 }
0x199b   :  { %v1982_v13 = vsel %vm416_vm5, %v1981_v7, %v1975_v54 }
0x199c   :  { %v2869_v58 = vpop.permute.xlu0 %2868 }
0x199d   :  { %v2865_v57 = vpop.permute.xlu1 %2864 }
0x199e   :  { %v2875_v11 = vsel %vm152_vm4, %v7013_v8, %v2865_v57 }
0x199f   :  { %v2876_v52 = vsel %vm416_vm5, %v2875_v11, %v2869_v58 }
0x19a0   :  { %v3763_v47 = vpop.permute.xlu0 %3762 }
0x19a1   :  { %v2422_v45 = vpop.permute.xlu1 %2421 }
0x19a2   :  { %v2429_v59 = vsel %vm416_vm5, %v2428_v21, %v2422_v45 }
0x19a5   :  { %v3316_v32 = vpop.permute.xlu1 %3315 }
0x19a6   :  { %v3323_v9 = vsel %vm416_vm5, %v3322_v36, %v3316_v32 }
0x19a9   :  { %v1979_v35 = vpop.permute.xlu1 %1978 }
0x19aa   :  { %v1983_v2 = vsel %vm418_vm6, %v1982_v13, %v1979_v35 }
0x19ab   :  { %1984 = vst [vmem:[%s6800_s6 + $0x3] sm:$0x1] %v1983_v2 }
0x19f5   :  { %v2873_v12 = vpop.permute.xlu1 %2872 }
0x19f6   :  { %v2877_v4 = vsel %vm418_vm6, %v2876_v52, %v2873_v12 }
0x19f7   :  { %2878 = vst [vmem:[%s6800_s6 + $0x5] sm:$0x1] %v2877_v4 }
0x19fe   :  { %v3759_v61 = vpop.permute.xlu1 %3758 }
0x19ff   :  { %v3769_v39 = vsel %vm152_vm4, %v6516_v53, %v3759_v61 }
0x1a00   :  { %v3770_v1 = vsel %vm416_vm5, %v3769_v39, %v3763_v47 }
0x1a06   :  { %v2426_v24 = vpop.permute.xlu0 %2425 }
0x1a07   :  { %v2430_v34 = vsel %vm418_vm6, %v2429_v59, %v2426_v24 }
0x1a08   :  { %2431 = vst [vmem:[%s6800_s6 + $0x4] sm:$0x1] %v2430_v34 }
0x1a0a   :  { %v3767_v30 = vpop.permute.xlu1 %3766  ;;  %v3320_v28 = vpop.permute.xlu0 %3319 }
0x1a0b   :  { %v3771_v49 = vsel %vm418_vm6, %v3770_v1, %v3767_v30  ;;  %v3324_v56 = vsel %vm418_vm6, %v3323_v9, %v3320_v28 }
0x1a0c   :  { %3772 = vst [vmem:[%s6800_s6 + $0x7] sm:$0x1] %v3771_v49  ;;  %3325 = vst [vmem:[%s6800_s6 + $0x6] sm:$0x1] %v3324_v56 }

</bundles_post_ra>
